<compile_context>
chip_gen: v5e
topology: v5e:2x2
jax: 0.10.0
libtpu: 0.0.40
codegen_flags: <defaults>
</compile_context>

<pallas_src>
import functools

import numpy as np
import jax
import jax.numpy as jnp
from jax.experimental import pallas as pl
from jax.experimental.pallas import tpu as pltpu

VMEM_SPEC = pl.BlockSpec(memory_space=pltpu.MemorySpace.VMEM)
VMEM_LIMIT_BYTES = 64 * 1024 * 1024   # explicit scoped-VMEM cap (actual use is tiny)
LANE = 128


def _round_up(v, m):
    return (v + m - 1) // m * m


def _tile_rows(m):
    """M-tile for the im2col matmul.  >=512-row tiles reach ~85% of the HBM
    roofline; 512 also keeps double-buffered bf16 tiles inside the 32 MiB
    scoped-VMEM default even on v7x (64 MiB physical)."""
    tile = 512 if m >= 512 else _round_up(max(m, 16), 16)
    return tile, _round_up(m, tile)


# ----------------------------- Pallas kernels ------------------------------


def _conv_kernel(p_ref, w_ref, b_ref, o_ref, *, leaky):
    # fused conv-as-matmul (+ folded BN scale already in weights) + bias + leaky
    acc = jnp.dot(p_ref[...], w_ref[...], preferred_element_type=jnp.float32)
    acc = acc + b_ref[...]
    if leaky:
        acc = jnp.where(acc > 0, acc, 0.1 * acc)
    o_ref[...] = acc


def _conv_yolo_kernel(p_ref, w_ref, b_ref, sel_ref, g_ref, raw_ref, io_ref,
                      *, det_stride, leaky):
    # conv matmul + bias (+ optional leaky) ...
    acc = jnp.dot(p_ref[...], w_ref[...], preferred_element_type=jnp.float32)
    acc = acc + b_ref[...]
    if leaky:
        acc = jnp.where(acc > 0, acc, 0.1 * acc)
    raw_ref[...] = acc                                   # raw predictions ("p")

    # ... fused YOLO decode epilogue.
    mask_xy = sel_ref[0:1, :]     # 1.0 where column is an x/y coord
    mask_wh = sel_ref[1:2, :]     # 1.0 where column is a w/h coord
    is_x = sel_ref[2:3, :]        # 1.0 where column is the x coord
    anch = sel_ref[3:4, :]        # anchor_wh value for w/h columns, else 0

    sig = jax.nn.sigmoid(acc)
    grid_v = g_ref[:, 0:1] * is_x + g_ref[:, 1:2] * (mask_xy - is_x)
    xy = (sig + grid_v) * det_stride
    # mask BEFORE exp so large objectness/class logits never produce inf.
    wh = (jnp.exp(acc * mask_wh) * anch) * det_stride
    io_ref[...] = mask_xy * xy + mask_wh * wh + (1.0 - mask_xy - mask_wh) * sig


def _maxpool_kernel(xl_ref, xr_ref, o_ref, *, half):
    # 2x2/stride-2 max-pool: each input row holds the two vertically adjacent
    # rows of one output row (lane-dense 2*Wo*C layout); xl/xr are the even /
    # odd W columns.  All four loads and the max run in one kernel.
    top_l = xl_ref[:, 0:half]
    bot_l = xl_ref[:, half:2 * half]
    top_r = xr_ref[:, 0:half]
    bot_r = xr_ref[:, half:2 * half]
    o_ref[...] = jnp.maximum(jnp.maximum(top_l, bot_l),
                             jnp.maximum(top_r, bot_r))


def _add_kernel(a_ref, b_ref, o_ref):
    o_ref[...] = a_ref[...] + b_ref[...]


# ----------------------------- layer wrappers -------------------------------


def _patches_nhwc(x, k, stride, pad):
    """im2col on NHWC input, K ordered (kh, kw, C) to match the weight reshape.
    1x1 stride-1 convs are a free reshape (no im2col materialization)."""
    N, H, W, C = x.shape
    if k == 1 and stride == 1 and pad == 0:
        return x.reshape(N * H * W, C), H, W
    # TODO(synk): replace materialized im2col for k>1 with halo-block loading
    # inside the kernel (spatial BlockSpec tiling) to cut k^2x HBM traffic.
    xp = jnp.pad(x, ((0, 0), (pad, pad), (pad, pad), (0, 0)))
    Ho = (H + 2 * pad - k) // stride + 1
    Wo = (W + 2 * pad - k) // stride + 1
    cols = []
    for i in range(k):
        for j in range(k):
            cols.append(xp[:, i:i + stride * Ho:stride,
                               j:j + stride * Wo:stride, :])
    p = jnp.concatenate(cols, axis=-1)              # (N, Ho, Wo, k*k*C)
    return p.reshape(N * Ho * Wo, k * k * C), Ho, Wo


def _prep_conv_operands(x, w, scale, bias, stride, pad):
    N = x.shape[0]
    cout, cin, k, _ = w.shape
    patches, Ho, Wo = _patches_nhwc(x, k, stride, pad)
    M, K = patches.shape
    P = _round_up(cout, LANE)                       # lane-dense output width
    TILE_M, M_pad = _tile_rows(M)

    # fold BN scale into the weights; pad Cout to the lane width.
    wm = w.transpose(2, 3, 1, 0).reshape(K, cout) * scale[None, :]
    wm = jnp.pad(wm, ((0, 0), (0, P - cout))).astype(jnp.bfloat16)
    b = jnp.pad(bias.reshape(1, cout), ((0, 0), (0, P - cout)))
    if M_pad != M:
        patches = jnp.pad(patches, ((0, M_pad - M), (0, 0)))
    patches = patches.astype(jnp.bfloat16)          # bf16 MXU operands
    return patches, wm, b, (N, Ho, Wo, cout, M, K, P, TILE_M, M_pad)


def conv_layer(x, w, scale, bias, *, stride, pad, leaky):
    patches, wm, b, meta = _prep_conv_operands(x, w, scale, bias, stride, pad)
    N, Ho, Wo, cout, M, K, P, TILE_M, M_pad = meta
    out = pl.pallas_call(
        functools.partial(_conv_kernel, leaky=leaky),
        out_shape=jax.ShapeDtypeStruct((M_pad, P), jnp.float32),
        grid=(M_pad // TILE_M,),
        in_specs=[pl.BlockSpec((TILE_M, K), lambda i: (i, 0)),
                  pl.BlockSpec((K, P), lambda i: (0, 0)),
                  pl.BlockSpec((1, P), lambda i: (0, 0))],
        out_specs=pl.BlockSpec((TILE_M, P), lambda i: (i, 0)),
        compiler_params=pltpu.CompilerParams(
            dimension_semantics=("parallel",),
            vmem_limit_bytes=VMEM_LIMIT_BYTES),
    )(patches, wm, b)
    return out[:M, :cout].reshape(N, Ho, Wo, cout)


def conv_yolo_layer(x, w, scale, bias, *, stride, pad, leaky,
                    anchors, nc, img_size):
    """1x1 (or general) detection conv with the YOLO decode fused into the
    epilogue.  Returns (conv_output_nhwc, (io, p))."""
    patches, wm, b, meta = _prep_conv_operands(x, w, scale, bias, stride, pad)
    N, Ho, Wo, cout, M, K, P, TILE_M, M_pad = meta
    no = nc + 5
    na = anchors.shape[0]
    assert cout == na * no
    det_stride = float(max(img_size)) / float(max(Ho, Wo))

    # static per-column tables: column c = a*no + o
    anchors = np.asarray(anchors, np.float32)
    sel = np.zeros((4, P), np.float32)
    for c in range(cout):
        a, o = divmod(c, no)
        if o < 2:
            sel[0, c] = 1.0
            if o == 0:
                sel[2, c] = 1.0
        elif o < 4:
            sel[1, c] = 1.0
            sel[3, c] = anchors[a, o - 2] / det_stride    # anchor_wh (=anchors/stride)
    sel = jnp.asarray(sel)

    # static per-row grid (x, y); rows are ordered (b, y, x)
    xs = np.tile(np.arange(Wo, dtype=np.float32), Ho)
    ys = np.repeat(np.arange(Ho, dtype=np.float32), Wo)
    g = np.tile(np.stack([xs, ys], axis=1), (N, 1))
    g = np.pad(g, ((0, M_pad - M), (0, 0)))
    g = jnp.asarray(g)

    raw, io = pl.pallas_call(
        functools.partial(_conv_yolo_kernel, det_stride=det_stride, leaky=leaky),
        out_shape=(jax.ShapeDtypeStruct((M_pad, P), jnp.float32),
                   jax.ShapeDtypeStruct((M_pad, P), jnp.float32)),
        grid=(M_pad // TILE_M,),
        in_specs=[pl.BlockSpec((TILE_M, K), lambda i: (i, 0)),
                  pl.BlockSpec((K, P), lambda i: (0, 0)),
                  pl.BlockSpec((1, P), lambda i: (0, 0)),
                  pl.BlockSpec((4, P), lambda i: (0, 0)),
                  pl.BlockSpec((TILE_M, 2), lambda i: (i, 0))],
        out_specs=(pl.BlockSpec((TILE_M, P), lambda i: (i, 0)),
                   pl.BlockSpec((TILE_M, P), lambda i: (i, 0))),
        compiler_params=pltpu.CompilerParams(
            dimension_semantics=("parallel",),
            vmem_limit_bytes=VMEM_LIMIT_BYTES),
    )(patches, wm, b, sel, g)

    raw = raw[:M, :cout]
    io = io[:M, :cout]
    x_out = raw.reshape(N, Ho, Wo, cout)
    # p.view(bs, na, no, ny, nx).permute(0,1,3,4,2) in NCHW == this in NHWC:
    p_out = raw.reshape(N, Ho, Wo, na, no).transpose(0, 3, 1, 2, 4)
    io_out = io.reshape(N, Ho, Wo, na, no).transpose(0, 3, 1, 2, 4)
    io_out = io_out.reshape(N, na * Ho * Wo, no)
    # TODO(synk): nc == 1 special case (io[..., 5] = 1) not needed for nc=2.
    return x_out, (io_out, p_out)


def maxpool2x2(x):
    """MaxPool2d(kernel_size=2, stride=2, padding=0) on NHWC input."""
    N, H, W, C = x.shape
    Ho, Wo = H // 2, W // 2
    half = Wo * C
    # Even/odd W columns split in the wrapper; the vertical 2-row reduction and
    # the final max happen in one lane-dense (N*Ho, 2*Wo*C) kernel.
    # TODO(synk): fully fuse into the neighbouring conv to remove this slice.
    xl = x[:, :, 0::2, :].reshape(N * Ho, 2 * half)
    xr = x[:, :, 1::2, :].reshape(N * Ho, 2 * half)
    out = pl.pallas_call(
        functools.partial(_maxpool_kernel, half=half),
        out_shape=jax.ShapeDtypeStruct((N * Ho, half), jnp.float32),
        in_specs=[VMEM_SPEC, VMEM_SPEC],
        out_specs=VMEM_SPEC,
    )(xl, xr)
    return out.reshape(N, Ho, Wo, C)


def shortcut_add(x, y):
    N, H, W, C = x.shape
    xf = x.reshape(N * H, W * C)                    # lane-dense free view
    yf = y.reshape(N * H, W * C)
    out = pl.pallas_call(
        _add_kernel,
        out_shape=jax.ShapeDtypeStruct(xf.shape, jnp.float32),
        in_specs=[VMEM_SPEC, VMEM_SPEC],
        out_specs=VMEM_SPEC,
    )(xf, yf)
    return out.reshape(N, H, W, C)


def upsample2x(x):
    # nn.Upsample(scale_factor=2, mode='nearest') on NHWC.
    # TODO(synk): fuse into the consumer conv's BlockSpec index_map so the
    # 4x-larger tensor is never materialized in HBM.
    N, H, W, C = x.shape
    y = jnp.broadcast_to(x[:, :, None, :, None, :], (N, H, 2, W, 2, C))
    return y.reshape(N, 2 * H, 2 * W, C)


# ----------------------------- model definition -----------------------------

ANCHORS = np.array([[2., 3.], [4., 5.], [6., 8.],
                    [8., 10.], [12., 14.], [16., 18.]], np.float32)
NC = 2
NA = 3
NO = NC + 5  # 7

MODULE_DEFS = [
    {'type': 'net', 'channels': 4},
    {'type': 'convolutional', 'batch_normalize': 1, 'filters': 8,  'size': 3, 'stride': 1, 'pad': 1, 'activation': 'leaky'},
    {'type': 'maxpool', 'size': 2, 'stride': 2},
    {'type': 'convolutional', 'batch_normalize': 1, 'filters': 16, 'size': 3, 'stride': 1, 'pad': 1, 'activation': 'leaky'},
    {'type': 'convolutional', 'batch_normalize': 1, 'filters': 16, 'size': 1, 'stride': 1, 'pad': 1, 'activation': 'leaky'},
    {'type': 'shortcut', 'from': '-2'},
    {'type': 'convolutional', 'batch_normalize': 1, 'filters': 32, 'size': 3, 'stride': 2, 'pad': 1, 'activation': 'leaky'},
    {'type': 'convolutional', 'batch_normalize': 0, 'filters': NA * NO, 'size': 1, 'stride': 1, 'pad': 1, 'activation': 'linear'},
    {'type': 'yolo', 'mask': '0,1,2', 'classes': NC},
    {'type': 'route', 'layers': '-3'},
    {'type': 'convolutional', 'batch_normalize': 1, 'filters': 8,  'size': 1, 'stride': 1, 'pad': 1, 'activation': 'leaky'},
    {'type': 'upsample', 'stride': 2},
    {'type': 'route', 'layers': '-1,-7'},
    {'type': 'convolutional', 'batch_normalize': 0, 'filters': NA * NO, 'size': 1, 'stride': 1, 'pad': 1, 'activation': 'linear'},
    {'type': 'yolo', 'mask': '3,4,5', 'classes': NC},
]


def init_params(module_defs, key):
    """Deterministic synthetic parameters (conv weights + folded BN)."""
    params = []
    out_filters = [int(module_defs[0]['channels'])]
    for mdef in module_defs[1:]:
        t = mdef['type']
        p = None
        if t == 'convolutional':
            bn = int(mdef['batch_normalize'])
            cout = int(mdef['filters'])
            k = int(mdef['size'])
            cin = out_filters[-1]
            key, kw, k1, k2, k3, k4 = jax.random.split(key, 6)
            w = 0.1 * jax.random.normal(kw, (cout, cin, k, k), jnp.float32)
            if bn:
                gamma = 1.0 + 0.1 * jax.random.normal(k1, (cout,), jnp.float32)
                beta = 0.1 * jax.random.normal(k2, (cout,), jnp.float32)
                rmean = 0.1 * jax.random.normal(k3, (cout,), jnp.float32)
                rvar = 0.5 + jax.random.uniform(k4, (cout,), jnp.float32)
                scale = gamma / jnp.sqrt(rvar + 1e-5)
                bias = beta - rmean * scale
            else:
                scale = jnp.ones((cout,), jnp.float32)
                bias = 0.1 * jax.random.normal(k1, (cout,), jnp.float32)
            p = {'w': w, 'scale': scale, 'bias': bias}
            filters = cout
        elif t == 'route':
            layers = [int(l) for l in mdef['layers'].split(',')]
            filters = sum(out_filters[l + 1 if l > 0 else l] for l in layers)
        elif t == 'shortcut':
            filters = out_filters[int(mdef['from'])]
        else:
            filters = out_filters[-1]
        params.append(p)
        out_filters.append(filters)
    return params


def darknet_forward(x, module_defs, params):
    """Mirrors Darknet.forward in inference mode: returns (cat(io, 1), p)."""
    img_size = x.shape[-2:]
    x = jnp.transpose(x, (0, 2, 3, 1))              # NCHW -> NHWC, once
    mdefs = module_defs[1:]
    layer_outputs = []
    outputs = []
    fused_yolo = {}                                  # yolo index -> (io, p)
    for i, mdef in enumerate(mdefs):
        t = mdef['type']
        if t == 'convolutional':
            prm = params[i]
            k = int(mdef['size'])
            pad = (k - 1) // 2 if int(mdef['pad']) else 0
            leaky = mdef['activation'] == 'leaky'
            nxt = mdefs[i + 1] if i + 1 < len(mdefs) else None
            if nxt is not None and nxt['type'] == 'yolo':
                # fuse the YOLO decode into this conv's epilogue
                mask = [int(m) for m in nxt['mask'].split(',')]
                x, fused_yolo[i + 1] = conv_yolo_layer(
                    x, prm['w'], prm['scale'], prm['bias'],
                    stride=int(mdef['stride']), pad=pad, leaky=leaky,
                    anchors=np.asarray(ANCHORS[mask], np.float32),
                    nc=int(nxt['classes']), img_size=img_size)
            else:
                x = conv_layer(x, prm['w'], prm['scale'], prm['bias'],
                               stride=int(mdef['stride']), pad=pad, leaky=leaky)
        elif t == 'maxpool':
            x = maxpool2x2(x)   # config only uses kernel=2, stride=2
        elif t == 'upsample':
            x = upsample2x(x)
        elif t == 'route':
            layers = [int(l) for l in mdef['layers'].split(',')]
            if len(layers) == 1:
                x = layer_outputs[layers[0]]
            else:
                # TODO(synk): PyTorch except-branch (0.5x interpolate on shape
                # mismatch) not replicated; shapes always match here.
                x = jnp.concatenate([layer_outputs[l] for l in layers], axis=-1)
        elif t == 'shortcut':
            x = shortcut_add(x, layer_outputs[int(mdef['from'])])
        elif t == 'yolo':
            # decode was fused into the preceding (linear 1x1) conv
            io, pview = fused_yolo[i]
            outputs.append((io, pview))
            x = (io, pview)
        layer_outputs.append(x)
    io_list, p_list = zip(*outputs)
    return jnp.concatenate(io_list, axis=1), p_list


if __name__ == "__main__":
    key = jax.random.PRNGKey(0)
    key, kx = jax.random.split(key)
    x = jax.random.normal(kx, (2, 4, 16, 16), jnp.float32)
    params = init_params(MODULE_DEFS, key)

    fwd = jax.jit(lambda xx, pp: darknet_forward(xx, MODULE_DEFS, pp))
    io, p = fwd(x, params)
    io = jax.block_until_ready(io)
    p = jax.block_until_ready(p)

    assert io.shape == (2, 240, 7), io.shape
    assert p[0].shape == (2, 3, 4, 4, 7), p[0].shape
    assert p[1].shape == (2, 3, 8, 8, 7), p[1].shape
    assert bool(jnp.all(jnp.isfinite(io)))
    assert all(bool(jnp.all(jnp.isfinite(t))) for t in p)
    print("KERNEL_OK")
</pallas_src>

<mosaic_0001>
module attributes {stable_mosaic.version = 11 : i64} {
  func.func @_conv_kernel(%arg0: i32, %arg1: memref<512x36xbf16, #tpu.memory_space<vmem>>, %arg2: memref<36x128xbf16, #tpu.memory_space<vmem>>, %arg3: memref<1x128xf32, #tpu.memory_space<vmem>>, %arg4: memref<512x128xf32, #tpu.memory_space<vmem>>) attributes {dimension_semantics = [#tpu.dimension_semantics<parallel>], iteration_bounds = array<i64: 1>, scalar_prefetch = 0 : i64, scratch_operands = 0 : i64, tpu.core_type = #tpu.core_type<tc>, window_params = [{transform_indices = @transform_0, window_bounds = array<i64: 512, 36>}, {pipeline_mode = #tpu.pipeline_mode<synchronous>, transform_indices = @transform_1, window_bounds = array<i64: 36, 128>}, {pipeline_mode = #tpu.pipeline_mode<synchronous>, transform_indices = @transform_2, window_bounds = array<i64: 1, 128>}, {transform_indices = @transform_3, window_bounds = array<i64: 512, 128>}]} {
    %c0 = arith.constant 0 : index
    %c0_0 = arith.constant 0 : index
    %0 = vector.load %arg1[%c0, %c0_0] : memref<512x36xbf16, #tpu.memory_space<vmem>>, vector<512x36xbf16>
    %c0_1 = arith.constant 0 : index
    %c0_2 = arith.constant 0 : index
    %1 = vector.load %arg2[%c0_1, %c0_2] : memref<36x128xbf16, #tpu.memory_space<vmem>>, vector<36x128xbf16>
    %cst = arith.constant dense<0.000000e+00> : vector<512x128xf32>
    %2 = tpu.matmul %0, %1, %cst {dimension_numbers = #tpu.dot_dimension_numbers<[1], [0], [0], [1], [0, 0, 1, 1], [], []>} : vector<512x36xbf16>, vector<36x128xbf16>, vector<512x128xf32> -> vector<512x128xf32>
    %c0_3 = arith.constant 0 : index
    %c0_4 = arith.constant 0 : index
    %3 = vector.load %arg3[%c0_3, %c0_4] : memref<1x128xf32, #tpu.memory_space<vmem>>, vector<1x128xf32>
    %4 = vector.broadcast %3 : vector<1x128xf32> to vector<512x128xf32>
    %5 = arith.addf %2, %4 : vector<512x128xf32>
    %cst_5 = arith.constant 0.000000e+00 : f32
    %6 = vector.broadcast %cst_5 : f32 to vector<512x128xf32>
    %7 = arith.cmpf ogt, %5, %6 : vector<512x128xf32>
    %cst_6 = arith.constant 1.000000e-01 : f32
    %8 = vector.broadcast %cst_6 : f32 to vector<512x128xf32>
    %9 = arith.mulf %8, %5 : vector<512x128xf32>
    %10 = arith.select %7, %5, %9 : vector<512x128xi1>, vector<512x128xf32>
    %c0_7 = arith.constant 0 : index
    %c0_8 = arith.constant 0 : index
    %11 = vector.load %arg4[%c0_7, %c0_8] : memref<512x128xf32, #tpu.memory_space<vmem>>, vector<512x128xf32>
    tpu.vector_store %arg4[%c0_7, %c0_8], %10 {strides = array<i32>} : memref<512x128xf32, #tpu.memory_space<vmem>>, vector<512x128xf32>,
    return
  }
  func.func @transform_0(%arg0: i32) -> (i32, i32) {
    %c0_i32 = arith.constant 0 : i32
    %c0_i32_0 = arith.constant 0 : i32
    return %arg0, %c0_i32 : i32, i32
  }
  func.func @transform_1(%arg0: i32) -> (i32, i32) {
    %c0_i32 = arith.constant 0 : i32
    %c0_i32_0 = arith.constant 0 : i32
    %c0_i32_1 = arith.constant 0 : i32
    return %c0_i32, %c0_i32_0 : i32, i32
  }
  func.func @transform_2(%arg0: i32) -> (i32, i32) {
    %c0_i32 = arith.constant 0 : i32
    %c0_i32_0 = arith.constant 0 : i32
    %c0_i32_1 = arith.constant 0 : i32
    return %c0_i32, %c0_i32_0 : i32, i32
  }
  func.func @transform_3(%arg0: i32) -> (i32, i32) {
    %c0_i32 = arith.constant 0 : i32
    %c0_i32_0 = arith.constant 0 : i32
    return %arg0, %c0_i32 : i32, i32
  }
}

module attributes {stable_mosaic.version = 11 : i64} {
  func.func @_maxpool_kernel(%arg0: memref<16x128xf32, #tpu.memory_space<vmem>>, %arg1: memref<16x128xf32, #tpu.memory_space<vmem>>, %arg2: memref<16x64xf32, #tpu.memory_space<vmem>>) attributes {dimension_semantics = [], scalar_prefetch = 0 : i64, scratch_operands = 0 : i64, tpu.core_type = #tpu.core_type<tc>} {
    %c0 = arith.constant 0 : index
    %c0_0 = arith.constant 0 : index
    %0 = vector.load %arg0[%c0, %c0_0] : memref<16x128xf32, #tpu.memory_space<vmem>>, vector<16x64xf32>
    %c0_1 = arith.constant 0 : index
    %c64 = arith.constant 64 : index
    %1 = vector.load %arg0[%c0_1, %c64] : memref<16x128xf32, #tpu.memory_space<vmem>>, vector<16x64xf32>
    %c0_2 = arith.constant 0 : index
    %c0_3 = arith.constant 0 : index
    %2 = vector.load %arg1[%c0_2, %c0_3] : memref<16x128xf32, #tpu.memory_space<vmem>>, vector<16x64xf32>
    %c0_4 = arith.constant 0 : index
    %c64_5 = arith.constant 64 : index
    %3 = vector.load %arg1[%c0_4, %c64_5] : memref<16x128xf32, #tpu.memory_space<vmem>>, vector<16x64xf32>
    %4 = arith.maximumf %0, %1 : vector<16x64xf32>
    %5 = arith.maximumf %2, %3 : vector<16x64xf32>
    %6 = arith.maximumf %4, %5 : vector<16x64xf32>
    %c0_6 = arith.constant 0 : index
    %c0_7 = arith.constant 0 : index
    %7 = vector.load %arg2[%c0_6, %c0_7] : memref<16x64xf32, #tpu.memory_space<vmem>>, vector<16x64xf32>
    tpu.vector_store %arg2[%c0_6, %c0_7], %6 {strides = array<i32>} : memref<16x64xf32, #tpu.memory_space<vmem>>, vector<16x64xf32>,
    return
  }
}

module attributes {stable_mosaic.version = 11 : i64} {
  func.func @_conv_kernel(%arg0: i32, %arg1: memref<128x16xbf16, #tpu.memory_space<vmem>>, %arg2: memref<16x128xbf16, #tpu.memory_space<vmem>>, %arg3: memref<1x128xf32, #tpu.memory_space<vmem>>, %arg4: memref<128x128xf32, #tpu.memory_space<vmem>>) attributes {dimension_semantics = [#tpu.dimension_semantics<parallel>], iteration_bounds = array<i64: 1>, scalar_prefetch = 0 : i64, scratch_operands = 0 : i64, tpu.core_type = #tpu.core_type<tc>, window_params = [{transform_indices = @transform_0, window_bounds = array<i64: 128, 16>}, {pipeline_mode = #tpu.pipeline_mode<synchronous>, transform_indices = @transform_1, window_bounds = array<i64: 16, 128>}, {pipeline_mode = #tpu.pipeline_mode<synchronous>, transform_indices = @transform_2, window_bounds = array<i64: 1, 128>}, {transform_indices = @transform_3, window_bounds = array<i64: 128, 128>}]} {
    %c0 = arith.constant 0 : index
    %c0_0 = arith.constant 0 : index
    %0 = vector.load %arg1[%c0, %c0_0] : memref<128x16xbf16, #tpu.memory_space<vmem>>, vector<128x16xbf16>
    %c0_1 = arith.constant 0 : index
    %c0_2 = arith.constant 0 : index
    %1 = vector.load %arg2[%c0_1, %c0_2] : memref<16x128xbf16, #tpu.memory_space<vmem>>, vector<16x128xbf16>
    %cst = arith.constant dense<0.000000e+00> : vector<128x128xf32>
    %2 = tpu.matmul %0, %1, %cst {dimension_numbers = #tpu.dot_dimension_numbers<[1], [0], [0], [1], [0, 0, 1, 1], [], []>} : vector<128x16xbf16>, vector<16x128xbf16>, vector<128x128xf32> -> vector<128x128xf32>
    %c0_3 = arith.constant 0 : index
    %c0_4 = arith.constant 0 : index
    %3 = vector.load %arg3[%c0_3, %c0_4] : memref<1x128xf32, #tpu.memory_space<vmem>>, vector<1x128xf32>
    %4 = vector.broadcast %3 : vector<1x128xf32> to vector<128x128xf32>
    %5 = arith.addf %2, %4 : vector<128x128xf32>
    %cst_5 = arith.constant 0.000000e+00 : f32
    %6 = vector.broadcast %cst_5 : f32 to vector<128x128xf32>
    %7 = arith.cmpf ogt, %5, %6 : vector<128x128xf32>
    %cst_6 = arith.constant 1.000000e-01 : f32
    %8 = vector.broadcast %cst_6 : f32 to vector<128x128xf32>
    %9 = arith.mulf %8, %5 : vector<128x128xf32>
    %10 = arith.select %7, %5, %9 : vector<128x128xi1>, vector<128x128xf32>
    %c0_7 = arith.constant 0 : index
    %c0_8 = arith.constant 0 : index
    %11 = vector.load %arg4[%c0_7, %c0_8] : memref<128x128xf32, #tpu.memory_space<vmem>>, vector<128x128xf32>
    tpu.vector_store %arg4[%c0_7, %c0_8], %10 {strides = array<i32>} : memref<128x128xf32, #tpu.memory_space<vmem>>, vector<128x128xf32>,
    return
  }
  func.func @transform_0(%arg0: i32) -> (i32, i32) {
    %c0_i32 = arith.constant 0 : i32
    %c0_i32_0 = arith.constant 0 : i32
    return %arg0, %c0_i32 : i32, i32
  }
  func.func @transform_1(%arg0: i32) -> (i32, i32) {
    %c0_i32 = arith.constant 0 : i32
    %c0_i32_0 = arith.constant 0 : i32
    %c0_i32_1 = arith.constant 0 : i32
    return %c0_i32, %c0_i32_0 : i32, i32
  }
  func.func @transform_2(%arg0: i32) -> (i32, i32) {
    %c0_i32 = arith.constant 0 : i32
    %c0_i32_0 = arith.constant 0 : i32
    %c0_i32_1 = arith.constant 0 : i32
    return %c0_i32, %c0_i32_0 : i32, i32
  }
  func.func @transform_3(%arg0: i32) -> (i32, i32) {
    %c0_i32 = arith.constant 0 : i32
    %c0_i32_0 = arith.constant 0 : i32
    return %arg0, %c0_i32 : i32, i32
  }
}

module attributes {stable_mosaic.version = 11 : i64} {
  func.func @_conv_kernel(%arg0: i32, %arg1: memref<128x72xbf16, #tpu.memory_space<vmem>>, %arg2: memref<72x128xbf16, #tpu.memory_space<vmem>>, %arg3: memref<1x128xf32, #tpu.memory_space<vmem>>, %arg4: memref<128x128xf32, #tpu.memory_space<vmem>>) attributes {dimension_semantics = [#tpu.dimension_semantics<parallel>], iteration_bounds = array<i64: 1>, scalar_prefetch = 0 : i64, scratch_operands = 0 : i64, tpu.core_type = #tpu.core_type<tc>, window_params = [{transform_indices = @transform_0, window_bounds = array<i64: 128, 72>}, {pipeline_mode = #tpu.pipeline_mode<synchronous>, transform_indices = @transform_1, window_bounds = array<i64: 72, 128>}, {pipeline_mode = #tpu.pipeline_mode<synchronous>, transform_indices = @transform_2, window_bounds = array<i64: 1, 128>}, {transform_indices = @transform_3, window_bounds = array<i64: 128, 128>}]} {
    %c0 = arith.constant 0 : index
    %c0_0 = arith.constant 0 : index
    %0 = vector.load %arg1[%c0, %c0_0] : memref<128x72xbf16, #tpu.memory_space<vmem>>, vector<128x72xbf16>
    %c0_1 = arith.constant 0 : index
    %c0_2 = arith.constant 0 : index
    %1 = vector.load %arg2[%c0_1, %c0_2] : memref<72x128xbf16, #tpu.memory_space<vmem>>, vector<72x128xbf16>
    %cst = arith.constant dense<0.000000e+00> : vector<128x128xf32>
    %2 = tpu.matmul %0, %1, %cst {dimension_numbers = #tpu.dot_dimension_numbers<[1], [0], [0], [1], [0, 0, 1, 1], [], []>} : vector<128x72xbf16>, vector<72x128xbf16>, vector<128x128xf32> -> vector<128x128xf32>
    %c0_3 = arith.constant 0 : index
    %c0_4 = arith.constant 0 : index
    %3 = vector.load %arg3[%c0_3, %c0_4] : memref<1x128xf32, #tpu.memory_space<vmem>>, vector<1x128xf32>
    %4 = vector.broadcast %3 : vector<1x128xf32> to vector<128x128xf32>
    %5 = arith.addf %2, %4 : vector<128x128xf32>
    %cst_5 = arith.constant 0.000000e+00 : f32
    %6 = vector.broadcast %cst_5 : f32 to vector<128x128xf32>
    %7 = arith.cmpf ogt, %5, %6 : vector<128x128xf32>
    %cst_6 = arith.constant 1.000000e-01 : f32
    %8 = vector.broadcast %cst_6 : f32 to vector<128x128xf32>
    %9 = arith.mulf %8, %5 : vector<128x128xf32>
    %10 = arith.select %7, %5, %9 : vector<128x128xi1>, vector<128x128xf32>
    %c0_7 = arith.constant 0 : index
    %c0_8 = arith.constant 0 : index
    %11 = vector.load %arg4[%c0_7, %c0_8] : memref<128x128xf32, #tpu.memory_space<vmem>>, vector<128x128xf32>
    tpu.vector_store %arg4[%c0_7, %c0_8], %10 {strides = array<i32>} : memref<128x128xf32, #tpu.memory_space<vmem>>, vector<128x128xf32>,
    return
  }
  func.func @transform_0(%arg0: i32) -> (i32, i32) {
    %c0_i32 = arith.constant 0 : i32
    %c0_i32_0 = arith.constant 0 : i32
    return %arg0, %c0_i32 : i32, i32
  }
  func.func @transform_1(%arg0: i32) -> (i32, i32) {
    %c0_i32 = arith.constant 0 : i32
    %c0_i32_0 = arith.constant 0 : i32
    %c0_i32_1 = arith.constant 0 : i32
    return %c0_i32, %c0_i32_0 : i32, i32
  }
  func.func @transform_2(%arg0: i32) -> (i32, i32) {
    %c0_i32 = arith.constant 0 : i32
    %c0_i32_0 = arith.constant 0 : i32
    %c0_i32_1 = arith.constant 0 : i32
    return %c0_i32, %c0_i32_0 : i32, i32
  }
  func.func @transform_3(%arg0: i32) -> (i32, i32) {
    %c0_i32 = arith.constant 0 : i32
    %c0_i32_0 = arith.constant 0 : i32
    return %arg0, %c0_i32 : i32, i32
  }
}

module attributes {stable_mosaic.version = 11 : i64} {
  func.func @_add_kernel(%arg0: memref<16x128xf32, #tpu.memory_space<vmem>>, %arg1: memref<16x128xf32, #tpu.memory_space<vmem>>, %arg2: memref<16x128xf32, #tpu.memory_space<vmem>>) attributes {dimension_semantics = [], scalar_prefetch = 0 : i64, scratch_operands = 0 : i64, tpu.core_type = #tpu.core_type<tc>} {
    %c0 = arith.constant 0 : index
    %c0_0 = arith.constant 0 : index
    %0 = vector.load %arg0[%c0, %c0_0] : memref<16x128xf32, #tpu.memory_space<vmem>>, vector<16x128xf32>
    %c0_1 = arith.constant 0 : index
    %c0_2 = arith.constant 0 : index
    %1 = vector.load %arg1[%c0_1, %c0_2] : memref<16x128xf32, #tpu.memory_space<vmem>>, vector<16x128xf32>
    %2 = arith.addf %0, %1 : vector<16x128xf32>
    %c0_3 = arith.constant 0 : index
    %c0_4 = arith.constant 0 : index
    %3 = vector.load %arg2[%c0_3, %c0_4] : memref<16x128xf32, #tpu.memory_space<vmem>>, vector<16x128xf32>
    tpu.vector_store %arg2[%c0_3, %c0_4], %2 {strides = array<i32>} : memref<16x128xf32, #tpu.memory_space<vmem>>, vector<16x128xf32>,
    return
  }
}

module attributes {stable_mosaic.version = 11 : i64} {
  func.func @_conv_kernel(%arg0: i32, %arg1: memref<32x144xbf16, #tpu.memory_space<vmem>>, %arg2: memref<144x128xbf16, #tpu.memory_space<vmem>>, %arg3: memref<1x128xf32, #tpu.memory_space<vmem>>, %arg4: memref<32x128xf32, #tpu.memory_space<vmem>>) attributes {dimension_semantics = [#tpu.dimension_semantics<parallel>], iteration_bounds = array<i64: 1>, scalar_prefetch = 0 : i64, scratch_operands = 0 : i64, tpu.core_type = #tpu.core_type<tc>, window_params = [{transform_indices = @transform_0, window_bounds = array<i64: 32, 144>}, {pipeline_mode = #tpu.pipeline_mode<synchronous>, transform_indices = @transform_1, window_bounds = array<i64: 144, 128>}, {pipeline_mode = #tpu.pipeline_mode<synchronous>, transform_indices = @transform_2, window_bounds = array<i64: 1, 128>}, {transform_indices = @transform_3, window_bounds = array<i64: 32, 128>}]} {
    %c0 = arith.constant 0 : index
    %c0_0 = arith.constant 0 : index
    %0 = vector.load %arg1[%c0, %c0_0] : memref<32x144xbf16, #tpu.memory_space<vmem>>, vector<32x144xbf16>
    %c0_1 = arith.constant 0 : index
    %c0_2 = arith.constant 0 : index
    %1 = vector.load %arg2[%c0_1, %c0_2] : memref<144x128xbf16, #tpu.memory_space<vmem>>, vector<144x128xbf16>
    %cst = arith.constant dense<0.000000e+00> : vector<32x128xf32>
    %2 = tpu.matmul %0, %1, %cst {dimension_numbers = #tpu.dot_dimension_numbers<[1], [0], [0], [1], [0, 0, 1, 1], [], []>} : vector<32x144xbf16>, vector<144x128xbf16>, vector<32x128xf32> -> vector<32x128xf32>
    %c0_3 = arith.constant 0 : index
    %c0_4 = arith.constant 0 : index
    %3 = vector.load %arg3[%c0_3, %c0_4] : memref<1x128xf32, #tpu.memory_space<vmem>>, vector<1x128xf32>
    %4 = vector.broadcast %3 : vector<1x128xf32> to vector<32x128xf32>
    %5 = arith.addf %2, %4 : vector<32x128xf32>
    %cst_5 = arith.constant 0.000000e+00 : f32
    %6 = vector.broadcast %cst_5 : f32 to vector<32x128xf32>
    %7 = arith.cmpf ogt, %5, %6 : vector<32x128xf32>
    %cst_6 = arith.constant 1.000000e-01 : f32
    %8 = vector.broadcast %cst_6 : f32 to vector<32x128xf32>
    %9 = arith.mulf %8, %5 : vector<32x128xf32>
    %10 = arith.select %7, %5, %9 : vector<32x128xi1>, vector<32x128xf32>
    %c0_7 = arith.constant 0 : index
    %c0_8 = arith.constant 0 : index
    %11 = vector.load %arg4[%c0_7, %c0_8] : memref<32x128xf32, #tpu.memory_space<vmem>>, vector<32x128xf32>
    tpu.vector_store %arg4[%c0_7, %c0_8], %10 {strides = array<i32>} : memref<32x128xf32, #tpu.memory_space<vmem>>, vector<32x128xf32>,
    return
  }
  func.func @transform_0(%arg0: i32) -> (i32, i32) {
    %c0_i32 = arith.constant 0 : i32
    %c0_i32_0 = arith.constant 0 : i32
    return %arg0, %c0_i32 : i32, i32
  }
  func.func @transform_1(%arg0: i32) -> (i32, i32) {
    %c0_i32 = arith.constant 0 : i32
    %c0_i32_0 = arith.constant 0 : i32
    %c0_i32_1 = arith.constant 0 : i32
    return %c0_i32, %c0_i32_0 : i32, i32
  }
  func.func @transform_2(%arg0: i32) -> (i32, i32) {
    %c0_i32 = arith.constant 0 : i32
    %c0_i32_0 = arith.constant 0 : i32
    %c0_i32_1 = arith.constant 0 : i32
    return %c0_i32, %c0_i32_0 : i32, i32
  }
  func.func @transform_3(%arg0: i32) -> (i32, i32) {
    %c0_i32 = arith.constant 0 : i32
    %c0_i32_0 = arith.constant 0 : i32
    return %arg0, %c0_i32 : i32, i32
  }
}

module attributes {stable_mosaic.version = 11 : i64} {
  func.func @_conv_kernel(%arg0: i32, %arg1: memref<32x32xbf16, #tpu.memory_space<vmem>>, %arg2: memref<32x128xbf16, #tpu.memory_space<vmem>>, %arg3: memref<1x128xf32, #tpu.memory_space<vmem>>, %arg4: memref<32x128xf32, #tpu.memory_space<vmem>>) attributes {dimension_semantics = [#tpu.dimension_semantics<parallel>], iteration_bounds = array<i64: 1>, scalar_prefetch = 0 : i64, scratch_operands = 0 : i64, tpu.core_type = #tpu.core_type<tc>, window_params = [{transform_indices = @transform_0, window_bounds = array<i64: 32, 32>}, {pipeline_mode = #tpu.pipeline_mode<synchronous>, transform_indices = @transform_1, window_bounds = array<i64: 32, 128>}, {pipeline_mode = #tpu.pipeline_mode<synchronous>, transform_indices = @transform_2, window_bounds = array<i64: 1, 128>}, {transform_indices = @transform_3, window_bounds = array<i64: 32, 128>}]} {
    %c0 = arith.constant 0 : index
    %c0_0 = arith.constant 0 : index
    %0 = vector.load %arg1[%c0, %c0_0] : memref<32x32xbf16, #tpu.memory_space<vmem>>, vector<32x32xbf16>
    %c0_1 = arith.constant 0 : index
    %c0_2 = arith.constant 0 : index
    %1 = vector.load %arg2[%c0_1, %c0_2] : memref<32x128xbf16, #tpu.memory_space<vmem>>, vector<32x128xbf16>
    %cst = arith.constant dense<0.000000e+00> : vector<32x128xf32>
    %2 = tpu.matmul %0, %1, %cst {dimension_numbers = #tpu.dot_dimension_numbers<[1], [0], [0], [1], [0, 0, 1, 1], [], []>} : vector<32x32xbf16>, vector<32x128xbf16>, vector<32x128xf32> -> vector<32x128xf32>
    %c0_3 = arith.constant 0 : index
    %c0_4 = arith.constant 0 : index
    %3 = vector.load %arg3[%c0_3, %c0_4] : memref<1x128xf32, #tpu.memory_space<vmem>>, vector<1x128xf32>
    %4 = vector.broadcast %3 : vector<1x128xf32> to vector<32x128xf32>
    %5 = arith.addf %2, %4 : vector<32x128xf32>
    %cst_5 = arith.constant 0.000000e+00 : f32
    %6 = vector.broadcast %cst_5 : f32 to vector<32x128xf32>
    %7 = arith.cmpf ogt, %5, %6 : vector<32x128xf32>
    %cst_6 = arith.constant 1.000000e-01 : f32
    %8 = vector.broadcast %cst_6 : f32 to vector<32x128xf32>
    %9 = arith.mulf %8, %5 : vector<32x128xf32>
    %10 = arith.select %7, %5, %9 : vector<32x128xi1>, vector<32x128xf32>
    %c0_7 = arith.constant 0 : index
    %c0_8 = arith.constant 0 : index
    %11 = vector.load %arg4[%c0_7, %c0_8] : memref<32x128xf32, #tpu.memory_space<vmem>>, vector<32x128xf32>
    tpu.vector_store %arg4[%c0_7, %c0_8], %10 {strides = array<i32>} : memref<32x128xf32, #tpu.memory_space<vmem>>, vector<32x128xf32>,
    return
  }
  func.func @transform_0(%arg0: i32) -> (i32, i32) {
    %c0_i32 = arith.constant 0 : i32
    %c0_i32_0 = arith.constant 0 : i32
    return %arg0, %c0_i32 : i32, i32
  }
  func.func @transform_1(%arg0: i32) -> (i32, i32) {
    %c0_i32 = arith.constant 0 : i32
    %c0_i32_0 = arith.constant 0 : i32
    %c0_i32_1 = arith.constant 0 : i32
    return %c0_i32, %c0_i32_0 : i32, i32
  }
  func.func @transform_2(%arg0: i32) -> (i32, i32) {
    %c0_i32 = arith.constant 0 : i32
    %c0_i32_0 = arith.constant 0 : i32
    %c0_i32_1 = arith.constant 0 : i32
    return %c0_i32, %c0_i32_0 : i32, i32
  }
  func.func @transform_3(%arg0: i32) -> (i32, i32) {
    %c0_i32 = arith.constant 0 : i32
    %c0_i32_0 = arith.constant 0 : i32
    return %arg0, %c0_i32 : i32, i32
  }
}

module attributes {stable_mosaic.version = 11 : i64} {
  func.func @_conv_yolo_kernel(%arg0: i32, %arg1: memref<128x24xbf16, #tpu.memory_space<vmem>>, %arg2: memref<24x128xbf16, #tpu.memory_space<vmem>>, %arg3: memref<1x128xf32, #tpu.memory_space<vmem>>, %arg4: memref<4x128xf32, #tpu.memory_space<vmem>>, %arg5: memref<128x2xf32, #tpu.memory_space<vmem>>, %arg6: memref<128x128xf32, #tpu.memory_space<vmem>>, %arg7: memref<128x128xf32, #tpu.memory_space<vmem>>) attributes {dimension_semantics = [#tpu.dimension_semantics<parallel>], iteration_bounds = array<i64: 1>, scalar_prefetch = 0 : i64, scratch_operands = 0 : i64, tpu.core_type = #tpu.core_type<tc>, window_params = [{transform_indices = @transform_0, window_bounds = array<i64: 128, 24>}, {pipeline_mode = #tpu.pipeline_mode<synchronous>, transform_indices = @transform_1, window_bounds = array<i64: 24, 128>}, {pipeline_mode = #tpu.pipeline_mode<synchronous>, transform_indices = @transform_2, window_bounds = array<i64: 1, 128>}, {pipeline_mode = #tpu.pipeline_mode<synchronous>, transform_indices = @transform_3, window_bounds = array<i64: 4, 128>}, {transform_indices = @transform_4, window_bounds = array<i64: 128, 2>}, {transform_indices = @transform_5, window_bounds = array<i64: 128, 128>}, {transform_indices = @transform_6, window_bounds = array<i64: 128, 128>}]} {
    %c0 = arith.constant 0 : index
    %c0_0 = arith.constant 0 : index
    %0 = vector.load %arg1[%c0, %c0_0] : memref<128x24xbf16, #tpu.memory_space<vmem>>, vector<128x24xbf16>
    %c0_1 = arith.constant 0 : index
    %c0_2 = arith.constant 0 : index
    %1 = vector.load %arg2[%c0_1, %c0_2] : memref<24x128xbf16, #tpu.memory_space<vmem>>, vector<24x128xbf16>
    %cst = arith.constant dense<0.000000e+00> : vector<128x128xf32>
    %2 = tpu.matmul %0, %1, %cst {dimension_numbers = #tpu.dot_dimension_numbers<[1], [0], [0], [1], [0, 0, 1, 1], [], []>} : vector<128x24xbf16>, vector<24x128xbf16>, vector<128x128xf32> -> vector<128x128xf32>
    %c0_3 = arith.constant 0 : index
    %c0_4 = arith.constant 0 : index
    %3 = vector.load %arg3[%c0_3, %c0_4] : memref<1x128xf32, #tpu.memory_space<vmem>>, vector<1x128xf32>
    %4 = vector.broadcast %3 : vector<1x128xf32> to vector<128x128xf32>
    %5 = arith.addf %2, %4 : vector<128x128xf32>
    %c0_5 = arith.constant 0 : index
    %c0_6 = arith.constant 0 : index
    %6 = vector.load %arg6[%c0_5, %c0_6] : memref<128x128xf32, #tpu.memory_space<vmem>>, vector<128x128xf32>
    tpu.vector_store %arg6[%c0_5, %c0_6], %5 {strides = array<i32>} : memref<128x128xf32, #tpu.memory_space<vmem>>, vector<128x128xf32>,
    %c0_7 = arith.constant 0 : index
    %c0_8 = arith.constant 0 : index
    %7 = vector.load %arg4[%c0_7, %c0_8] : memref<4x128xf32, #tpu.memory_space<vmem>>, vector<1x128xf32>
    %c1 = arith.constant 1 : index
    %c0_9 = arith.constant 0 : index
    %8 = vector.load %arg4[%c1, %c0_9] : memref<4x128xf32, #tpu.memory_space<vmem>>, vector<1x128xf32>
    %c2 = arith.constant 2 : index
    %c0_10 = arith.constant 0 : index
    %9 = vector.load %arg4[%c2, %c0_10] : memref<4x128xf32, #tpu.memory_space<vmem>>, vector<1x128xf32>
    %c3 = arith.constant 3 : index
    %c0_11 = arith.constant 0 : index
    %10 = vector.load %arg4[%c3, %c0_11] : memref<4x128xf32, #tpu.memory_space<vmem>>, vector<1x128xf32>
    %11 = arith.negf %5 : vector<128x128xf32>
    %12 = math.exp %11 : vector<128x128xf32>
    %cst_12 = arith.constant 1.000000e+00 : f32
    %13 = vector.broadcast %cst_12 : f32 to vector<128x128xf32>
    %14 = arith.addf %13, %12 : vector<128x128xf32>
    %15 = arith.divf %13, %14 : vector<128x128xf32>
    %c0_13 = arith.constant 0 : index
    %c0_14 = arith.constant 0 : index
    %16 = vector.load %arg5[%c0_13, %c0_14] : memref<128x2xf32, #tpu.memory_space<vmem>>, vector<128x1xf32>
    %17 = vector.broadcast %16 : vector<128x1xf32> to vector<128x128xf32>
    %18 = vector.broadcast %9 : vector<1x128xf32> to vector<128x128xf32>
    %19 = arith.mulf %17, %18 : vector<128x128xf32>
    %c0_15 = arith.constant 0 : index
    %c1_16 = arith.constant 1 : index
    %20 = vector.load %arg5[%c0_15, %c1_16] : memref<128x2xf32, #tpu.memory_space<vmem>>, vector<128x1xf32>
    %21 = arith.subf %7, %9 : vector<1x128xf32>
    %22 = vector.broadcast %20 : vector<128x1xf32> to vector<128x128xf32>
    %23 = vector.broadcast %21 : vector<1x128xf32> to vector<128x128xf32>
    %24 = arith.mulf %22, %23 : vector<128x128xf32>
    %25 = arith.addf %19, %24 : vector<128x128xf32>
    %26 = arith.addf %15, %25 : vector<128x128xf32>
    %cst_17 = arith.constant 2.000000e+00 : f32
    %27 = vector.broadcast %cst_17 : f32 to vector<128x128xf32>
    %28 = arith.mulf %26, %27 : vector<128x128xf32>
    %29 = vector.broadcast %8 : vector<1x128xf32> to vector<128x128xf32>
    %30 = arith.mulf %5, %29 : vector<128x128xf32>
    %31 = math.exp %30 : vector<128x128xf32>
    %32 = vector.broadcast %10 : vector<1x128xf32> to vector<128x128xf32>
    %33 = arith.mulf %31, %32 : vector<128x128xf32>
    %cst_18 = arith.constant 2.000000e+00 : f32
    %34 = vector.broadcast %cst_18 : f32 to vector<128x128xf32>
    %35 = arith.mulf %33, %34 : vector<128x128xf32>
    %36 = vector.broadcast %7 : vector<1x128xf32> to vector<128x128xf32>
    %37 = arith.mulf %36, %28 : vector<128x128xf32>
    %38 = vector.broadcast %8 : vector<1x128xf32> to vector<128x128xf32>
    %39 = arith.mulf %38, %35 : vector<128x128xf32>
    %40 = arith.addf %37, %39 : vector<128x128xf32>
    %cst_19 = arith.constant 1.000000e+00 : f32
    %41 = vector.broadcast %cst_19 : f32 to vector<1x128xf32>
    %42 = arith.subf %41, %7 : vector<1x128xf32>
    %43 = arith.subf %42, %8 : vector<1x128xf32>
    %44 = vector.broadcast %43 : vector<1x128xf32> to vector<128x128xf32>
    %45 = arith.mulf %44, %15 : vector<128x128xf32>
    %46 = arith.addf %40, %45 : vector<128x128xf32>
    %c0_20 = arith.constant 0 : index
    %c0_21 = arith.constant 0 : index
    %47 = vector.load %arg7[%c0_20, %c0_21] : memref<128x128xf32, #tpu.memory_space<vmem>>, vector<128x128xf32>
    tpu.vector_store %arg7[%c0_20, %c0_21], %46 {strides = array<i32>} : memref<128x128xf32, #tpu.memory_space<vmem>>, vector<128x128xf32>,
    return
  }
  func.func @transform_0(%arg0: i32) -> (i32, i32) {
    %c0_i32 = arith.constant 0 : i32
    %c0_i32_0 = arith.constant 0 : i32
    return %arg0, %c0_i32 : i32, i32
  }
  func.func @transform_1(%arg0: i32) -> (i32, i32) {
    %c0_i32 = arith.constant 0 : i32
    %c0_i32_0 = arith.constant 0 : i32
    %c0_i32_1 = arith.constant 0 : i32
    return %c0_i32, %c0_i32_0 : i32, i32
  }
  func.func @transform_2(%arg0: i32) -> (i32, i32) {
    %c0_i32 = arith.constant 0 : i32
    %c0_i32_0 = arith.constant 0 : i32
    %c0_i32_1 = arith.constant 0 : i32
    return %c0_i32, %c0_i32_0 : i32, i32
  }
  func.func @transform_3(%arg0: i32) -> (i32, i32) {
    %c0_i32 = arith.constant 0 : i32
    %c0_i32_0 = arith.constant 0 : i32
    %c0_i32_1 = arith.constant 0 : i32
    return %c0_i32, %c0_i32_0 : i32, i32
  }
  func.func @transform_4(%arg0: i32) -> (i32, i32) {
    %c0_i32 = arith.constant 0 : i32
    %c0_i32_0 = arith.constant 0 : i32
    return %arg0, %c0_i32 : i32, i32
  }
  func.func @transform_5(%arg0: i32) -> (i32, i32) {
    %c0_i32 = arith.constant 0 : i32
    %c0_i32_0 = arith.constant 0 : i32
    return %arg0, %c0_i32 : i32, i32
  }
  func.func @transform_6(%arg0: i32) -> (i32, i32) {
    %c0_i32 = arith.constant 0 : i32
    %c0_i32_0 = arith.constant 0 : i32
    return %arg0, %c0_i32 : i32, i32
  }
}

module attributes {stable_mosaic.version = 11 : i64} {
  func.func @_conv_yolo_kernel(%arg0: i32, %arg1: memref<32x32xbf16, #tpu.memory_space<vmem>>, %arg2: memref<32x128xbf16, #tpu.memory_space<vmem>>, %arg3: memref<1x128xf32, #tpu.memory_space<vmem>>, %arg4: memref<4x128xf32, #tpu.memory_space<vmem>>, %arg5: memref<32x2xf32, #tpu.memory_space<vmem>>, %arg6: memref<32x128xf32, #tpu.memory_space<vmem>>, %arg7: memref<32x128xf32, #tpu.memory_space<vmem>>) attributes {dimension_semantics = [#tpu.dimension_semantics<parallel>], iteration_bounds = array<i64: 1>, scalar_prefetch = 0 : i64, scratch_operands = 0 : i64, tpu.core_type = #tpu.core_type<tc>, window_params = [{transform_indices = @transform_0, window_bounds = array<i64: 32, 32>}, {pipeline_mode = #tpu.pipeline_mode<synchronous>, transform_indices = @transform_1, window_bounds = array<i64: 32, 128>}, {pipeline_mode = #tpu.pipeline_mode<synchronous>, transform_indices = @transform_2, window_bounds = array<i64: 1, 128>}, {pipeline_mode = #tpu.pipeline_mode<synchronous>, transform_indices = @transform_3, window_bounds = array<i64: 4, 128>}, {transform_indices = @transform_4, window_bounds = array<i64: 32, 2>}, {transform_indices = @transform_5, window_bounds = array<i64: 32, 128>}, {transform_indices = @transform_6, window_bounds = array<i64: 32, 128>}]} {
    %c0 = arith.constant 0 : index
    %c0_0 = arith.constant 0 : index
    %0 = vector.load %arg1[%c0, %c0_0] : memref<32x32xbf16, #tpu.memory_space<vmem>>, vector<32x32xbf16>
    %c0_1 = arith.constant 0 : index
    %c0_2 = arith.constant 0 : index
    %1 = vector.load %arg2[%c0_1, %c0_2] : memref<32x128xbf16, #tpu.memory_space<vmem>>, vector<32x128xbf16>
    %cst = arith.constant dense<0.000000e+00> : vector<32x128xf32>
    %2 = tpu.matmul %0, %1, %cst {dimension_numbers = #tpu.dot_dimension_numbers<[1], [0], [0], [1], [0, 0, 1, 1], [], []>} : vector<32x32xbf16>, vector<32x128xbf16>, vector<32x128xf32> -> vector<32x128xf32>
    %c0_3 = arith.constant 0 : index
    %c0_4 = arith.constant 0 : index
    %3 = vector.load %arg3[%c0_3, %c0_4] : memref<1x128xf32, #tpu.memory_space<vmem>>, vector<1x128xf32>
    %4 = vector.broadcast %3 : vector<1x128xf32> to vector<32x128xf32>
    %5 = arith.addf %2, %4 : vector<32x128xf32>
    %c0_5 = arith.constant 0 : index
    %c0_6 = arith.constant 0 : index
    %6 = vector.load %arg6[%c0_5, %c0_6] : memref<32x128xf32, #tpu.memory_space<vmem>>, vector<32x128xf32>
    tpu.vector_store %arg6[%c0_5, %c0_6], %5 {strides = array<i32>} : memref<32x128xf32, #tpu.memory_space<vmem>>, vector<32x128xf32>,
    %c0_7 = arith.constant 0 : index
    %c0_8 = arith.constant 0 : index
    %7 = vector.load %arg4[%c0_7, %c0_8] : memref<4x128xf32, #tpu.memory_space<vmem>>, vector<1x128xf32>
    %c1 = arith.constant 1 : index
    %c0_9 = arith.constant 0 : index
    %8 = vector.load %arg4[%c1, %c0_9] : memref<4x128xf32, #tpu.memory_space<vmem>>, vector<1x128xf32>
    %c2 = arith.constant 2 : index
    %c0_10 = arith.constant 0 : index
    %9 = vector.load %arg4[%c2, %c0_10] : memref<4x128xf32, #tpu.memory_space<vmem>>, vector<1x128xf32>
    %c3 = arith.constant 3 : index
    %c0_11 = arith.constant 0 : index
    %10 = vector.load %arg4[%c3, %c0_11] : memref<4x128xf32, #tpu.memory_space<vmem>>, vector<1x128xf32>
    %11 = arith.negf %5 : vector<32x128xf32>
    %12 = math.exp %11 : vector<32x128xf32>
    %cst_12 = arith.constant 1.000000e+00 : f32
    %13 = vector.broadcast %cst_12 : f32 to vector<32x128xf32>
    %14 = arith.addf %13, %12 : vector<32x128xf32>
    %15 = arith.divf %13, %14 : vector<32x128xf32>
    %c0_13 = arith.constant 0 : index
    %c0_14 = arith.constant 0 : index
    %16 = vector.load %arg5[%c0_13, %c0_14] : memref<32x2xf32, #tpu.memory_space<vmem>>, vector<32x1xf32>
    %17 = vector.broadcast %16 : vector<32x1xf32> to vector<32x128xf32>
    %18 = vector.broadcast %9 : vector<1x128xf32> to vector<32x128xf32>
    %19 = arith.mulf %17, %18 : vector<32x128xf32>
    %c0_15 = arith.constant 0 : index
    %c1_16 = arith.constant 1 : index
    %20 = vector.load %arg5[%c0_15, %c1_16] : memref<32x2xf32, #tpu.memory_space<vmem>>, vector<32x1xf32>
    %21 = arith.subf %7, %9 : vector<1x128xf32>
    %22 = vector.broadcast %20 : vector<32x1xf32> to vector<32x128xf32>
    %23 = vector.broadcast %21 : vector<1x128xf32> to vector<32x128xf32>
    %24 = arith.mulf %22, %23 : vector<32x128xf32>
    %25 = arith.addf %19, %24 : vector<32x128xf32>
    %26 = arith.addf %15, %25 : vector<32x128xf32>
    %cst_17 = arith.constant 4.000000e+00 : f32
    %27 = vector.broadcast %cst_17 : f32 to vector<32x128xf32>
    %28 = arith.mulf %26, %27 : vector<32x128xf32>
    %29 = vector.broadcast %8 : vector<1x128xf32> to vector<32x128xf32>
    %30 = arith.mulf %5, %29 : vector<32x128xf32>
    %31 = math.exp %30 : vector<32x128xf32>
    %32 = vector.broadcast %10 : vector<1x128xf32> to vector<32x128xf32>
    %33 = arith.mulf %31, %32 : vector<32x128xf32>
    %cst_18 = arith.constant 4.000000e+00 : f32
    %34 = vector.broadcast %cst_18 : f32 to vector<32x128xf32>
    %35 = arith.mulf %33, %34 : vector<32x128xf32>
    %36 = vector.broadcast %7 : vector<1x128xf32> to vector<32x128xf32>
    %37 = arith.mulf %36, %28 : vector<32x128xf32>
    %38 = vector.broadcast %8 : vector<1x128xf32> to vector<32x128xf32>
    %39 = arith.mulf %38, %35 : vector<32x128xf32>
    %40 = arith.addf %37, %39 : vector<32x128xf32>
    %cst_19 = arith.constant 1.000000e+00 : f32
    %41 = vector.broadcast %cst_19 : f32 to vector<1x128xf32>
    %42 = arith.subf %41, %7 : vector<1x128xf32>
    %43 = arith.subf %42, %8 : vector<1x128xf32>
    %44 = vector.broadcast %43 : vector<1x128xf32> to vector<32x128xf32>
    %45 = arith.mulf %44, %15 : vector<32x128xf32>
    %46 = arith.addf %40, %45 : vector<32x128xf32>
    %c0_20 = arith.constant 0 : index
    %c0_21 = arith.constant 0 : index
    %47 = vector.load %arg7[%c0_20, %c0_21] : memref<32x128xf32, #tpu.memory_space<vmem>>, vector<32x128xf32>
    tpu.vector_store %arg7[%c0_20, %c0_21], %46 {strides = array<i32>} : memref<32x128xf32, #tpu.memory_space<vmem>>, vector<32x128xf32>,
    return
  }
  func.func @transform_0(%arg0: i32) -> (i32, i32) {
    %c0_i32 = arith.constant 0 : i32
    %c0_i32_0 = arith.constant 0 : i32
    return %arg0, %c0_i32 : i32, i32
  }
  func.func @transform_1(%arg0: i32) -> (i32, i32) {
    %c0_i32 = arith.constant 0 : i32
    %c0_i32_0 = arith.constant 0 : i32
    %c0_i32_1 = arith.constant 0 : i32
    return %c0_i32, %c0_i32_0 : i32, i32
  }
  func.func @transform_2(%arg0: i32) -> (i32, i32) {
    %c0_i32 = arith.constant 0 : i32
    %c0_i32_0 = arith.constant 0 : i32
    %c0_i32_1 = arith.constant 0 : i32
    return %c0_i32, %c0_i32_0 : i32, i32
  }
  func.func @transform_3(%arg0: i32) -> (i32, i32) {
    %c0_i32 = arith.constant 0 : i32
    %c0_i32_0 = arith.constant 0 : i32
    %c0_i32_1 = arith.constant 0 : i32
    return %c0_i32, %c0_i32_0 : i32, i32
  }
  func.func @transform_4(%arg0: i32) -> (i32, i32) {
    %c0_i32 = arith.constant 0 : i32
    %c0_i32_0 = arith.constant 0 : i32
    return %arg0, %c0_i32 : i32, i32
  }
  func.func @transform_5(%arg0: i32) -> (i32, i32) {
    %c0_i32 = arith.constant 0 : i32
    %c0_i32_0 = arith.constant 0 : i32
    return %arg0, %c0_i32 : i32, i32
  }
  func.func @transform_6(%arg0: i32) -> (i32, i32) {
    %c0_i32 = arith.constant 0 : i32
    %c0_i32_0 = arith.constant 0 : i32
    return %arg0, %c0_i32 : i32, i32
  }
}

</mosaic_0001>

<bundles_post_ra>
// kernel: _lambda_.9
= control target key start
LH: loop header
LB: loop body
LE: loop exit
PB: predicated region body
PF: predicated region fallthrough
CT: control target
= control target key end

     0   :  { %vm360_vm0 = vcmask 1041408   ;;  %vm263_vm1 = vcmask 293888   ;;  %s1423_s1 = inlined_call_operand.vmem [shape: bf16[36,128], index: 1, kind: input, shape index: {}]   ;;  %s1424_s2 = inlined_call_operand.vmem [shape: f32[1,128], index: 2, kind: input, shape index: {}]   ;;  %s1425_s0 = inlined_call_operand.vmem [shape: bf16[512,36], index: 0, kind: input, shape index: {}]   ;;  %s1426_s3 = inlined_call_operand.vmem [shape: f32[512,128], index: 3, kind: output, shape index: {}]  }
   0x1   :  { %v83_v0 = vld [vmem:[%s1423_s1 + $0x10] sm:$0x3]  ;;  %v994_v4 = vld [vmem:[%s1423_s1 + $0x8] sm:$0xff]  ;;  %v993_v5 = vld [vmem:[%s1423_s1] sm:$0xff] }
   0x2   :  { %v257_v1 = vunpack.c.l.b16 %v83_v0  ;;  %v961_v6 = vld [vmem:[%s1425_s0] sm:$0xff]  ;;  %v962_v10 = vld [vmem:[%s1425_s0 + $0x8] sm:$0xff]  ;;  %v963_v14 = vld [vmem:[%s1425_s0 + $0x10] sm:$0xff] }
   0x3   :  { %v969_v7 = vld [vmem:[%s1425_s0 + $0x40] sm:$0xff]  ;;  %v970_v11 = vld [vmem:[%s1425_s0 + $0x48] sm:$0xff]  ;;  %v971_v15 = vld [vmem:[%s1425_s0 + $0x50] sm:$0xff] }
   0x4   :  { %v260_v2 = vpack.c.b16 %v257_v1, %v257_v1  ;;  %v977_v8 = vld [vmem:[%s1425_s0 + $0x80] sm:$0xff]  ;;  %v978_v12 = vld [vmem:[%s1425_s0 + $0x88] sm:$0xff]  ;;  %v979_v16 = vld [vmem:[%s1425_s0 + $0x90] sm:$0xff] }
   0x5   :  { %v985_v9 = vld [vmem:[%s1425_s0 + $0xc0] sm:$0xff]  ;;  %v986_v13 = vld [vmem:[%s1425_s0 + $0xc8] sm:$0xff]  ;;  %v987_v17 = vld [vmem:[%s1425_s0 + $0xd0] sm:$0xff] }
   0x6   :  { %v362_v3 = vsel %vm360_vm0, %v260_v2, 0  ;;  %v964_v18 = vld [vmem:[%s1425_s0 + $0x18] sm:$0xff]  ;;  %v965_v22 = vld [vmem:[%s1425_s0 + $0x20] sm:$0xff]  ;;  %v966_v26 = vld [vmem:[%s1425_s0 + $0x28] sm:$0xff] }
   0x7   :  { %369 = vmatpush.bf16.msra.mxu0 %v362_v3  ;;  %995 = vmatpush.bf16.msra.mxu1 %v362_v3  ;;  %v972_v19 = vld [vmem:[%s1425_s0 + $0x58] sm:$0xff]  ;;  %v973_v23 = vld [vmem:[%s1425_s0 + $0x60] sm:$0xff]  ;;  %v974_v27 = vld [vmem:[%s1425_s0 + $0x68] sm:$0xff] }
   0x8   :  { %996 = vmatpush.bf16.msra.mxu2 %v362_v3  ;;  %997 = vmatpush.bf16.msra.mxu3 %v362_v3  ;;  %v980_v20 = vld [vmem:[%s1425_s0 + $0x98] sm:$0xff]  ;;  %v981_v24 = vld [vmem:[%s1425_s0 + $0xa0] sm:$0xff]  ;;  %v982_v28 = vld [vmem:[%s1425_s0 + $0xa8] sm:$0xff] }
   0x9   :  { %v988_v21 = vld [vmem:[%s1425_s0 + $0xd8] sm:$0xff]  ;;  %v989_v25 = vld [vmem:[%s1425_s0 + $0xe0] sm:$0xff]  ;;  %v990_v29 = vld [vmem:[%s1425_s0 + $0xe8] sm:$0xff] }
   0xa   :  { %v967_v30 = vld [vmem:[%s1425_s0 + $0x30] sm:$0xff]  ;;  %v968_v34 = vld [vmem:[%s1425_s0 + $0x38] sm:$0xff]  ;;  %v1165_v38 = vld [vmem:[%s1424_s2] ss:$0 sm:$0xff] }
   0xb   :  { %370 = vmatpush.bf16.msra.mxu0 %v994_v4  ;;  %998 = vmatpush.bf16.msra.mxu1 %v994_v4  ;;  %v975_v31 = vld [vmem:[%s1425_s0 + $0x70] sm:$0xff]  ;;  %v976_v35 = vld [vmem:[%s1425_s0 + $0x78] sm:$0xff] }
   0xc   :  { %999 = vmatpush.bf16.msra.mxu2 %v994_v4  ;;  %1000 = vmatpush.bf16.msra.mxu3 %v994_v4  ;;  %v983_v32 = vld [vmem:[%s1425_s0 + $0xb0] sm:$0xff]  ;;  %v984_v36 = vld [vmem:[%s1425_s0 + $0xb8] sm:$0xff] }
   0xd   :  { %v991_v33 = vld [vmem:[%s1425_s0 + $0xf0] sm:$0xff]  ;;  %v992_v37 = vld [vmem:[%s1425_s0 + $0xf8] sm:$0xff] }
   0xf   :  { %371 = vmatpush.bf16.msra.mxu0 %v993_v5  ;;  %1001 = vmatpush.bf16.msra.mxu1 %v993_v5 }
  0x10   :  { %1002 = vmatpush.bf16.msra.mxu2 %v993_v5  ;;  %1003 = vmatpush.bf16.msra.mxu3 %v993_v5 }
  0x12   :  { %929 = vmatmul.msk.bf16.vlgmr.msra.gmra.mxu0 %vm263_vm1, %v961_v6  ;;  %937 = vmatmul.msk.bf16.vlgmr.msra.gmra.mxu1 %vm263_vm1, %v969_v7 }
  0x13   :  { %945 = vmatmul.msk.bf16.vlgmr.msra.gmra.mxu2 %vm263_vm1, %v977_v8  ;;  %953 = vmatmul.msk.bf16.vlgmr.msra.gmra.mxu3 %vm263_vm1, %v985_v9 }
  0x22   :  { %930 = vmatmul.msk.bf16.gmra.mxu0 %vm263_vm1, %v962_v10  ;;  %938 = vmatmul.msk.bf16.gmra.mxu1 %vm263_vm1, %v970_v11 }
  0x23   :  { %946 = vmatmul.msk.bf16.gmra.mxu2 %vm263_vm1, %v978_v12  ;;  %954 = vmatmul.msk.bf16.gmra.mxu3 %vm263_vm1, %v986_v13 }
  0x32   :  { %931 = vmatmul.msk.bf16.gmra.mxu0 %vm263_vm1, %v963_v14  ;;  %939 = vmatmul.msk.bf16.gmra.mxu1 %vm263_vm1, %v971_v15 }
  0x33   :  { %947 = vmatmul.msk.bf16.gmra.mxu2 %vm263_vm1, %v979_v16  ;;  %955 = vmatmul.msk.bf16.gmra.mxu3 %vm263_vm1, %v987_v17 }
  0x42   :  { %932 = vmatmul.msk.bf16.gmra.mxu0 %vm263_vm1, %v964_v18  ;;  %940 = vmatmul.msk.bf16.gmra.mxu1 %vm263_vm1, %v972_v19 }
  0x43   :  { %948 = vmatmul.msk.bf16.gmra.mxu2 %vm263_vm1, %v980_v20  ;;  %956 = vmatmul.msk.bf16.gmra.mxu3 %vm263_vm1, %v988_v21 }
  0x52   :  { %933 = vmatmul.msk.bf16.gmra.mxu0 %vm263_vm1, %v965_v22  ;;  %941 = vmatmul.msk.bf16.gmra.mxu1 %vm263_vm1, %v973_v23 }
  0x53   :  { %949 = vmatmul.msk.bf16.gmra.mxu2 %vm263_vm1, %v981_v24  ;;  %957 = vmatmul.msk.bf16.gmra.mxu3 %vm263_vm1, %v989_v25 }
  0x62   :  { %934 = vmatmul.msk.bf16.gmra.mxu0 %vm263_vm1, %v966_v26  ;;  %942 = vmatmul.msk.bf16.gmra.mxu1 %vm263_vm1, %v974_v27 }
  0x63   :  { %950 = vmatmul.msk.bf16.gmra.mxu2 %vm263_vm1, %v982_v28  ;;  %958 = vmatmul.msk.bf16.gmra.mxu3 %vm263_vm1, %v990_v29 }
  0x72   :  { %935 = vmatmul.msk.bf16.gmra.mxu0 %vm263_vm1, %v967_v30  ;;  %943 = vmatmul.msk.bf16.gmra.mxu1 %vm263_vm1, %v975_v31 }
  0x73   :  { %951 = vmatmul.msk.bf16.gmra.mxu2 %vm263_vm1, %v983_v32  ;;  %959 = vmatmul.msk.bf16.gmra.mxu3 %vm263_vm1, %v991_v33 }
  0x82   :  { %936 = vmatmul.msk.bf16.gmra.mxu0 %vm263_vm1, %v968_v34  ;;  %944 = vmatmul.msk.bf16.gmra.mxu1 %vm263_vm1, %v976_v35 }
  0x83   :  { %952 = vmatmul.msk.bf16.gmra.mxu2 %vm263_vm1, %v984_v36  ;;  %960 = vmatmul.msk.bf16.gmra.mxu3 %vm263_vm1, %v992_v37 }
  0x8f   :  { %v373_v39 = vpop.f32.mrf.mxu0  ;;  %v413_v40 = vpop.f32.mrf.mxu1 }
  0x90   :  { %v374_v41 = vadd.f32 %v1165_v38, %v373_v39  ;;  %v414_v42 = vadd.f32 %v1165_v38, %v413_v40 }
  0x92   :  { %vm533_vm2 = vcmp.gt.f32.partialorder %v374_v41, 0.0  ;;  %v597_v43 = vmul.f32 0.1, %v374_v41  ;;  %vm549_vm3 = vcmp.gt.f32.partialorder %v414_v42, 0.0  ;;  %v613_v44 = vmul.f32 0.1, %v414_v42 }
  0x94   :  { %v661_v45 = vsel %vm533_vm2, %v374_v41, %v597_v43  ;;  %v677_v46 = vsel %vm549_vm3, %v414_v42, %v613_v44 }
  0x95   :  { %725 = vst [vmem:[%s1426_s3] sm:$0xff] %v661_v45 }
  0x96   :  { %741 = vst [vmem:[%s1426_s3 + $0x80] sm:$0xff] %v677_v46  ;;  %v453_v47 = vpop.f32.mrf.mxu2  ;;  %v493_v48 = vpop.f32.mrf.mxu3 }
  0x97   :  { %v454_v49 = vadd.f32 %v1165_v38, %v453_v47  ;;  %v494_v50 = vadd.f32 %v1165_v38, %v493_v48  ;;  %v375_v51 = vpop.f32.mrf.mxu0  ;;  %v415_v52 = vpop.f32.mrf.mxu1 }
  0x98   :  { %v376_v53 = vadd.f32 %v1165_v38, %v375_v51  ;;  %v416_v54 = vadd.f32 %v1165_v38, %v415_v52 }
  0x99   :  { %vm565_vm4 = vcmp.gt.f32.partialorder %v454_v49, 0.0  ;;  %v629_v55 = vmul.f32 0.1, %v454_v49  ;;  %vm581_vm5 = vcmp.gt.f32.partialorder %v494_v50, 0.0  ;;  %v645_v56 = vmul.f32 0.1, %v494_v50 }
  0x9a   :  { %vm534_vm6 = vcmp.gt.f32.partialorder %v376_v53, 0.0  ;;  %v598_v57 = vmul.f32 0.1, %v376_v53  ;;  %vm550_vm7 = vcmp.gt.f32.partialorder %v416_v54, 0.0  ;;  %v614_v58 = vmul.f32 0.1, %v416_v54 }
  0x9b   :  { %v693_v59 = vsel %vm565_vm4, %v454_v49, %v629_v55  ;;  %v709_v60 = vsel %vm581_vm5, %v494_v50, %v645_v56 }
  0x9c   :  { %757 = vst [vmem:[%s1426_s3 + $0x100] sm:$0xff] %v693_v59  ;;  %v662_v61 = vsel %vm534_vm6, %v376_v53, %v598_v57  ;;  %v678_v62 = vsel %vm550_vm7, %v416_v54, %v614_v58 }
  0x9d   :  { %773 = vst [vmem:[%s1426_s3 + $0x180] sm:$0xff] %v709_v60 }
  0x9e   :  { %726 = vst [vmem:[%s1426_s3 + $0x8] sm:$0xff] %v662_v61  ;;  %v455_v63 = vpop.f32.mrf.mxu2  ;;  %v495_v0 = vpop.f32.mrf.mxu3 }
  0x9f   :  { %742 = vst [vmem:[%s1426_s3 + $0x88] sm:$0xff] %v678_v62  ;;  %v456_v1 = vadd.f32 %v1165_v38, %v455_v63  ;;  %v496_v2 = vadd.f32 %v1165_v38, %v495_v0  ;;  %v378_v3 = vpop.f32.mrf.mxu0  ;;  %v418_v4 = vpop.f32.mrf.mxu1 }
  0xa0   :  { %v379_v5 = vadd.f32 %v1165_v38, %v378_v3  ;;  %v419_v6 = vadd.f32 %v1165_v38, %v418_v4 }
  0xa1   :  { %vm566_vm8 = vcmp.gt.f32.partialorder %v456_v1, 0.0  ;;  %v630_v7 = vmul.f32 0.1, %v456_v1  ;;  %vm582_vm9 = vcmp.gt.f32.partialorder %v496_v2, 0.0  ;;  %v646_v8 = vmul.f32 0.1, %v496_v2 }
  0xa2   :  { %vm535_vm10 = vcmp.gt.f32.partialorder %v379_v5, 0.0  ;;  %v599_v9 = vmul.f32 0.1, %v379_v5  ;;  %vm551_vm11 = vcmp.gt.f32.partialorder %v419_v6, 0.0  ;;  %v615_v10 = vmul.f32 0.1, %v419_v6 }
  0xa3   :  { %v694_v11 = vsel %vm566_vm8, %v456_v1, %v630_v7  ;;  %v710_v12 = vsel %vm582_vm9, %v496_v2, %v646_v8 }
  0xa4   :  { %758 = vst [vmem:[%s1426_s3 + $0x108] sm:$0xff] %v694_v11  ;;  %v663_v13 = vsel %vm535_vm10, %v379_v5, %v599_v9  ;;  %v679_v14 = vsel %vm551_vm11, %v419_v6, %v615_v10 }
  0xa5   :  { %774 = vst [vmem:[%s1426_s3 + $0x188] sm:$0xff] %v710_v12 }
  0xa6   :  { %727 = vst [vmem:[%s1426_s3 + $0x10] sm:$0xff] %v663_v13  ;;  %v458_v15 = vpop.f32.mrf.mxu2  ;;  %v498_v16 = vpop.f32.mrf.mxu3 }
  0xa7   :  { %743 = vst [vmem:[%s1426_s3 + $0x90] sm:$0xff] %v679_v14  ;;  %v459_v17 = vadd.f32 %v1165_v38, %v458_v15  ;;  %v499_v18 = vadd.f32 %v1165_v38, %v498_v16  ;;  %v380_v19 = vpop.f32.mrf.mxu0  ;;  %v420_v20 = vpop.f32.mrf.mxu1 }
  0xa8   :  { %v381_v21 = vadd.f32 %v1165_v38, %v380_v19  ;;  %v421_v22 = vadd.f32 %v1165_v38, %v420_v20 }
  0xa9   :  { %vm567_vm12 = vcmp.gt.f32.partialorder %v459_v17, 0.0  ;;  %v631_v23 = vmul.f32 0.1, %v459_v17  ;;  %vm583_vm13 = vcmp.gt.f32.partialorder %v499_v18, 0.0  ;;  %v647_v24 = vmul.f32 0.1, %v499_v18 }
  0xaa   :  { %vm536_vm14 = vcmp.gt.f32.partialorder %v381_v21, 0.0  ;;  %v600_v25 = vmul.f32 0.1, %v381_v21  ;;  %vm552_vm15 = vcmp.gt.f32.partialorder %v421_v22, 0.0  ;;  %v616_v26 = vmul.f32 0.1, %v421_v22 }
  0xab   :  { %v695_v27 = vsel %vm567_vm12, %v459_v17, %v631_v23  ;;  %v711_v28 = vsel %vm583_vm13, %v499_v18, %v647_v24 }
  0xac   :  { %759 = vst [vmem:[%s1426_s3 + $0x110] sm:$0xff] %v695_v27  ;;  %v664_v29 = vsel %vm536_vm14, %v381_v21, %v600_v25  ;;  %v680_v30 = vsel %vm552_vm15, %v421_v22, %v616_v26 }
  0xad   :  { %775 = vst [vmem:[%s1426_s3 + $0x190] sm:$0xff] %v711_v28 }
  0xae   :  { %728 = vst [vmem:[%s1426_s3 + $0x18] sm:$0xff] %v664_v29  ;;  %v460_v31 = vpop.f32.mrf.mxu2  ;;  %v500_v32 = vpop.f32.mrf.mxu3 }
  0xaf   :  { %744 = vst [vmem:[%s1426_s3 + $0x98] sm:$0xff] %v680_v30  ;;  %v461_v33 = vadd.f32 %v1165_v38, %v460_v31  ;;  %v501_v34 = vadd.f32 %v1165_v38, %v500_v32  ;;  %v383_v35 = vpop.f32.mrf.mxu0  ;;  %v423_v36 = vpop.f32.mrf.mxu1 }
  0xb0   :  { %v384_v37 = vadd.f32 %v1165_v38, %v383_v35  ;;  %v424_v39 = vadd.f32 %v1165_v38, %v423_v36 }
  0xb1   :  { %vm568_vm0 = vcmp.gt.f32.partialorder %v461_v33, 0.0  ;;  %v632_v40 = vmul.f32 0.1, %v461_v33  ;;  %vm584_vm1 = vcmp.gt.f32.partialorder %v501_v34, 0.0  ;;  %v648_v41 = vmul.f32 0.1, %v501_v34 }
  0xb2   :  { %vm537_vm2 = vcmp.gt.f32.partialorder %v384_v37, 0.0  ;;  %v601_v42 = vmul.f32 0.1, %v384_v37  ;;  %vm553_vm3 = vcmp.gt.f32.partialorder %v424_v39, 0.0  ;;  %v617_v43 = vmul.f32 0.1, %v424_v39 }
  0xb3   :  { %v696_v44 = vsel %vm568_vm0, %v461_v33, %v632_v40  ;;  %v712_v45 = vsel %vm584_vm1, %v501_v34, %v648_v41 }
  0xb4   :  { %760 = vst [vmem:[%s1426_s3 + $0x118] sm:$0xff] %v696_v44  ;;  %v665_v46 = vsel %vm537_vm2, %v384_v37, %v601_v42  ;;  %v681_v47 = vsel %vm553_vm3, %v424_v39, %v617_v43 }
  0xb5   :  { %776 = vst [vmem:[%s1426_s3 + $0x198] sm:$0xff] %v712_v45 }
  0xb6   :  { %729 = vst [vmem:[%s1426_s3 + $0x20] sm:$0xff] %v665_v46  ;;  %v463_v48 = vpop.f32.mrf.mxu2  ;;  %v503_v49 = vpop.f32.mrf.mxu3 }
  0xb7   :  { %745 = vst [vmem:[%s1426_s3 + $0xa0] sm:$0xff] %v681_v47  ;;  %v464_v50 = vadd.f32 %v1165_v38, %v463_v48  ;;  %v504_v51 = vadd.f32 %v1165_v38, %v503_v49  ;;  %v385_v52 = vpop.f32.mrf.mxu0  ;;  %v425_v53 = vpop.f32.mrf.mxu1 }
  0xb8   :  { %v386_v54 = vadd.f32 %v1165_v38, %v385_v52  ;;  %v426_v55 = vadd.f32 %v1165_v38, %v425_v53 }
  0xb9   :  { %vm569_vm4 = vcmp.gt.f32.partialorder %v464_v50, 0.0  ;;  %v633_v56 = vmul.f32 0.1, %v464_v50  ;;  %vm585_vm5 = vcmp.gt.f32.partialorder %v504_v51, 0.0  ;;  %v649_v57 = vmul.f32 0.1, %v504_v51 }
  0xba   :  { %vm538_vm6 = vcmp.gt.f32.partialorder %v386_v54, 0.0  ;;  %v602_v58 = vmul.f32 0.1, %v386_v54  ;;  %vm554_vm7 = vcmp.gt.f32.partialorder %v426_v55, 0.0  ;;  %v618_v59 = vmul.f32 0.1, %v426_v55 }
  0xbb   :  { %v697_v60 = vsel %vm569_vm4, %v464_v50, %v633_v56  ;;  %v713_v61 = vsel %vm585_vm5, %v504_v51, %v649_v57 }
  0xbc   :  { %761 = vst [vmem:[%s1426_s3 + $0x120] sm:$0xff] %v697_v60  ;;  %v666_v62 = vsel %vm538_vm6, %v386_v54, %v602_v58  ;;  %v682_v63 = vsel %vm554_vm7, %v426_v55, %v618_v59 }
  0xbd   :  { %777 = vst [vmem:[%s1426_s3 + $0x1a0] sm:$0xff] %v713_v61 }
  0xbe   :  { %730 = vst [vmem:[%s1426_s3 + $0x28] sm:$0xff] %v666_v62  ;;  %v465_v0 = vpop.f32.mrf.mxu2  ;;  %v505_v1 = vpop.f32.mrf.mxu3 }
  0xbf   :  { %746 = vst [vmem:[%s1426_s3 + $0xa8] sm:$0xff] %v682_v63  ;;  %v466_v2 = vadd.f32 %v1165_v38, %v465_v0  ;;  %v506_v3 = vadd.f32 %v1165_v38, %v505_v1  ;;  %v388_v4 = vpop.f32.mrf.mxu0  ;;  %v428_v5 = vpop.f32.mrf.mxu1 }
  0xc0   :  { %v389_v6 = vadd.f32 %v1165_v38, %v388_v4  ;;  %v429_v7 = vadd.f32 %v1165_v38, %v428_v5 }
  0xc1   :  { %vm570_vm8 = vcmp.gt.f32.partialorder %v466_v2, 0.0  ;;  %v634_v8 = vmul.f32 0.1, %v466_v2  ;;  %vm586_vm9 = vcmp.gt.f32.partialorder %v506_v3, 0.0  ;;  %v650_v9 = vmul.f32 0.1, %v506_v3 }
  0xc2   :  { %vm539_vm10 = vcmp.gt.f32.partialorder %v389_v6, 0.0  ;;  %v603_v10 = vmul.f32 0.1, %v389_v6  ;;  %vm555_vm11 = vcmp.gt.f32.partialorder %v429_v7, 0.0  ;;  %v619_v11 = vmul.f32 0.1, %v429_v7 }
  0xc3   :  { %v698_v12 = vsel %vm570_vm8, %v466_v2, %v634_v8  ;;  %v714_v13 = vsel %vm586_vm9, %v506_v3, %v650_v9 }
  0xc4   :  { %762 = vst [vmem:[%s1426_s3 + $0x128] sm:$0xff] %v698_v12  ;;  %v667_v14 = vsel %vm539_vm10, %v389_v6, %v603_v10  ;;  %v683_v15 = vsel %vm555_vm11, %v429_v7, %v619_v11 }
  0xc5   :  { %778 = vst [vmem:[%s1426_s3 + $0x1a8] sm:$0xff] %v714_v13 }
  0xc6   :  { %731 = vst [vmem:[%s1426_s3 + $0x30] sm:$0xff] %v667_v14  ;;  %v468_v16 = vpop.f32.mrf.mxu2  ;;  %v508_v17 = vpop.f32.mrf.mxu3 }
  0xc7   :  { %747 = vst [vmem:[%s1426_s3 + $0xb0] sm:$0xff] %v683_v15  ;;  %v469_v18 = vadd.f32 %v1165_v38, %v468_v16  ;;  %v509_v19 = vadd.f32 %v1165_v38, %v508_v17  ;;  %v390_v20 = vpop.f32.mrf.mxu0  ;;  %v430_v21 = vpop.f32.mrf.mxu1 }
  0xc8   :  { %v391_v22 = vadd.f32 %v1165_v38, %v390_v20  ;;  %v431_v23 = vadd.f32 %v1165_v38, %v430_v21 }
  0xc9   :  { %vm571_vm12 = vcmp.gt.f32.partialorder %v469_v18, 0.0  ;;  %v635_v24 = vmul.f32 0.1, %v469_v18  ;;  %vm587_vm13 = vcmp.gt.f32.partialorder %v509_v19, 0.0  ;;  %v651_v25 = vmul.f32 0.1, %v509_v19 }
  0xca   :  { %vm540_vm14 = vcmp.gt.f32.partialorder %v391_v22, 0.0  ;;  %v604_v26 = vmul.f32 0.1, %v391_v22  ;;  %vm556_vm15 = vcmp.gt.f32.partialorder %v431_v23, 0.0  ;;  %v620_v27 = vmul.f32 0.1, %v431_v23 }
  0xcb   :  { %v699_v28 = vsel %vm571_vm12, %v469_v18, %v635_v24  ;;  %v715_v29 = vsel %vm587_vm13, %v509_v19, %v651_v25 }
  0xcc   :  { %763 = vst [vmem:[%s1426_s3 + $0x130] sm:$0xff] %v699_v28  ;;  %v668_v30 = vsel %vm540_vm14, %v391_v22, %v604_v26  ;;  %v684_v31 = vsel %vm556_vm15, %v431_v23, %v620_v27 }
  0xcd   :  { %779 = vst [vmem:[%s1426_s3 + $0x1b0] sm:$0xff] %v715_v29 }
  0xce   :  { %732 = vst [vmem:[%s1426_s3 + $0x38] sm:$0xff] %v668_v30  ;;  %v470_v32 = vpop.f32.mrf.mxu2  ;;  %v510_v33 = vpop.f32.mrf.mxu3 }
  0xcf   :  { %748 = vst [vmem:[%s1426_s3 + $0xb8] sm:$0xff] %v684_v31  ;;  %v471_v34 = vadd.f32 %v1165_v38, %v470_v32  ;;  %v511_v35 = vadd.f32 %v1165_v38, %v510_v33  ;;  %v393_v36 = vpop.f32.mrf.mxu0  ;;  %v433_v37 = vpop.f32.mrf.mxu1 }
  0xd0   :  { %v394_v39 = vadd.f32 %v1165_v38, %v393_v36  ;;  %v434_v40 = vadd.f32 %v1165_v38, %v433_v37 }
  0xd1   :  { %vm572_vm0 = vcmp.gt.f32.partialorder %v471_v34, 0.0  ;;  %v636_v41 = vmul.f32 0.1, %v471_v34  ;;  %vm588_vm1 = vcmp.gt.f32.partialorder %v511_v35, 0.0  ;;  %v652_v42 = vmul.f32 0.1, %v511_v35 }
  0xd2   :  { %vm541_vm2 = vcmp.gt.f32.partialorder %v394_v39, 0.0  ;;  %v605_v43 = vmul.f32 0.1, %v394_v39  ;;  %vm557_vm3 = vcmp.gt.f32.partialorder %v434_v40, 0.0  ;;  %v621_v44 = vmul.f32 0.1, %v434_v40 }
  0xd3   :  { %v700_v45 = vsel %vm572_vm0, %v471_v34, %v636_v41  ;;  %v716_v46 = vsel %vm588_vm1, %v511_v35, %v652_v42 }
  0xd4   :  { %764 = vst [vmem:[%s1426_s3 + $0x138] sm:$0xff] %v700_v45  ;;  %v669_v47 = vsel %vm541_vm2, %v394_v39, %v605_v43  ;;  %v685_v48 = vsel %vm557_vm3, %v434_v40, %v621_v44 }
  0xd5   :  { %780 = vst [vmem:[%s1426_s3 + $0x1b8] sm:$0xff] %v716_v46 }
  0xd6   :  { %733 = vst [vmem:[%s1426_s3 + $0x40] sm:$0xff] %v669_v47  ;;  %v473_v49 = vpop.f32.mrf.mxu2  ;;  %v513_v50 = vpop.f32.mrf.mxu3 }
  0xd7   :  { %749 = vst [vmem:[%s1426_s3 + $0xc0] sm:$0xff] %v685_v48  ;;  %v474_v51 = vadd.f32 %v1165_v38, %v473_v49  ;;  %v514_v52 = vadd.f32 %v1165_v38, %v513_v50  ;;  %v395_v53 = vpop.f32.mrf.mxu0  ;;  %v435_v54 = vpop.f32.mrf.mxu1 }
  0xd8   :  { %v396_v55 = vadd.f32 %v1165_v38, %v395_v53  ;;  %v436_v56 = vadd.f32 %v1165_v38, %v435_v54 }
  0xd9   :  { %vm573_vm4 = vcmp.gt.f32.partialorder %v474_v51, 0.0  ;;  %v637_v57 = vmul.f32 0.1, %v474_v51  ;;  %vm589_vm5 = vcmp.gt.f32.partialorder %v514_v52, 0.0  ;;  %v653_v58 = vmul.f32 0.1, %v514_v52 }
  0xda   :  { %vm542_vm6 = vcmp.gt.f32.partialorder %v396_v55, 0.0  ;;  %v606_v59 = vmul.f32 0.1, %v396_v55  ;;  %vm558_vm7 = vcmp.gt.f32.partialorder %v436_v56, 0.0  ;;  %v622_v60 = vmul.f32 0.1, %v436_v56 }
  0xdb   :  { %v701_v61 = vsel %vm573_vm4, %v474_v51, %v637_v57  ;;  %v717_v62 = vsel %vm589_vm5, %v514_v52, %v653_v58 }
  0xdc   :  { %765 = vst [vmem:[%s1426_s3 + $0x140] sm:$0xff] %v701_v61  ;;  %v670_v63 = vsel %vm542_vm6, %v396_v55, %v606_v59  ;;  %v686_v0 = vsel %vm558_vm7, %v436_v56, %v622_v60 }
  0xdd   :  { %781 = vst [vmem:[%s1426_s3 + $0x1c0] sm:$0xff] %v717_v62 }
  0xde   :  { %734 = vst [vmem:[%s1426_s3 + $0x48] sm:$0xff] %v670_v63  ;;  %v475_v1 = vpop.f32.mrf.mxu2  ;;  %v515_v2 = vpop.f32.mrf.mxu3 }
  0xdf   :  { %750 = vst [vmem:[%s1426_s3 + $0xc8] sm:$0xff] %v686_v0  ;;  %v476_v3 = vadd.f32 %v1165_v38, %v475_v1  ;;  %v516_v4 = vadd.f32 %v1165_v38, %v515_v2  ;;  %v398_v5 = vpop.f32.mrf.mxu0  ;;  %v438_v6 = vpop.f32.mrf.mxu1 }
  0xe0   :  { %v399_v7 = vadd.f32 %v1165_v38, %v398_v5  ;;  %v439_v8 = vadd.f32 %v1165_v38, %v438_v6 }
  0xe1   :  { %vm574_vm8 = vcmp.gt.f32.partialorder %v476_v3, 0.0  ;;  %v638_v9 = vmul.f32 0.1, %v476_v3  ;;  %vm590_vm9 = vcmp.gt.f32.partialorder %v516_v4, 0.0  ;;  %v654_v10 = vmul.f32 0.1, %v516_v4 }
  0xe2   :  { %vm543_vm10 = vcmp.gt.f32.partialorder %v399_v7, 0.0  ;;  %v607_v11 = vmul.f32 0.1, %v399_v7  ;;  %vm559_vm11 = vcmp.gt.f32.partialorder %v439_v8, 0.0  ;;  %v623_v12 = vmul.f32 0.1, %v439_v8 }
  0xe3   :  { %v702_v13 = vsel %vm574_vm8, %v476_v3, %v638_v9  ;;  %v718_v14 = vsel %vm590_vm9, %v516_v4, %v654_v10 }
  0xe4   :  { %766 = vst [vmem:[%s1426_s3 + $0x148] sm:$0xff] %v702_v13  ;;  %v671_v15 = vsel %vm543_vm10, %v399_v7, %v607_v11  ;;  %v687_v16 = vsel %vm559_vm11, %v439_v8, %v623_v12 }
  0xe5   :  { %782 = vst [vmem:[%s1426_s3 + $0x1c8] sm:$0xff] %v718_v14 }
  0xe6   :  { %735 = vst [vmem:[%s1426_s3 + $0x50] sm:$0xff] %v671_v15  ;;  %v478_v17 = vpop.f32.mrf.mxu2  ;;  %v518_v18 = vpop.f32.mrf.mxu3 }
  0xe7   :  { %751 = vst [vmem:[%s1426_s3 + $0xd0] sm:$0xff] %v687_v16  ;;  %v479_v19 = vadd.f32 %v1165_v38, %v478_v17  ;;  %v519_v20 = vadd.f32 %v1165_v38, %v518_v18  ;;  %v400_v21 = vpop.f32.mrf.mxu0  ;;  %v440_v22 = vpop.f32.mrf.mxu1 }
  0xe8   :  { %v401_v23 = vadd.f32 %v1165_v38, %v400_v21  ;;  %v441_v24 = vadd.f32 %v1165_v38, %v440_v22 }
  0xe9   :  { %vm575_vm12 = vcmp.gt.f32.partialorder %v479_v19, 0.0  ;;  %v639_v25 = vmul.f32 0.1, %v479_v19  ;;  %vm591_vm13 = vcmp.gt.f32.partialorder %v519_v20, 0.0  ;;  %v655_v26 = vmul.f32 0.1, %v519_v20 }
  0xea   :  { %vm544_vm14 = vcmp.gt.f32.partialorder %v401_v23, 0.0  ;;  %v608_v27 = vmul.f32 0.1, %v401_v23  ;;  %vm560_vm15 = vcmp.gt.f32.partialorder %v441_v24, 0.0  ;;  %v624_v28 = vmul.f32 0.1, %v441_v24 }
  0xeb   :  { %v703_v29 = vsel %vm575_vm12, %v479_v19, %v639_v25  ;;  %v719_v30 = vsel %vm591_vm13, %v519_v20, %v655_v26 }
  0xec   :  { %767 = vst [vmem:[%s1426_s3 + $0x150] sm:$0xff] %v703_v29  ;;  %v672_v31 = vsel %vm544_vm14, %v401_v23, %v608_v27  ;;  %v688_v32 = vsel %vm560_vm15, %v441_v24, %v624_v28 }
  0xed   :  { %783 = vst [vmem:[%s1426_s3 + $0x1d0] sm:$0xff] %v719_v30 }
  0xee   :  { %736 = vst [vmem:[%s1426_s3 + $0x58] sm:$0xff] %v672_v31  ;;  %v480_v33 = vpop.f32.mrf.mxu2  ;;  %v520_v34 = vpop.f32.mrf.mxu3 }
  0xef   :  { %752 = vst [vmem:[%s1426_s3 + $0xd8] sm:$0xff] %v688_v32  ;;  %v481_v35 = vadd.f32 %v1165_v38, %v480_v33  ;;  %v521_v36 = vadd.f32 %v1165_v38, %v520_v34  ;;  %v403_v37 = vpop.f32.mrf.mxu0  ;;  %v443_v39 = vpop.f32.mrf.mxu1 }
  0xf0   :  { %v404_v40 = vadd.f32 %v1165_v38, %v403_v37  ;;  %v444_v41 = vadd.f32 %v1165_v38, %v443_v39 }
  0xf1   :  { %vm576_vm0 = vcmp.gt.f32.partialorder %v481_v35, 0.0  ;;  %v640_v42 = vmul.f32 0.1, %v481_v35  ;;  %vm592_vm1 = vcmp.gt.f32.partialorder %v521_v36, 0.0  ;;  %v656_v43 = vmul.f32 0.1, %v521_v36 }
  0xf2   :  { %vm545_vm2 = vcmp.gt.f32.partialorder %v404_v40, 0.0  ;;  %v609_v44 = vmul.f32 0.1, %v404_v40  ;;  %vm561_vm3 = vcmp.gt.f32.partialorder %v444_v41, 0.0  ;;  %v625_v45 = vmul.f32 0.1, %v444_v41 }
  0xf3   :  { %v704_v46 = vsel %vm576_vm0, %v481_v35, %v640_v42  ;;  %v720_v47 = vsel %vm592_vm1, %v521_v36, %v656_v43 }
  0xf4   :  { %768 = vst [vmem:[%s1426_s3 + $0x158] sm:$0xff] %v704_v46  ;;  %v673_v48 = vsel %vm545_vm2, %v404_v40, %v609_v44  ;;  %v689_v49 = vsel %vm561_vm3, %v444_v41, %v625_v45 }
  0xf5   :  { %784 = vst [vmem:[%s1426_s3 + $0x1d8] sm:$0xff] %v720_v47 }
  0xf6   :  { %737 = vst [vmem:[%s1426_s3 + $0x60] sm:$0xff] %v673_v48  ;;  %v483_v50 = vpop.f32.mrf.mxu2  ;;  %v523_v51 = vpop.f32.mrf.mxu3 }
  0xf7   :  { %753 = vst [vmem:[%s1426_s3 + $0xe0] sm:$0xff] %v689_v49  ;;  %v484_v52 = vadd.f32 %v1165_v38, %v483_v50  ;;  %v524_v53 = vadd.f32 %v1165_v38, %v523_v51  ;;  %v405_v54 = vpop.f32.mrf.mxu0  ;;  %v445_v55 = vpop.f32.mrf.mxu1 }
  0xf8   :  { %v406_v56 = vadd.f32 %v1165_v38, %v405_v54  ;;  %v446_v57 = vadd.f32 %v1165_v38, %v445_v55 }
  0xf9   :  { %vm577_vm4 = vcmp.gt.f32.partialorder %v484_v52, 0.0  ;;  %v641_v58 = vmul.f32 0.1, %v484_v52  ;;  %vm593_vm5 = vcmp.gt.f32.partialorder %v524_v53, 0.0  ;;  %v657_v59 = vmul.f32 0.1, %v524_v53 }
  0xfa   :  { %vm546_vm6 = vcmp.gt.f32.partialorder %v406_v56, 0.0  ;;  %v610_v60 = vmul.f32 0.1, %v406_v56  ;;  %vm562_vm7 = vcmp.gt.f32.partialorder %v446_v57, 0.0  ;;  %v626_v61 = vmul.f32 0.1, %v446_v57 }
  0xfb   :  { %v705_v62 = vsel %vm577_vm4, %v484_v52, %v641_v58  ;;  %v721_v63 = vsel %vm593_vm5, %v524_v53, %v657_v59 }
  0xfc   :  { %769 = vst [vmem:[%s1426_s3 + $0x160] sm:$0xff] %v705_v62  ;;  %v674_v0 = vsel %vm546_vm6, %v406_v56, %v610_v60  ;;  %v690_v1 = vsel %vm562_vm7, %v446_v57, %v626_v61 }
  0xfd   :  { %785 = vst [vmem:[%s1426_s3 + $0x1e0] sm:$0xff] %v721_v63 }
  0xfe   :  { %738 = vst [vmem:[%s1426_s3 + $0x68] sm:$0xff] %v674_v0  ;;  %v485_v2 = vpop.f32.mrf.mxu2  ;;  %v525_v3 = vpop.f32.mrf.mxu3 }
  0xff   :  { %754 = vst [vmem:[%s1426_s3 + $0xe8] sm:$0xff] %v690_v1  ;;  %v486_v4 = vadd.f32 %v1165_v38, %v485_v2  ;;  %v526_v5 = vadd.f32 %v1165_v38, %v525_v3  ;;  %v408_v6 = vpop.f32.mrf.mxu0  ;;  %v448_v7 = vpop.f32.mrf.mxu1 }
 0x100   :  { %v409_v8 = vadd.f32 %v1165_v38, %v408_v6  ;;  %v449_v9 = vadd.f32 %v1165_v38, %v448_v7 }
 0x101   :  { %vm578_vm8 = vcmp.gt.f32.partialorder %v486_v4, 0.0  ;;  %v642_v10 = vmul.f32 0.1, %v486_v4  ;;  %vm594_vm9 = vcmp.gt.f32.partialorder %v526_v5, 0.0  ;;  %v658_v11 = vmul.f32 0.1, %v526_v5 }
 0x102   :  { %vm547_vm10 = vcmp.gt.f32.partialorder %v409_v8, 0.0  ;;  %v611_v12 = vmul.f32 0.1, %v409_v8  ;;  %vm563_vm11 = vcmp.gt.f32.partialorder %v449_v9, 0.0  ;;  %v627_v13 = vmul.f32 0.1, %v449_v9 }
 0x103   :  { %v706_v14 = vsel %vm578_vm8, %v486_v4, %v642_v10  ;;  %v722_v15 = vsel %vm594_vm9, %v526_v5, %v658_v11 }
 0x104   :  { %770 = vst [vmem:[%s1426_s3 + $0x168] sm:$0xff] %v706_v14  ;;  %v675_v16 = vsel %vm547_vm10, %v409_v8, %v611_v12  ;;  %v691_v17 = vsel %vm563_vm11, %v449_v9, %v627_v13 }
 0x105   :  { %786 = vst [vmem:[%s1426_s3 + $0x1e8] sm:$0xff] %v722_v15 }
 0x106   :  { %739 = vst [vmem:[%s1426_s3 + $0x70] sm:$0xff] %v675_v16  ;;  %v488_v18 = vpop.f32.mrf.mxu2  ;;  %v528_v19 = vpop.f32.mrf.mxu3 }
 0x107   :  { %755 = vst [vmem:[%s1426_s3 + $0xf0] sm:$0xff] %v691_v17  ;;  %v489_v20 = vadd.f32 %v1165_v38, %v488_v18  ;;  %v529_v21 = vadd.f32 %v1165_v38, %v528_v19  ;;  %v410_v22 = vpop.f32.mrf.mxu0  ;;  %v450_v23 = vpop.f32.mrf.mxu1 }
 0x108   :  { %v411_v24 = vadd.f32 %v1165_v38, %v410_v22  ;;  %v451_v25 = vadd.f32 %v1165_v38, %v450_v23 }
 0x109   :  { %vm579_vm12 = vcmp.gt.f32.partialorder %v489_v20, 0.0  ;;  %v643_v26 = vmul.f32 0.1, %v489_v20  ;;  %vm595_vm13 = vcmp.gt.f32.partialorder %v529_v21, 0.0  ;;  %v659_v27 = vmul.f32 0.1, %v529_v21 }
 0x10a   :  { %vm548_vm14 = vcmp.gt.f32.partialorder %v411_v24, 0.0  ;;  %v612_v28 = vmul.f32 0.1, %v411_v24  ;;  %vm564_vm15 = vcmp.gt.f32.partialorder %v451_v25, 0.0  ;;  %v628_v29 = vmul.f32 0.1, %v451_v25 }
 0x10b   :  { %v707_v30 = vsel %vm579_vm12, %v489_v20, %v643_v26  ;;  %v723_v31 = vsel %vm595_vm13, %v529_v21, %v659_v27 }
 0x10c   :  { %771 = vst [vmem:[%s1426_s3 + $0x170] sm:$0xff] %v707_v30  ;;  %v676_v32 = vsel %vm548_vm14, %v411_v24, %v612_v28  ;;  %v692_v33 = vsel %vm564_vm15, %v451_v25, %v628_v29 }
 0x10d   :  { %787 = vst [vmem:[%s1426_s3 + $0x1f0] sm:$0xff] %v723_v31 }
 0x10e   :  { %740 = vst [vmem:[%s1426_s3 + $0x78] sm:$0xff] %v676_v32  ;;  %v490_v34 = vpop.f32.mrf.mxu2  ;;  %v530_v35 = vpop.f32.mrf.mxu3 }
 0x10f   :  { %756 = vst [vmem:[%s1426_s3 + $0xf8] sm:$0xff] %v692_v33  ;;  %v491_v36 = vadd.f32 %v1165_v38, %v490_v34  ;;  %v531_v37 = vadd.f32 %v1165_v38, %v530_v35 }
 0x111   :  { %vm580_vm0 = vcmp.gt.f32.partialorder %v491_v36, 0.0  ;;  %v644_v39 = vmul.f32 0.1, %v491_v36  ;;  %vm596_vm1 = vcmp.gt.f32.partialorder %v531_v37, 0.0  ;;  %v660_v40 = vmul.f32 0.1, %v531_v37 }
 0x113   :  { %v708_v41 = vsel %vm580_vm0, %v491_v36, %v644_v39  ;;  %v724_v42 = vsel %vm596_vm1, %v531_v37, %v660_v40 }
 0x114   :  { %772 = vst [vmem:[%s1426_s3 + $0x178] sm:$0xff] %v708_v41 }
 0x115   :  { %788 = vst [vmem:[%s1426_s3 + $0x1f8] sm:$0xff] %v724_v42 }

// kernel: _lambda_.10
= control target key start
LH: loop header
LB: loop body
LE: loop exit
PB: predicated region body
PF: predicated region fallthrough
CT: control target
= control target key end

     0   :  { %s45_s13 = smov 64   ;;  %vm37_vm0 = vcmask 523264   ;;  %s79_s1 = inlined_call_operand.vmem [shape: f32[16,128], index: 1, kind: input, shape index: {}]   ;;  %s80_s0 = inlined_call_operand.vmem [shape: f32[16,128], index: 0, kind: input, shape index: {}]   ;;  %s81_s2 = inlined_call_operand.vmem [shape: f32[16,64], index: 2, kind: output, shape index: {}]  }
   0x1   :  { %v13_v0 = vld [vmem:[%s79_s1] sm:$0xff]  ;;  %v14_v2 = vld [vmem:[%s79_s1 + $0x8] sm:$0xff] }
   0x2   :  { %v11_v1 = vld [vmem:[%s80_s0] sm:$0xff]  ;;  %27 = vrot.lane.b32.xlu1 %v13_v0, %s45_s13  ;;  %v12_v3 = vld [vmem:[%s80_s0 + $0x8] sm:$0xff] }
   0x3   :  { %17 = vrot.lane.b32.xlu0 %v11_v1, %s45_s13 }
   0xa   :  { %29 = vrot.lane.b32.xlu1 %v14_v2, %s45_s13 }
   0xb   :  { %19 = vrot.lane.b32.xlu0 %v12_v3, %s45_s13 }
  0x74   :  { %v28_v4 = vpop.permute.xlu1 %27 }
  0x75   :  { %v18_v5 = vpop.permute.xlu0 %17  ;;  %v33_v6 = vmax.f32 %v13_v0, %v28_v4 }
  0x76   :  { %v23_v7 = vmax.f32 %v11_v1, %v18_v5 }
  0x78   :  { %v35_v8 = vmax.f32 %v23_v7, %v33_v6 }
  0x7a   :  { %38 = vst.msk [vmem:[%s81_s2] sm:$0xff] %vm37_vm0, %v35_v8 }
  0x7c   :  { %v30_v9 = vpop.permute.xlu1 %29 }
  0x7d   :  { %v20_v10 = vpop.permute.xlu0 %19  ;;  %v34_v11 = vmax.f32 %v14_v2, %v30_v9 }
  0x7e   :  { %v24_v12 = vmax.f32 %v12_v3, %v20_v10 }
  0x80   :  { %v36_v13 = vmax.f32 %v24_v12, %v34_v11 }
  0x82   :  { %39 = vst.msk [vmem:[%s81_s2 + $0x8] sm:$0xff] %vm37_vm0, %v36_v13 }

// kernel: _lambda_.12
= control target key start
LH: loop header
LB: loop body
LE: loop exit
PB: predicated region body
PF: predicated region fallthrough
CT: control target
= control target key end

     0   :  { %vm83_vm0 = vcmask 130048   ;;  %s406_s1 = inlined_call_operand.vmem [shape: bf16[16,128], index: 1, kind: input, shape index: {}]   ;;  %s407_s0 = inlined_call_operand.vmem [shape: bf16[128,16], index: 0, kind: input, shape index: {}]   ;;  %s408_s2 = inlined_call_operand.vmem [shape: f32[1,128], index: 2, kind: input, shape index: {}]   ;;  %s409_s3 = inlined_call_operand.vmem [shape: f32[128,128], index: 3, kind: output, shape index: {}]  }
   0x1   :  { %v277_v0 = vld [vmem:[%s406_s1] sm:$0xff]  ;;  %v271_v2 = vld [vmem:[%s407_s0 + $0x10] sm:$0xff]  ;;  %v270_v5 = vld [vmem:[%s407_s0 + $0x8] sm:$0xff] }
   0x2   :  { %v269_v1 = vld [vmem:[%s407_s0] sm:$0xff]  ;;  %115 = vmatpush.bf16.msra.mxu0 %v277_v0  ;;  %278 = vmatpush.bf16.msra.mxu1 %v277_v0  ;;  %v275_v4 = vld [vmem:[%s407_s0 + $0x30] sm:$0xff]  ;;  %v272_v6 = vld [vmem:[%s407_s0 + $0x18] sm:$0xff] }
   0x3   :  { %v273_v3 = vld [vmem:[%s407_s0 + $0x20] sm:$0xff]  ;;  %279 = vmatpush.bf16.msra.mxu2 %v277_v0  ;;  %280 = vmatpush.bf16.msra.mxu3 %v277_v0  ;;  %v274_v7 = vld [vmem:[%s407_s0 + $0x28] sm:$0xff]  ;;  %v276_v8 = vld [vmem:[%s407_s0 + $0x38] sm:$0xff] }
   0x4   :  { %v340_v9 = vld [vmem:[%s408_s2] ss:$0 sm:$0xff] }
   0x5   :  { %261 = vmatmul.msk.bf16.vlgmr.msra.gmra.mxu0 %vm83_vm0, %v269_v1  ;;  %263 = vmatmul.msk.bf16.vlgmr.msra.gmra.mxu1 %vm83_vm0, %v271_v2 }
   0x6   :  { %265 = vmatmul.msk.bf16.vlgmr.msra.gmra.mxu2 %vm83_vm0, %v273_v3  ;;  %267 = vmatmul.msk.bf16.vlgmr.msra.gmra.mxu3 %vm83_vm0, %v275_v4 }
  0x15   :  { %262 = vmatmul.msk.bf16.gmra.mxu0 %vm83_vm0, %v270_v5  ;;  %264 = vmatmul.msk.bf16.gmra.mxu1 %vm83_vm0, %v272_v6 }
  0x16   :  { %266 = vmatmul.msk.bf16.gmra.mxu2 %vm83_vm0, %v274_v7  ;;  %268 = vmatmul.msk.bf16.gmra.mxu3 %vm83_vm0, %v276_v8 }
  0x82   :  { %v117_v10 = vpop.f32.mrf.mxu0  ;;  %v127_v11 = vpop.f32.mrf.mxu1 }
  0x83   :  { %v118_v12 = vadd.f32 %v340_v9, %v117_v10  ;;  %v128_v13 = vadd.f32 %v340_v9, %v127_v11 }
  0x85   :  { %vm157_vm1 = vcmp.gt.f32.partialorder %v118_v12, 0.0  ;;  %v173_v14 = vmul.f32 0.1, %v118_v12  ;;  %vm161_vm2 = vcmp.gt.f32.partialorder %v128_v13, 0.0  ;;  %v177_v15 = vmul.f32 0.1, %v128_v13 }
  0x87   :  { %v189_v16 = vsel %vm157_vm1, %v118_v12, %v173_v14  ;;  %v193_v17 = vsel %vm161_vm2, %v128_v13, %v177_v15 }
  0x88   :  { %205 = vst [vmem:[%s409_s3] sm:$0xff] %v189_v16 }
  0x89   :  { %209 = vst [vmem:[%s409_s3 + $0x20] sm:$0xff] %v193_v17  ;;  %v137_v18 = vpop.f32.mrf.mxu2  ;;  %v147_v19 = vpop.f32.mrf.mxu3 }
  0x8a   :  { %v138_v20 = vadd.f32 %v340_v9, %v137_v18  ;;  %v148_v21 = vadd.f32 %v340_v9, %v147_v19  ;;  %v119_v22 = vpop.f32.mrf.mxu0  ;;  %v129_v23 = vpop.f32.mrf.mxu1 }
  0x8b   :  { %v120_v24 = vadd.f32 %v340_v9, %v119_v22  ;;  %v130_v25 = vadd.f32 %v340_v9, %v129_v23 }
  0x8c   :  { %vm165_vm3 = vcmp.gt.f32.partialorder %v138_v20, 0.0  ;;  %v181_v26 = vmul.f32 0.1, %v138_v20  ;;  %vm169_vm4 = vcmp.gt.f32.partialorder %v148_v21, 0.0  ;;  %v185_v27 = vmul.f32 0.1, %v148_v21 }
  0x8d   :  { %vm158_vm5 = vcmp.gt.f32.partialorder %v120_v24, 0.0  ;;  %v174_v28 = vmul.f32 0.1, %v120_v24  ;;  %vm162_vm6 = vcmp.gt.f32.partialorder %v130_v25, 0.0  ;;  %v178_v29 = vmul.f32 0.1, %v130_v25 }
  0x8e   :  { %v197_v30 = vsel %vm165_vm3, %v138_v20, %v181_v26  ;;  %v201_v31 = vsel %vm169_vm4, %v148_v21, %v185_v27 }
  0x8f   :  { %213 = vst [vmem:[%s409_s3 + $0x40] sm:$0xff] %v197_v30  ;;  %v190_v32 = vsel %vm158_vm5, %v120_v24, %v174_v28  ;;  %v194_v33 = vsel %vm162_vm6, %v130_v25, %v178_v29 }
  0x90   :  { %217 = vst [vmem:[%s409_s3 + $0x60] sm:$0xff] %v201_v31 }
  0x91   :  { %206 = vst [vmem:[%s409_s3 + $0x8] sm:$0xff] %v190_v32  ;;  %v139_v34 = vpop.f32.mrf.mxu2  ;;  %v149_v35 = vpop.f32.mrf.mxu3 }
  0x92   :  { %210 = vst [vmem:[%s409_s3 + $0x28] sm:$0xff] %v194_v33  ;;  %v140_v36 = vadd.f32 %v340_v9, %v139_v34  ;;  %v150_v37 = vadd.f32 %v340_v9, %v149_v35  ;;  %v122_v38 = vpop.f32.mrf.mxu0  ;;  %v132_v39 = vpop.f32.mrf.mxu1 }
  0x93   :  { %v123_v40 = vadd.f32 %v340_v9, %v122_v38  ;;  %v133_v41 = vadd.f32 %v340_v9, %v132_v39 }
  0x94   :  { %vm166_vm7 = vcmp.gt.f32.partialorder %v140_v36, 0.0  ;;  %v182_v42 = vmul.f32 0.1, %v140_v36  ;;  %vm170_vm8 = vcmp.gt.f32.partialorder %v150_v37, 0.0  ;;  %v186_v43 = vmul.f32 0.1, %v150_v37 }
  0x95   :  { %vm159_vm9 = vcmp.gt.f32.partialorder %v123_v40, 0.0  ;;  %v175_v44 = vmul.f32 0.1, %v123_v40  ;;  %vm163_vm10 = vcmp.gt.f32.partialorder %v133_v41, 0.0  ;;  %v179_v45 = vmul.f32 0.1, %v133_v41 }
  0x96   :  { %v198_v46 = vsel %vm166_vm7, %v140_v36, %v182_v42  ;;  %v202_v47 = vsel %vm170_vm8, %v150_v37, %v186_v43 }
  0x97   :  { %214 = vst [vmem:[%s409_s3 + $0x48] sm:$0xff] %v198_v46  ;;  %v191_v48 = vsel %vm159_vm9, %v123_v40, %v175_v44  ;;  %v195_v49 = vsel %vm163_vm10, %v133_v41, %v179_v45 }
  0x98   :  { %218 = vst [vmem:[%s409_s3 + $0x68] sm:$0xff] %v202_v47 }
  0x99   :  { %207 = vst [vmem:[%s409_s3 + $0x10] sm:$0xff] %v191_v48  ;;  %v142_v50 = vpop.f32.mrf.mxu2  ;;  %v152_v51 = vpop.f32.mrf.mxu3 }
  0x9a   :  { %211 = vst [vmem:[%s409_s3 + $0x30] sm:$0xff] %v195_v49  ;;  %v143_v52 = vadd.f32 %v340_v9, %v142_v50  ;;  %v153_v53 = vadd.f32 %v340_v9, %v152_v51  ;;  %v124_v54 = vpop.f32.mrf.mxu0  ;;  %v134_v55 = vpop.f32.mrf.mxu1 }
  0x9b   :  { %v125_v56 = vadd.f32 %v340_v9, %v124_v54  ;;  %v135_v57 = vadd.f32 %v340_v9, %v134_v55 }
  0x9c   :  { %vm167_vm11 = vcmp.gt.f32.partialorder %v143_v52, 0.0  ;;  %v183_v58 = vmul.f32 0.1, %v143_v52  ;;  %vm171_vm12 = vcmp.gt.f32.partialorder %v153_v53, 0.0  ;;  %v187_v59 = vmul.f32 0.1, %v153_v53 }
  0x9d   :  { %vm160_vm13 = vcmp.gt.f32.partialorder %v125_v56, 0.0  ;;  %v176_v60 = vmul.f32 0.1, %v125_v56  ;;  %vm164_vm14 = vcmp.gt.f32.partialorder %v135_v57, 0.0  ;;  %v180_v61 = vmul.f32 0.1, %v135_v57 }
  0x9e   :  { %v199_v62 = vsel %vm167_vm11, %v143_v52, %v183_v58  ;;  %v203_v63 = vsel %vm171_vm12, %v153_v53, %v187_v59 }
  0x9f   :  { %215 = vst [vmem:[%s409_s3 + $0x50] sm:$0xff] %v199_v62  ;;  %v192_v0 = vsel %vm160_vm13, %v125_v56, %v176_v60  ;;  %v196_v1 = vsel %vm164_vm14, %v135_v57, %v180_v61 }
  0xa0   :  { %219 = vst [vmem:[%s409_s3 + $0x70] sm:$0xff] %v203_v63 }
  0xa1   :  { %208 = vst [vmem:[%s409_s3 + $0x18] sm:$0xff] %v192_v0  ;;  %v144_v2 = vpop.f32.mrf.mxu2  ;;  %v154_v3 = vpop.f32.mrf.mxu3 }
  0xa2   :  { %212 = vst [vmem:[%s409_s3 + $0x38] sm:$0xff] %v196_v1  ;;  %v145_v4 = vadd.f32 %v340_v9, %v144_v2  ;;  %v155_v5 = vadd.f32 %v340_v9, %v154_v3 }
  0xa4   :  { %vm168_vm15 = vcmp.gt.f32.partialorder %v145_v4, 0.0  ;;  %v184_v6 = vmul.f32 0.1, %v145_v4  ;;  %vm172_vm0 = vcmp.gt.f32.partialorder %v155_v5, 0.0  ;;  %v188_v7 = vmul.f32 0.1, %v155_v5 }
  0xa6   :  { %v200_v8 = vsel %vm168_vm15, %v145_v4, %v184_v6  ;;  %v204_v10 = vsel %vm172_vm0, %v155_v5, %v188_v7 }
  0xa7   :  { %216 = vst [vmem:[%s409_s3 + $0x58] sm:$0xff] %v200_v8 }
  0xa8   :  { %220 = vst [vmem:[%s409_s3 + $0x78] sm:$0xff] %v204_v10 }

// kernel: _lambda_.11
= control target key start
LH: loop header
LB: loop body
LE: loop exit
PB: predicated region body
PF: predicated region fallthrough
CT: control target
= control target key end

     0   :  { %vm136_vm0 = vcmask 1043456   ;;  %vm111_vm1 = vcmask 588800   ;;  %s477_s1 = inlined_call_operand.vmem [shape: bf16[72,128], index: 1, kind: input, shape index: {}]   ;;  %s478_s2 = inlined_call_operand.vmem [shape: f32[1,128], index: 2, kind: input, shape index: {}]   ;;  %s479_s0 = inlined_call_operand.vmem [shape: bf16[128,72], index: 0, kind: input, shape index: {}]   ;;  %s480_s3 = inlined_call_operand.vmem [shape: f32[128,128], index: 3, kind: output, shape index: {}]  }
   0x1   :  { %v39_v0 = vld [vmem:[%s477_s1 + $0x20] sm:$0xf]  ;;  %v324_v4 = vld [vmem:[%s477_s1 + $0x18] sm:$0xff]  ;;  %v323_v5 = vld [vmem:[%s477_s1 + $0x10] sm:$0xff] }
   0x2   :  { %v101_v1 = vunpack.c.l.b16 %v39_v0  ;;  %v322_v6 = vld [vmem:[%s477_s1 + $0x8] sm:$0xff]  ;;  %v321_v7 = vld [vmem:[%s477_s1] sm:$0xff]  ;;  %v315_v9 = vld [vmem:[%s479_s0 + $0x10] sm:$0xff] }
   0x3   :  { %v313_v8 = vld [vmem:[%s479_s0] sm:$0xff]  ;;  %v319_v11 = vld [vmem:[%s479_s0 + $0x30] sm:$0xff]  ;;  %v314_v12 = vld [vmem:[%s479_s0 + $0x8] sm:$0xff] }
   0x4   :  { %v106_v2 = vpack.c.b16 %v101_v1, %v101_v1  ;;  %v317_v10 = vld [vmem:[%s479_s0 + $0x20] sm:$0xff]  ;;  %v316_v13 = vld [vmem:[%s479_s0 + $0x18] sm:$0xff]  ;;  %v318_v14 = vld [vmem:[%s479_s0 + $0x28] sm:$0xff] }
   0x5   :  { %v320_v15 = vld [vmem:[%s479_s0 + $0x38] sm:$0xff]  ;;  %v411_v16 = vld [vmem:[%s478_s2] ss:$0 sm:$0xff] }
   0x6   :  { %v138_v3 = vsel %vm136_vm0, %v106_v2, 0 }
   0x7   :  { %143 = vmatpush.bf16.msra.mxu0 %v138_v3  ;;  %325 = vmatpush.bf16.msra.mxu1 %v138_v3 }
   0x8   :  { %326 = vmatpush.bf16.msra.mxu2 %v138_v3  ;;  %327 = vmatpush.bf16.msra.mxu3 %v138_v3 }
   0xb   :  { %144 = vmatpush.bf16.msra.mxu0 %v324_v4  ;;  %328 = vmatpush.bf16.msra.mxu1 %v324_v4 }
   0xc   :  { %329 = vmatpush.bf16.msra.mxu2 %v324_v4  ;;  %330 = vmatpush.bf16.msra.mxu3 %v324_v4 }
   0xf   :  { %145 = vmatpush.bf16.msra.mxu0 %v323_v5  ;;  %331 = vmatpush.bf16.msra.mxu1 %v323_v5 }
  0x10   :  { %332 = vmatpush.bf16.msra.mxu2 %v323_v5  ;;  %333 = vmatpush.bf16.msra.mxu3 %v323_v5 }
  0x13   :  { %146 = vmatpush.bf16.msra.mxu0 %v322_v6  ;;  %334 = vmatpush.bf16.msra.mxu1 %v322_v6 }
  0x14   :  { %335 = vmatpush.bf16.msra.mxu2 %v322_v6  ;;  %336 = vmatpush.bf16.msra.mxu3 %v322_v6 }
  0x17   :  { %147 = vmatpush.bf16.msra.mxu0 %v321_v7  ;;  %337 = vmatpush.bf16.msra.mxu1 %v321_v7 }
  0x18   :  { %338 = vmatpush.bf16.msra.mxu2 %v321_v7  ;;  %339 = vmatpush.bf16.msra.mxu3 %v321_v7 }
  0x1a   :  { %305 = vmatmul.msk.bf16.vlgmr.msra.gmra.mxu0 %vm111_vm1, %v313_v8  ;;  %307 = vmatmul.msk.bf16.vlgmr.msra.gmra.mxu1 %vm111_vm1, %v315_v9 }
  0x1b   :  { %309 = vmatmul.msk.bf16.vlgmr.msra.gmra.mxu2 %vm111_vm1, %v317_v10  ;;  %311 = vmatmul.msk.bf16.vlgmr.msra.gmra.mxu3 %vm111_vm1, %v319_v11 }
  0x2a   :  { %306 = vmatmul.msk.bf16.gmra.mxu0 %vm111_vm1, %v314_v12  ;;  %308 = vmatmul.msk.bf16.gmra.mxu1 %vm111_vm1, %v316_v13 }
  0x2b   :  { %310 = vmatmul.msk.bf16.gmra.mxu2 %vm111_vm1, %v318_v14  ;;  %312 = vmatmul.msk.bf16.gmra.mxu3 %vm111_vm1, %v320_v15 }
  0x97   :  { %v149_v17 = vpop.f32.mrf.mxu0  ;;  %v159_v18 = vpop.f32.mrf.mxu1 }
  0x98   :  { %v150_v19 = vadd.f32 %v411_v16, %v149_v17  ;;  %v160_v20 = vadd.f32 %v411_v16, %v159_v18 }
  0x9a   :  { %vm189_vm2 = vcmp.gt.f32.partialorder %v150_v19, 0.0  ;;  %v205_v21 = vmul.f32 0.1, %v150_v19  ;;  %vm193_vm3 = vcmp.gt.f32.partialorder %v160_v20, 0.0  ;;  %v209_v22 = vmul.f32 0.1, %v160_v20 }
  0x9c   :  { %v221_v23 = vsel %vm189_vm2, %v150_v19, %v205_v21  ;;  %v225_v24 = vsel %vm193_vm3, %v160_v20, %v209_v22 }
  0x9d   :  { %237 = vst [vmem:[%s480_s3] sm:$0xff] %v221_v23 }
  0x9e   :  { %241 = vst [vmem:[%s480_s3 + $0x20] sm:$0xff] %v225_v24  ;;  %v169_v25 = vpop.f32.mrf.mxu2  ;;  %v179_v26 = vpop.f32.mrf.mxu3 }
  0x9f   :  { %v170_v27 = vadd.f32 %v411_v16, %v169_v25  ;;  %v180_v28 = vadd.f32 %v411_v16, %v179_v26  ;;  %v151_v29 = vpop.f32.mrf.mxu0  ;;  %v161_v30 = vpop.f32.mrf.mxu1 }
  0xa0   :  { %v152_v31 = vadd.f32 %v411_v16, %v151_v29  ;;  %v162_v32 = vadd.f32 %v411_v16, %v161_v30 }
  0xa1   :  { %vm197_vm4 = vcmp.gt.f32.partialorder %v170_v27, 0.0  ;;  %v213_v33 = vmul.f32 0.1, %v170_v27  ;;  %vm201_vm5 = vcmp.gt.f32.partialorder %v180_v28, 0.0  ;;  %v217_v34 = vmul.f32 0.1, %v180_v28 }
  0xa2   :  { %vm190_vm6 = vcmp.gt.f32.partialorder %v152_v31, 0.0  ;;  %v206_v35 = vmul.f32 0.1, %v152_v31  ;;  %vm194_vm7 = vcmp.gt.f32.partialorder %v162_v32, 0.0  ;;  %v210_v36 = vmul.f32 0.1, %v162_v32 }
  0xa3   :  { %v229_v37 = vsel %vm197_vm4, %v170_v27, %v213_v33  ;;  %v233_v38 = vsel %vm201_vm5, %v180_v28, %v217_v34 }
  0xa4   :  { %245 = vst [vmem:[%s480_s3 + $0x40] sm:$0xff] %v229_v37  ;;  %v222_v39 = vsel %vm190_vm6, %v152_v31, %v206_v35  ;;  %v226_v40 = vsel %vm194_vm7, %v162_v32, %v210_v36 }
  0xa5   :  { %249 = vst [vmem:[%s480_s3 + $0x60] sm:$0xff] %v233_v38 }
  0xa6   :  { %238 = vst [vmem:[%s480_s3 + $0x8] sm:$0xff] %v222_v39  ;;  %v171_v41 = vpop.f32.mrf.mxu2  ;;  %v181_v42 = vpop.f32.mrf.mxu3 }
  0xa7   :  { %242 = vst [vmem:[%s480_s3 + $0x28] sm:$0xff] %v226_v40  ;;  %v172_v43 = vadd.f32 %v411_v16, %v171_v41  ;;  %v182_v44 = vadd.f32 %v411_v16, %v181_v42  ;;  %v154_v45 = vpop.f32.mrf.mxu0  ;;  %v164_v46 = vpop.f32.mrf.mxu1 }
  0xa8   :  { %v155_v47 = vadd.f32 %v411_v16, %v154_v45  ;;  %v165_v48 = vadd.f32 %v411_v16, %v164_v46 }
  0xa9   :  { %vm198_vm8 = vcmp.gt.f32.partialorder %v172_v43, 0.0  ;;  %v214_v49 = vmul.f32 0.1, %v172_v43  ;;  %vm202_vm9 = vcmp.gt.f32.partialorder %v182_v44, 0.0  ;;  %v218_v50 = vmul.f32 0.1, %v182_v44 }
  0xaa   :  { %vm191_vm10 = vcmp.gt.f32.partialorder %v155_v47, 0.0  ;;  %v207_v51 = vmul.f32 0.1, %v155_v47  ;;  %vm195_vm11 = vcmp.gt.f32.partialorder %v165_v48, 0.0  ;;  %v211_v52 = vmul.f32 0.1, %v165_v48 }
  0xab   :  { %v230_v53 = vsel %vm198_vm8, %v172_v43, %v214_v49  ;;  %v234_v54 = vsel %vm202_vm9, %v182_v44, %v218_v50 }
  0xac   :  { %246 = vst [vmem:[%s480_s3 + $0x48] sm:$0xff] %v230_v53  ;;  %v223_v55 = vsel %vm191_vm10, %v155_v47, %v207_v51  ;;  %v227_v56 = vsel %vm195_vm11, %v165_v48, %v211_v52 }
  0xad   :  { %250 = vst [vmem:[%s480_s3 + $0x68] sm:$0xff] %v234_v54 }
  0xae   :  { %239 = vst [vmem:[%s480_s3 + $0x10] sm:$0xff] %v223_v55  ;;  %v174_v57 = vpop.f32.mrf.mxu2  ;;  %v184_v58 = vpop.f32.mrf.mxu3 }
  0xaf   :  { %243 = vst [vmem:[%s480_s3 + $0x30] sm:$0xff] %v227_v56  ;;  %v175_v59 = vadd.f32 %v411_v16, %v174_v57  ;;  %v185_v60 = vadd.f32 %v411_v16, %v184_v58  ;;  %v156_v61 = vpop.f32.mrf.mxu0  ;;  %v166_v62 = vpop.f32.mrf.mxu1 }
  0xb0   :  { %v157_v63 = vadd.f32 %v411_v16, %v156_v61  ;;  %v167_v0 = vadd.f32 %v411_v16, %v166_v62 }
  0xb1   :  { %vm199_vm12 = vcmp.gt.f32.partialorder %v175_v59, 0.0  ;;  %v215_v1 = vmul.f32 0.1, %v175_v59  ;;  %vm203_vm13 = vcmp.gt.f32.partialorder %v185_v60, 0.0  ;;  %v219_v2 = vmul.f32 0.1, %v185_v60 }
  0xb2   :  { %vm192_vm14 = vcmp.gt.f32.partialorder %v157_v63, 0.0  ;;  %v208_v3 = vmul.f32 0.1, %v157_v63  ;;  %vm196_vm15 = vcmp.gt.f32.partialorder %v167_v0, 0.0  ;;  %v212_v4 = vmul.f32 0.1, %v167_v0 }
  0xb3   :  { %v231_v5 = vsel %vm199_vm12, %v175_v59, %v215_v1  ;;  %v235_v6 = vsel %vm203_vm13, %v185_v60, %v219_v2 }
  0xb4   :  { %247 = vst [vmem:[%s480_s3 + $0x50] sm:$0xff] %v231_v5  ;;  %v224_v7 = vsel %vm192_vm14, %v157_v63, %v208_v3  ;;  %v228_v8 = vsel %vm196_vm15, %v167_v0, %v212_v4 }
  0xb5   :  { %251 = vst [vmem:[%s480_s3 + $0x70] sm:$0xff] %v235_v6 }
  0xb6   :  { %240 = vst [vmem:[%s480_s3 + $0x18] sm:$0xff] %v224_v7  ;;  %v176_v9 = vpop.f32.mrf.mxu2  ;;  %v186_v10 = vpop.f32.mrf.mxu3 }
  0xb7   :  { %244 = vst [vmem:[%s480_s3 + $0x38] sm:$0xff] %v228_v8  ;;  %v177_v11 = vadd.f32 %v411_v16, %v176_v9  ;;  %v187_v12 = vadd.f32 %v411_v16, %v186_v10 }
  0xb9   :  { %vm200_vm0 = vcmp.gt.f32.partialorder %v177_v11, 0.0  ;;  %v216_v13 = vmul.f32 0.1, %v177_v11  ;;  %vm204_vm1 = vcmp.gt.f32.partialorder %v187_v12, 0.0  ;;  %v220_v14 = vmul.f32 0.1, %v187_v12 }
  0xbb   :  { %v232_v15 = vsel %vm200_vm0, %v177_v11, %v216_v13  ;;  %v236_v17 = vsel %vm204_vm1, %v187_v12, %v220_v14 }
  0xbc   :  { %248 = vst [vmem:[%s480_s3 + $0x58] sm:$0xff] %v232_v15 }
  0xbd   :  { %252 = vst [vmem:[%s480_s3 + $0x78] sm:$0xff] %v236_v17 }

// kernel: _lambda_.13
= control target key start
LH: loop header
LB: loop body
LE: loop exit
PB: predicated region body
PF: predicated region fallthrough
CT: control target
= control target key end

     0   :  { %s56_s0 = inlined_call_operand.vmem [shape: f32[16,128], index: 0, kind: input, shape index: {}]   ;;  %s57_s1 = inlined_call_operand.vmem [shape: f32[16,128], index: 1, kind: input, shape index: {}]   ;;  %s58_s2 = inlined_call_operand.vmem [shape: f32[16,128], index: 2, kind: output, shape index: {}]  }
   0x1   :  { %v11_v0 = vld [vmem:[%s56_s0] sm:$0xff]  ;;  %v12_v2 = vld [vmem:[%s56_s0 + $0x8] sm:$0xff] }
   0x2   :  { %v13_v1 = vld [vmem:[%s57_s1] sm:$0xff]  ;;  %v14_v4 = vld [vmem:[%s57_s1 + $0x8] sm:$0xff] }
   0x3   :  { %v15_v3 = vadd.f32 %v13_v1, %v11_v0  ;;  %v16_v5 = vadd.f32 %v14_v4, %v12_v2 }
   0x5   :  { %17 = vst [vmem:[%s58_s2] sm:$0xff] %v15_v3 }
   0x6   :  { %18 = vst [vmem:[%s58_s2 + $0x8] sm:$0xff] %v16_v5 }

// kernel: _lambda_.14
= control target key start
LH: loop header
LB: loop body
LE: loop exit
PB: predicated region body
PF: predicated region fallthrough
CT: control target
= control target key end

     0   :  { %vm113_vm0 = vcmask 130048   ;;  %s342_s1 = inlined_call_operand.vmem [shape: bf16[144,128], index: 1, kind: input, shape index: {}]   ;;  %s343_s0 = inlined_call_operand.vmem [shape: bf16[32,144], index: 0, kind: input, shape index: {}]   ;;  %s344_s2 = inlined_call_operand.vmem [shape: f32[1,128], index: 2, kind: input, shape index: {}]   ;;  %s345_s3 = inlined_call_operand.vmem [shape: f32[32,128], index: 3, kind: output, shape index: {}]  }
   0x1   :  { %v243_v0 = vld [vmem:[%s342_s1 + $0x38] sm:$0xff]  ;;  %v244_v1 = vld [vmem:[%s342_s1 + $0x40] sm:$0xff]  ;;  %v242_v3 = vld [vmem:[%s342_s1 + $0x30] sm:$0xff] }
   0x2   :  { %v232_v2 = vld [vmem:[%s343_s0 + $0x4] sm:$0xf]  ;;  %120 = vmatpush.bf16.msra.mxu0 %v243_v0  ;;  %245 = vmatpush.bf16.msra.mxu2 %v243_v0  ;;  %v182_v4 = vld [vmem:[%s343_s0 + $0x8] sm:$0xf0]  ;;  %v239_v8 = vld [vmem:[%s342_s1 + $0x18] sm:$0xff] }
   0x3   :  { %146 = vmatpush.bf16.msra.mxu1 %v244_v1  ;;  %v185_v5 = vor.u32 %v232_v2, %v182_v4  ;;  %v241_v6 = vld [vmem:[%s342_s1 + $0x28] sm:$0xff]  ;;  %v240_v7 = vld [vmem:[%s342_s1 + $0x20] sm:$0xff]  ;;  %v234_v9 = vld [vmem:[%s343_s0 + $0x14] sm:$0xf] }
   0x4   :  { %v190_v10 = vld [vmem:[%s343_s0 + $0x18] sm:$0xf0]  ;;  %v238_v11 = vld [vmem:[%s342_s1 + $0x10] sm:$0xff]  ;;  %v237_v13 = vld [vmem:[%s342_s1 + $0x8] sm:$0xff] }
   0x5   :  { %v193_v12 = vor.u32 %v234_v9, %v190_v10  ;;  %v236_v14 = vld [vmem:[%s342_s1] sm:$0xff]  ;;  %v233_v16 = vld [vmem:[%s343_s0 + $0x4] sm:$0xf0]  ;;  %v188_v17 = vld [vmem:[%s343_s0 + $0x10] sm:$0xf] }
   0x6   :  { %121 = vmatpush.bf16.msra.mxu0 %v242_v3  ;;  %246 = vmatpush.bf16.msra.mxu2 %v242_v3  ;;  %v180_v15 = vld [vmem:[%s343_s0] sm:$0xf]  ;;  %v235_v18 = vld [vmem:[%s343_s0 + $0x14] sm:$0xf0] }
   0x7   :  { %230 = vmatmul.msk.bf16.vlgmr.msra.gmra.mxu1 %vm113_vm0, %v185_v5  ;;  %v181_v19 = vor.u32 %v233_v16, %v180_v15  ;;  %v189_v20 = vor.u32 %v235_v18, %v188_v17  ;;  %v253_v23 = vld [vmem:[%s344_s2] ss:$0 sm:$0xff] }
   0xa   :  { %122 = vmatpush.bf16.msra.mxu0 %v241_v6  ;;  %247 = vmatpush.bf16.msra.mxu2 %v241_v6 }
   0xe   :  { %123 = vmatpush.bf16.msra.mxu0 %v240_v7  ;;  %248 = vmatpush.bf16.msra.mxu2 %v240_v7 }
  0x12   :  { %124 = vmatpush.bf16.msra.mxu0 %v239_v8  ;;  %249 = vmatpush.bf16.msra.mxu2 %v239_v8 }
  0x16   :  { %125 = vmatpush.bf16.msra.mxu0 %v238_v11  ;;  %250 = vmatpush.bf16.msra.mxu2 %v238_v11 }
  0x17   :  { %231 = vmatmul.msk.bf16.gmra.mxu1 %vm113_vm0, %v193_v12 }
  0x1a   :  { %126 = vmatpush.bf16.msra.mxu0 %v237_v13  ;;  %251 = vmatpush.bf16.msra.mxu2 %v237_v13 }
  0x1e   :  { %127 = vmatpush.bf16.msra.mxu0 %v236_v14  ;;  %252 = vmatpush.bf16.msra.mxu2 %v236_v14 }
  0x21   :  { %128 = vmatmul.bf16.vlgmr.msra.gmra.mxu0 %v181_v19  ;;  %133 = vmatmul.bf16.vlgmr.msra.gmra.mxu2 %v189_v20 }
  0x84   :  { %v148_v21 = vpop.f32.mrf.mxu1 }
  0x8c   :  { %v150_v22 = vpop.f32.mrf.mxu1 }
  0x94   :  { %v153_v28 = vpop.f32.mrf.mxu1 }
  0x9c   :  { %v155_v42 = vpop.f32.mrf.mxu1 }
  0x9e   :  { %v129_v24 = vpop.f32.mrf.mxu0 }
  0x9f   :  { %v130_v25 = vadd.f32 %v253_v23, %v129_v24 }
  0xa1   :  { %v149_v26 = vadd.f32 %v148_v21, %v130_v25 }
  0xa3   :  { %vm158_vm1 = vcmp.gt.f32.partialorder %v149_v26, 0.0  ;;  %v162_v27 = vmul.f32 0.1, %v149_v26 }
  0xa4   :  { %v134_v29 = vpop.f32.mrf.mxu2 }
  0xa5   :  { %v166_v30 = vsel %vm158_vm1, %v149_v26, %v162_v27  ;;  %v135_v31 = vadd.f32 %v253_v23, %v134_v29 }
  0xa6   :  { %170 = vst [vmem:[%s345_s3] sm:$0xff] %v166_v30  ;;  %v131_v32 = vpop.f32.mrf.mxu0 }
  0xa7   :  { %v154_v33 = vadd.f32 %v153_v28, %v135_v31  ;;  %v132_v34 = vadd.f32 %v253_v23, %v131_v32 }
  0xa9   :  { %vm160_vm2 = vcmp.gt.f32.partialorder %v154_v33, 0.0  ;;  %v164_v35 = vmul.f32 0.1, %v154_v33  ;;  %v151_v36 = vadd.f32 %v150_v22, %v132_v34 }
  0xab   :  { %v168_v37 = vsel %vm160_vm2, %v154_v33, %v164_v35  ;;  %vm159_vm3 = vcmp.gt.f32.partialorder %v151_v36, 0.0  ;;  %v163_v38 = vmul.f32 0.1, %v151_v36 }
  0xac   :  { %172 = vst [vmem:[%s345_s3 + $0x10] sm:$0xff] %v168_v37  ;;  %v136_v39 = vpop.f32.mrf.mxu2 }
  0xad   :  { %v167_v40 = vsel %vm159_vm3, %v151_v36, %v163_v38  ;;  %v137_v41 = vadd.f32 %v253_v23, %v136_v39 }
  0xae   :  { %171 = vst [vmem:[%s345_s3 + $0x8] sm:$0xff] %v167_v40 }
  0xaf   :  { %v156_v43 = vadd.f32 %v155_v42, %v137_v41 }
  0xb1   :  { %vm161_vm4 = vcmp.gt.f32.partialorder %v156_v43, 0.0  ;;  %v165_v44 = vmul.f32 0.1, %v156_v43 }
  0xb3   :  { %v169_v45 = vsel %vm161_vm4, %v156_v43, %v165_v44 }
  0xb4   :  { %173 = vst [vmem:[%s345_s3 + $0x18] sm:$0xff] %v169_v45 }

// kernel: _lambda_.16
= control target key start
LH: loop header
LB: loop body
LE: loop exit
PB: predicated region body
PF: predicated region fallthrough
CT: control target
= control target key end

     0   :  { %vm49_vm0 = vcmask 261120   ;;  %s167_s1 = inlined_call_operand.vmem [shape: bf16[32,128], index: 1, kind: input, shape index: {}]   ;;  %s168_s2 = inlined_call_operand.vmem [shape: f32[1,128], index: 2, kind: input, shape index: {}]   ;;  %s169_s0 = inlined_call_operand.vmem [shape: bf16[32,32], index: 0, kind: input, shape index: {}]   ;;  %s170_s3 = inlined_call_operand.vmem [shape: f32[32,128], index: 3, kind: output, shape index: {}]  }
   0x1   :  { %v116_v0 = vld [vmem:[%s167_s1 + $0x8] sm:$0xff]  ;;  %v115_v1 = vld [vmem:[%s167_s1] sm:$0xff] }
   0x2   :  { %62 = vmatpush.bf16.msra.mxu0 %v116_v0  ;;  %117 = vmatpush.bf16.msra.mxu1 %v116_v0  ;;  %v113_v2 = vld [vmem:[%s169_s0] sm:$0xff]  ;;  %v114_v3 = vld [vmem:[%s169_s0 + $0x8] sm:$0xff] }
   0x3   :  { %v119_v4 = vld [vmem:[%s168_s2] ss:$0 sm:$0xff] }
   0x6   :  { %63 = vmatpush.bf16.msra.mxu0 %v115_v1  ;;  %118 = vmatpush.bf16.msra.mxu1 %v115_v1 }
   0x9   :  { %111 = vmatmul.msk.bf16.vlgmr.msra.gmra.mxu0 %vm49_vm0, %v113_v2  ;;  %112 = vmatmul.msk.bf16.vlgmr.msra.gmra.mxu1 %vm49_vm0, %v114_v3 }
  0x86   :  { %v65_v5 = vpop.f32.mrf.mxu0  ;;  %v70_v6 = vpop.f32.mrf.mxu1 }
  0x87   :  { %v66_v7 = vadd.f32 %v119_v4, %v65_v5  ;;  %v71_v8 = vadd.f32 %v119_v4, %v70_v6 }
  0x89   :  { %vm75_vm1 = vcmp.gt.f32.partialorder %v66_v7, 0.0  ;;  %v79_v9 = vmul.f32 0.1, %v66_v7  ;;  %vm77_vm2 = vcmp.gt.f32.partialorder %v71_v8, 0.0  ;;  %v81_v10 = vmul.f32 0.1, %v71_v8 }
  0x8b   :  { %v83_v11 = vsel %vm75_vm1, %v66_v7, %v79_v9  ;;  %v85_v12 = vsel %vm77_vm2, %v71_v8, %v81_v10 }
  0x8c   :  { %87 = vst [vmem:[%s170_s3] sm:$0xff] %v83_v11 }
  0x8d   :  { %89 = vst [vmem:[%s170_s3 + $0x10] sm:$0xff] %v85_v12 }
  0x8e   :  { %v67_v13 = vpop.f32.mrf.mxu0  ;;  %v72_v14 = vpop.f32.mrf.mxu1 }
  0x8f   :  { %v68_v15 = vadd.f32 %v119_v4, %v67_v13  ;;  %v73_v16 = vadd.f32 %v119_v4, %v72_v14 }
  0x91   :  { %vm76_vm3 = vcmp.gt.f32.partialorder %v68_v15, 0.0  ;;  %v80_v17 = vmul.f32 0.1, %v68_v15  ;;  %vm78_vm4 = vcmp.gt.f32.partialorder %v73_v16, 0.0  ;;  %v82_v18 = vmul.f32 0.1, %v73_v16 }
  0x93   :  { %v84_v19 = vsel %vm76_vm3, %v68_v15, %v80_v17  ;;  %v86_v20 = vsel %vm78_vm4, %v73_v16, %v82_v18 }
  0x94   :  { %88 = vst [vmem:[%s170_s3 + $0x8] sm:$0xff] %v84_v19 }
  0x95   :  { %90 = vst [vmem:[%s170_s3 + $0x18] sm:$0xff] %v86_v20 }

// kernel: _lambda_.15
= control target key start
LH: loop header
LB: loop body
LE: loop exit
PB: predicated region body
PF: predicated region fallthrough
CT: control target
= control target key end

     0   :  { %v352_v1 = vmov 0   ;;  %v353_v4 = vmov 1   ;;  %vm57_vm0 = vcmask 261120   ;;  %s540_s1 = inlined_call_operand.vmem [shape: bf16[32,128], index: 1, kind: input, shape index: {}]   ;;  %s541_s4 = inlined_call_operand.vmem [shape: f32[32,2], index: 4, kind: input, shape index: {}]   ;;  %s542_s2 = inlined_call_operand.vmem [shape: f32[1,128], index: 2, kind: input, shape index: {}]   ;;  %s543_s0 = inlined_call_operand.vmem [shape: bf16[32,32], index: 0, kind: input, shape index: {}]   ;;  %s544_s3 = inlined_call_operand.vmem [shape: f32[4,128], index: 3, kind: input, shape index: {}]   ;;  %s545_s5 = inlined_call_operand.vmem [shape: f32[32,128], index: 5, kind: output, shape index: {0}]   ;;  %s546_s6 = inlined_call_operand.vmem [shape: f32[32,128], index: 6, kind: output, shape index: {1}]  }
   0x1   :  { %v313_v0 = vld [vmem:[%s540_s1 + $0x8] sm:$0xff]  ;;  %319 = vset.pattern.permute.xlu1 %v352_v1  ;;  %318 = vset.pattern.permute.xlu0 %v352_v1  ;;  %v169_v2 = vld [vmem:[%s541_s4 + $0x10] sm:$0xff]  ;;  %v167_v3 = vld [vmem:[%s541_s4] sm:$0xff] }
   0x2   :  { %320 = vset.pattern.permute.xlu2 %v353_v4  ;;  %70 = vmatpush.bf16.msra.mxu0 %v313_v0  ;;  %v312_v5 = vld [vmem:[%s540_s1] sm:$0xff]  ;;  %v311_v7 = vld [vmem:[%s543_s0 + $0x8] sm:$0xff]  ;;  %v170_v8 = vld [vmem:[%s541_s4 + $0x18] sm:$0xff] }
   0x3   :  { %314 = vmatpush.bf16.msra.mxu1 %v313_v0  ;;  %183 = vperm.xlu1 %319, %v169_v2   ;;  %v310_v6 = vld [vmem:[%s543_s0] sm:$0xff]  ;;  %v168_v9 = vld [vmem:[%s541_s4 + $0x8] sm:$0xff] }
   0x4   :  { %173 = vperm.xlu0 %318, %v167_v3   ;;  %198 = vperm.xlu2 %320, %v167_v3   ;;  %v323_v10 = vld [vmem:[%s542_s2] ss:$0 sm:$0xff]  ;;  %v419_v14 = vld [vmem:[%s544_s3 + $0x1] ss:$0 sm:$0xff]  ;;  %v89_v22 = vld [vmem:[%s544_s3 + $0x2] sm:$0x1] }
   0x5   :  { %v87_v23 = vld [vmem:[%s544_s3] sm:$0x1]  ;;  %v326_v39 = vld [vmem:[%s544_s3 + $0x2] ss:$0 sm:$0xff]  ;;  %v88_v43 = vld [vmem:[%s544_s3 + $0x1] sm:$0x1] }
   0x6   :  { %71 = vmatpush.bf16.msra.mxu0 %v312_v5  ;;  %v196_v30 = vsub.f32 %v87_v23, %v89_v22  ;;  %v265_v42 = vsub.f32 1.0, %v87_v23  ;;  %v457_v53 = vld [vmem:[%s544_s3 + $0x3] ss:$0 sm:$0xff] }
   0x7   :  { %315 = vmatpush.bf16.msra.mxu1 %v312_v5 }
   0x8   :  { %v213_v41 = vperm.slane %v196_v30, 0  ;;  %v266_v49 = vsub.f32 %v265_v42, %v88_v43 }
   0x9   :  { %304 = vmatmul.msk.bf16.vlgmr.msra.gmra.mxu0 %vm57_vm0, %v310_v6 }
   0xa   :  { %305 = vmatmul.msk.bf16.vlgmr.msra.gmra.mxu1 %vm57_vm0, %v311_v7 }
   0xb   :  { %188 = vperm.xlu1 %319, %v170_v8  }
   0xc   :  { %178 = vperm.xlu0 %318, %v168_v9   ;;  %202 = vperm.xlu2 %320, %v168_v9  }
  0x13   :  { %322 = vset.pattern.permute.xlu1 %v353_v4 }
  0x14   :  { %321 = vset.pattern.permute.xlu0 %v353_v4  ;;  %210 = vperm.xlu1 %322, %v170_v8  }
  0x15   :  { %206 = vperm.xlu0 %321, %v169_v2   ;;  %v468_v2 = vperm.slane %v266_v49, 0 }
  0x5e   :  { %v199_v21 = vpop.permute.xlu2 %198 }
  0x5f   :  { %v214_v47 = vmul.f32 %v213_v41, %v199_v21 }
  0x66   :  { %v203_v44 = vpop.permute.xlu2 %202 }
  0x67   :  { %v215_v51 = vmul.f32 %v213_v41, %v203_v44 }
  0x75   :  { %v184_v11 = vpop.permute.xlu1 %183 }
  0x76   :  { %v174_v12 = vpop.permute.xlu0 %173  ;;  %v194_v56 = vmul.f32 %v326_v39, %v184_v11 }
  0x77   :  { %v192_v45 = vmul.f32 %v326_v39, %v174_v12 }
  0x79   :  { %v218_v0 = vadd.f32 %v214_v47, %v192_v45 }
  0x7d   :  { %v189_v32 = vpop.permute.xlu1 %188 }
  0x7e   :  { %v179_v31 = vpop.permute.xlu0 %178  ;;  %v464_v62 = vmul.f32 %v326_v39, %v189_v32 }
  0x7f   :  { %v193_v50 = vmul.f32 %v326_v39, %v179_v31 }
  0x81   :  { %v470_v3 = vadd.f32 %v215_v51, %v193_v50 }
  0x86   :  { %v73_v13 = vpop.f32.mrf.mxu0  ;;  %v211_v59 = vpop.permute.xlu1 %210 }
  0x87   :  { %v78_v15 = vpop.f32.mrf.mxu1  ;;  %v74_v16 = vadd.f32 %v323_v10, %v73_v13  ;;  %v207_v54 = vpop.permute.xlu0 %206  ;;  %v473_v8 = vmul.f32 %v213_v41, %v211_v59 }
  0x88   :  { %v79_v17 = vadd.f32 %v323_v10, %v78_v15  ;;  %v216_v4 = vmul.f32 %v213_v41, %v207_v54 }
  0x89   :  { %83 = vst [vmem:[%s545_s5] sm:$0xff] %v74_v16  ;;  %v306_v18 = vmul.f32 -1.442695, %v74_v16  ;;  %v231_v20 = vmul.f32 %v419_v14, %v74_v16 }
  0x8a   :  { %v308_v19 = vmul.f32 -1.442695, %v79_v17  ;;  %85 = vst [vmem:[%s545_s5 + $0x10] sm:$0xff] %v79_v17  ;;  %v233_v25 = vmul.f32 %v419_v14, %v79_v17 }
  0x8b   :  { %328 = vpow2.f32 %v306_v18  ;;  %v235_v24 = vmul.f32 1.442695, %v231_v20  ;;  %v220_v18 = vadd.f32 %v216_v4, %v194_v56 }
  0x8c   :  { %330 = vpow2.f32 %v308_v19  ;;  %v239_v37 = vmul.f32 1.442695, %v233_v25 }
  0x8d   :  { %332 = vpow2.f32 %v235_v24 }
  0x8e   :  { %v75_v26 = vpop.f32.mrf.mxu0 }
  0x8f   :  { %v80_v27 = vpop.f32.mrf.mxu1  ;;  %v76_v28 = vadd.f32 %v323_v10, %v75_v26 }
  0x90   :  { %v81_v29 = vadd.f32 %v323_v10, %v80_v27 }
  0x91   :  { %v329_v33 = vpop.eup %328  ;;  %84 = vst [vmem:[%s545_s5 + $0x8] sm:$0xff] %v76_v28  ;;  %v307_v34 = vmul.f32 -1.442695, %v76_v28  ;;  %v232_v46 = vmul.f32 %v419_v14, %v76_v28 }
  0x92   :  { %v331_v35 = vpop.eup %330  ;;  %v438_v36 = vadd.f32 1.0, %v329_v33  ;;  %86 = vst [vmem:[%s545_s5 + $0x18] sm:$0xff] %v81_v29  ;;  %v309_v40 = vmul.f32 -1.442695, %v81_v29  ;;  %v234_v58 = vmul.f32 %v419_v14, %v81_v29 }
  0x93   :  { %v443_v38 = vadd.f32 1.0, %v331_v35  ;;  %334 = vpow2.f32 %v307_v34  ;;  %v333_v48 = vpop.eup %332  ;;  %v237_v61 = vmul.f32 1.442695, %v232_v46  ;;  %v327_v34 = vld [vmem:[%s544_s3] ss:$0 sm:$0xff] }
  0x94   :  { %336 = vrcp.f32 %v438_v36  ;;  %v244_v6 = vmul.f32 %v333_v48, %v457_v53  ;;  %v241_v11 = vmul.f32 1.442695, %v234_v58  ;;  %v116_v12 = vand.u32 2147483647, %v438_v36 }
  0x95   :  { %338 = vrcp.f32 %v443_v38  ;;  %v118_v13 = vand.u32 2147483648, %v438_v36  ;;  %vm112_vm2 = vweird.f32 %v438_v36  ;;  %vm142_vm3 = vweird.f32 %v443_v38 }
  0x96   :  { %340 = vpow2.f32 %v239_v37  ;;  %v248_v20 = vmul.f32 4.0, %v244_v6  ;;  %v146_v24 = vand.u32 2147483647, %v443_v38  ;;  %v148_v25 = vand.u32 2147483648, %v443_v38 }
  0x97   :  { %342 = vpow2.f32 %v309_v40  ;;  %v119_v23 = vor.u32 1.1754944e-38, %v118_v13  ;;  %vm117_vm6 = vcmp.eq.f32.partialorder %v116_v12, 8.507059e+37 }
  0x98   :  { %v257_v35 = vmul.f32 %v419_v14, %v248_v20  ;;  %vm147_vm9 = vcmp.eq.f32.partialorder %v146_v24, 8.507059e+37  ;;  %v149_v41 = vor.u32 1.1754944e-38, %v148_v25 }
  0x99   :  { %v335_v52 = vpop.eup %334 }
  0x9a   :  { %v337_v55 = vpop.eup %336  ;;  %v459_v57 = vadd.f32 1.0, %v335_v52 }
  0x9b   :  { %v462_v60 = vpop.eup %338  ;;  %v108_v63 = vmul.f32 %v337_v55, %v438_v36  ;;  %vm113_vm1 = vweird.f32 %v337_v55 }
  0x9c   :  { %v341_v1 = vpop.eup %340  ;;  %344 = vrcp.f32 %v459_v57  ;;  %v138_v9 = vmul.f32 %v462_v60, %v443_v38  ;;  %vm114_vm4 = vmor %vm112_vm2, %vm113_vm1  ;;  %vm143_vm5 = vweird.f32 %v462_v60  ;;  %v131_v29 = vand.u32 2147483647, %v459_v57 }
  0x9d   :  { %v343_v5 = vpop.eup %342  ;;  %v109_v7 = vsub.f32 1.0, %v108_v63  ;;  %346 = vpow2.f32 %v237_v61  ;;  %v246_v17 = vmul.f32 %v341_v1, %v457_v53  ;;  %v133_v30 = vand.u32 2147483648, %v459_v57  ;;  %vm144_vm7 = vmor %vm142_vm3, %vm143_vm5 }
  0x9e   :  { %v477_v10 = vadd.f32 1.0, %v343_v5  ;;  %v139_v16 = vsub.f32 1.0, %v138_v9  ;;  %vm127_vm8 = vweird.f32 %v459_v57  ;;  %vm505_vm11 = vcmp.eq.f32.partialorder %v131_v29, 8.507059e+37 }
  0x9f   :  { %v110_v15 = vmul.f32 %v337_v55, %v109_v7  ;;  %v250_v37 = vmul.f32 4.0, %v246_v17  ;;  %v134_v38 = vor.u32 1.1754944e-38, %v133_v30 }
  0xa0   :  { %348 = vrcp.f32 %v477_v10  ;;  %v140_v21 = vmul.f32 %v462_v60, %v139_v16  ;;  %v163_v56 = vand.u32 2147483648, %v477_v10  ;;  %vm157_vm14 = vweird.f32 %v477_v10 }
  0xa1   :  { %v111_v19 = vadd.f32 %v337_v55, %v110_v15  ;;  %350 = vpow2.f32 %v241_v11  ;;  %v259_v9 = vmul.f32 %v419_v14, %v250_v37  ;;  %v221_v11 = vadd.f32 %v473_v8, %v464_v62 }
  0xa2   :  { %v345_v22 = vpop.eup %344  ;;  %v141_v31 = vadd.f32 %v462_v60, %v140_v21 }
  0xa3   :  { %v115_v26 = vsel %vm114_vm4, %v337_v55, %v111_v19  ;;  %v123_v27 = vmul.f32 %v345_v22, %v459_v57  ;;  %v347_v32 = vpop.eup %346  ;;  %vm128_vm10 = vweird.f32 %v345_v22  ;;  %v161_v55 = vand.u32 2147483647, %v477_v10 }
  0xa4   :  { %v120_v28 = vsel %vm117_vm6, %v119_v23, %v115_v26  ;;  %v145_v40 = vsel %vm144_vm7, %v462_v60, %v141_v31  ;;  %v245_v45 = vmul.f32 %v347_v32, %v457_v53  ;;  %vm129_vm13 = vmor %vm127_vm8, %vm128_vm10  ;;  %v164_v57 = vor.u32 1.1754944e-38, %v163_v56 }
  0xa5   :  { %v222_v33 = vadd.f32 %v218_v0, %v120_v28  ;;  %v124_v36 = vsub.f32 1.0, %v123_v27  ;;  %v150_v47 = vsel %vm147_vm9, %v149_v41, %v145_v40  ;;  %v268_v54 = vmul.f32 %v468_v2, %v120_v28 }
  0xa6   :  { %v349_v39 = vpop.eup %348  ;;  %v224_v52 = vadd.f32 %v220_v18, %v150_v47  ;;  %v249_v1 = vmul.f32 4.0, %v245_v45  ;;  %vm162_vm0 = vcmp.eq.f32.partialorder %v161_v55, 8.507059e+37 }
  0xa7   :  { %v226_v42 = vmul.f32 4.0, %v222_v33  ;;  %v153_v43 = vmul.f32 %v349_v39, %v477_v10  ;;  %v125_v44 = vmul.f32 %v345_v22, %v124_v36  ;;  %v351_v48 = vpop.eup %350  ;;  %vm158_vm12 = vweird.f32 %v349_v39 }
  0xa8   :  { %v228_v61 = vmul.f32 4.0, %v224_v52  ;;  %v247_v63 = vmul.f32 %v351_v48, %v457_v53  ;;  %vm159_vm15 = vmor %vm157_vm14, %vm158_vm12  ;;  %v258_v18 = vmul.f32 %v419_v14, %v249_v1 }
  0xa9   :  { %v253_v49 = vmul.f32 %v327_v34, %v226_v42  ;;  %v154_v50 = vsub.f32 1.0, %v153_v43  ;;  %v126_v51 = vadd.f32 %v345_v22, %v125_v44 }
  0xaa   :  { %v255_v7 = vmul.f32 %v327_v34, %v228_v61  ;;  %v251_v16 = vmul.f32 4.0, %v247_v63 }
  0xab   :  { %v261_v58 = vadd.f32 %v257_v35, %v253_v49  ;;  %v155_v59 = vmul.f32 %v349_v39, %v154_v50  ;;  %v130_v60 = vsel %vm129_vm13, %v345_v22, %v126_v51 }
  0xac   :  { %v135_v0 = vsel %vm505_vm11, %v134_v38, %v130_v60  ;;  %v263_v10 = vadd.f32 %v259_v9, %v255_v7  ;;  %v260_v8 = vmul.f32 %v419_v14, %v251_v16 }
  0xad   :  { %v272_v4 = vadd.f32 %v268_v54, %v261_v58  ;;  %v156_v5 = vadd.f32 %v349_v39, %v155_v59  ;;  %v223_v6 = vadd.f32 %v470_v3, %v135_v0  ;;  %v270_v3 = vmul.f32 %v468_v2, %v150_v47 }
  0xae   :  { %v269_v22 = vmul.f32 %v468_v2, %v135_v0 }
  0xaf   :  { %276 = vst [vmem:[%s546_s6] sm:$0xff] %v272_v4  ;;  %v160_v53 = vsel %vm159_vm15, %v349_v39, %v156_v5  ;;  %v227_v12 = vmul.f32 4.0, %v223_v6  ;;  %v274_v19 = vadd.f32 %v270_v3, %v263_v10 }
  0xb0   :  { %v165_v13 = vsel %vm162_vm0, %v164_v57, %v160_v53 }
  0xb1   :  { %v225_v15 = vadd.f32 %v221_v11, %v165_v13  ;;  %v254_v17 = vmul.f32 %v327_v34, %v227_v12  ;;  %278 = vst [vmem:[%s546_s6 + $0x10] sm:$0xff] %v274_v19  ;;  %v271_v25 = vmul.f32 %v468_v2, %v165_v13 }
  0xb3   :  { %v229_v20 = vmul.f32 4.0, %v225_v15  ;;  %v262_v21 = vadd.f32 %v258_v18, %v254_v17 }
  0xb5   :  { %v256_v62 = vmul.f32 %v327_v34, %v229_v20  ;;  %v273_v23 = vadd.f32 %v269_v22, %v262_v21 }
  0xb7   :  { %v264_v24 = vadd.f32 %v260_v8, %v256_v62  ;;  %277 = vst [vmem:[%s546_s6 + $0x8] sm:$0xff] %v273_v23 }
  0xb9   :  { %v275_v26 = vadd.f32 %v271_v25, %v264_v24 }
  0xbb   :  { %279 = vst [vmem:[%s546_s6 + $0x18] sm:$0xff] %v275_v26 }

// kernel: _lambda_.17
= control target key start
LH: loop header
LB: loop body
LE: loop exit
PB: predicated region body
PF: predicated region fallthrough
CT: control target
= control target key end

     0   :  { %v1117_v0 = vmov 0   ;;  %vm120_vm0 = vcmask 1043456   ;;  %vm95_vm1 = vcmask 195584   ;;  %v1118_v30 = vmov 1   ;;  %s1877_s4 = inlined_call_operand.vmem [shape: f32[128,2], index: 4, kind: input, shape index: {}]   ;;  %s1878_s1 = inlined_call_operand.vmem [shape: bf16[24,128], index: 1, kind: input, shape index: {}]   ;;  %s1879_s0 = inlined_call_operand.vmem [shape: bf16[128,24], index: 0, kind: input, shape index: {}]   ;;  %s1880_s3 = inlined_call_operand.vmem [shape: f32[4,128], index: 3, kind: input, shape index: {}]   ;;  %s1881_s2 = inlined_call_operand.vmem [shape: f32[1,128], index: 2, kind: input, shape index: {}]   ;;  %s1882_s5 = inlined_call_operand.vmem [shape: f32[128,128], index: 5, kind: output, shape index: {0}]   ;;  %s1883_s6 = inlined_call_operand.vmem [shape: f32[128,128], index: 6, kind: output, shape index: {1}]  }
   0x1   :  { %1009 = vset.pattern.permute.xlu2 %v1117_v0  ;;  %1008 = vset.pattern.permute.xlu1 %v1117_v0  ;;  %v1157_v1 = vld [vmem:[%s1877_s4 + $0x20] sm:$0xff]  ;;  %v1162_v2 = vld [vmem:[%s1877_s4 + $0x10] sm:$0xff]  ;;  %v41_v4 = vld [vmem:[%s1878_s1 + $0x8] sm:$0xf] }
   0x2   :  { %v1167_v3 = vld [vmem:[%s1877_s4] sm:$0xff]  ;;  %1007 = vset.pattern.permute.xlu0 %v1117_v0  ;;  %535 = vperm.xlu2 %1009, %v1157_v1   ;;  %v91_v5 = vunpack.c.l.b16 %v41_v4  ;;  %v1178_v8 = vld [vmem:[%s1877_s4 + $0x28] sm:$0xff]  ;;  %v500_v9 = vld [vmem:[%s1877_s4 + $0x18] sm:$0xff] }
   0x3   :  { %525 = vperm.xlu1 %1008, %v1162_v2   ;;  %515 = vperm.xlu0 %1007, %v1167_v3   ;;  %v498_v10 = vld [vmem:[%s1877_s4 + $0x8] sm:$0xff]  ;;  %v998_v11 = vld [vmem:[%s1878_s1] sm:$0xff]  ;;  %v992_v13 = vld [vmem:[%s1879_s0 + $0x10] sm:$0xff] }
   0x4   :  { %v93_v6 = vpack.c.b16 %v91_v5, %v91_v5  ;;  %v990_v12 = vld [vmem:[%s1879_s0] sm:$0xff]  ;;  %v996_v15 = vld [vmem:[%s1879_s0 + $0x30] sm:$0xff]  ;;  %v504_v17 = vld [vmem:[%s1877_s4 + $0x38] sm:$0xff] }
   0x5   :  { %v994_v14 = vld [vmem:[%s1879_s0 + $0x20] sm:$0xff]  ;;  %v503_v18 = vld [vmem:[%s1877_s4 + $0x30] sm:$0xff]  ;;  %v508_v19 = vld [vmem:[%s1877_s4 + $0x58] sm:$0xff] }
   0x6   :  { %v122_v7 = vsel %vm120_vm0, %v93_v6, 0  ;;  %v505_v16 = vld [vmem:[%s1877_s4 + $0x40] sm:$0xff]  ;;  %v507_v20 = vld [vmem:[%s1877_s4 + $0x50] sm:$0xff]  ;;  %v506_v21 = vld [vmem:[%s1877_s4 + $0x48] sm:$0xff] }
   0x7   :  { %130 = vmatpush.bf16.msra.mxu0 %v122_v7  ;;  %999 = vmatpush.bf16.msra.mxu1 %v122_v7  ;;  %v991_v22 = vld [vmem:[%s1879_s0 + $0x8] sm:$0xff]  ;;  %v993_v23 = vld [vmem:[%s1879_s0 + $0x18] sm:$0xff]  ;;  %v511_v26 = vld [vmem:[%s1877_s4 + $0x70] sm:$0xff] }
   0x8   :  { %1000 = vmatpush.bf16.msra.mxu2 %v122_v7  ;;  %1001 = vmatpush.bf16.msra.mxu3 %v122_v7  ;;  %v995_v24 = vld [vmem:[%s1879_s0 + $0x28] sm:$0xff]  ;;  %v997_v25 = vld [vmem:[%s1879_s0 + $0x38] sm:$0xff]  ;;  %v509_v28 = vld [vmem:[%s1877_s4 + $0x60] sm:$0xff] }
   0x9   :  { %v510_v27 = vld [vmem:[%s1877_s4 + $0x68] sm:$0xff]  ;;  %v512_v29 = vld [vmem:[%s1877_s4 + $0x78] sm:$0xff]  ;;  %v1261_v42 = vld [vmem:[%s1881_s2] ss:$0 sm:$0xff] }
   0xa   :  { %540 = vperm.xlu2 %1009, %v1178_v8   ;;  %v191_v43 = vld [vmem:[%s1880_s3 + $0x2] sm:$0x1]  ;;  %v1269_v44 = vld [vmem:[%s1880_s3 + $0x1] ss:$0 sm:$0xff]  ;;  %v189_v45 = vld [vmem:[%s1880_s3] sm:$0x1] }
   0xb   :  { %530 = vperm.xlu1 %1008, %v500_v9   ;;  %520 = vperm.xlu0 %1007, %v498_v10   ;;  %v610_v51 = vsub.f32 %v189_v45, %v191_v43  ;;  %v1279_v52 = vld [vmem:[%s1880_s3 + $0x2] ss:$0 sm:$0xff]  ;;  %v871_v61 = vsub.f32 1.0, %v189_v45  ;;  %v190_v63 = vld [vmem:[%s1880_s3 + $0x1] sm:$0x1] }
   0xc   :  { %131 = vmatpush.bf16.msra.mxu0 %v998_v11  ;;  %1002 = vmatpush.bf16.msra.mxu1 %v998_v11 }
   0xd   :  { %1003 = vmatpush.bf16.msra.mxu2 %v998_v11  ;;  %1004 = vmatpush.bf16.msra.mxu3 %v998_v11  ;;  %v1289_v60 = vperm.slane %v610_v51, 0 }
   0xf   :  { %966 = vmatmul.msk.bf16.vlgmr.msra.gmra.mxu0 %vm95_vm1, %v990_v12  ;;  %968 = vmatmul.msk.bf16.vlgmr.msra.gmra.mxu1 %vm95_vm1, %v992_v13 }
  0x10   :  { %970 = vmatmul.msk.bf16.vlgmr.msra.gmra.mxu2 %vm95_vm1, %v994_v14  ;;  %972 = vmatmul.msk.bf16.vlgmr.msra.gmra.mxu3 %vm95_vm1, %v996_v15  ;;  %v872_v15 = vsub.f32 %v871_v61, %v190_v63 }
  0x12   :  { %555 = vperm.xlu2 %1009, %v505_v16  }
  0x13   :  { %550 = vperm.xlu1 %1008, %v504_v17   ;;  %545 = vperm.xlu0 %1007, %v503_v18  }
  0x1a   :  { %570 = vperm.xlu2 %1009, %v508_v19  }
  0x1b   :  { %565 = vperm.xlu1 %1008, %v507_v20   ;;  %560 = vperm.xlu0 %1007, %v506_v21  }
  0x1f   :  { %967 = vmatmul.msk.bf16.gmra.mxu0 %vm95_vm1, %v991_v22  ;;  %969 = vmatmul.msk.bf16.gmra.mxu1 %vm95_vm1, %v993_v23 }
  0x20   :  { %971 = vmatmul.msk.bf16.gmra.mxu2 %vm95_vm1, %v995_v24  ;;  %973 = vmatmul.msk.bf16.gmra.mxu3 %vm95_vm1, %v997_v25 }
  0x22   :  { %585 = vperm.xlu2 %1009, %v511_v26  }
  0x23   :  { %580 = vperm.xlu1 %1008, %v510_v27   ;;  %575 = vperm.xlu0 %1007, %v509_v28  }
  0x2a   :  { %1011 = vset.pattern.permute.xlu2 %v1118_v30 }
  0x2b   :  { %1010 = vset.pattern.permute.xlu1 %v1118_v30  ;;  %590 = vperm.xlu0 %1007, %v512_v29  }
  0x2c   :  { %616 = vperm.xlu2 %1011, %v498_v10   ;;  %612 = vperm.xlu1 %1010, %v1167_v3  }
  0x33   :  { %1012 = vset.pattern.permute.xlu0 %v1118_v30 }
  0x34   :  { %628 = vperm.xlu2 %1011, %v1157_v1   ;;  %624 = vperm.xlu1 %1010, %v500_v9  }
  0x35   :  { %620 = vperm.xlu0 %1012, %v1162_v2  }
  0x3c   :  { %636 = vperm.xlu2 %1011, %v503_v18   ;;  %632 = vperm.xlu1 %1010, %v1178_v8  }
  0x3d   :  { %640 = vperm.xlu0 %1012, %v504_v17  }
  0x44   :  { %648 = vperm.xlu2 %1011, %v506_v21   ;;  %644 = vperm.xlu1 %1010, %v505_v16  }
  0x45   :  { %652 = vperm.xlu0 %1012, %v507_v20  }
  0x4c   :  { %660 = vperm.xlu2 %1011, %v509_v28   ;;  %656 = vperm.xlu1 %1010, %v508_v19  }
  0x4d   :  { %664 = vperm.xlu0 %1012, %v510_v27  }
  0x54   :  { %672 = vperm.xlu2 %1011, %v512_v29   ;;  %668 = vperm.xlu1 %1010, %v511_v26  }
  0x5c   :  { %v536_v31 = vpop.permute.xlu2 %535 }
  0x5d   :  { %v598_v0 = vmul.f32 %v1279_v52, %v536_v31 }
  0x64   :  { %v541_v32 = vpop.permute.xlu2 %540 }
  0x65   :  { %v1296_v1 = vmul.f32 %v1279_v52, %v541_v32 }
  0x6c   :  { %v556_v33 = vpop.permute.xlu2 %555 }
  0x6d   :  { %v1299_v2 = vmul.f32 %v1279_v52, %v556_v33  ;;  %v1349_v33 = vld [vmem:[%s1880_s3 + $0x3] ss:$0 sm:$0xff] }
  0x74   :  { %v571_v34 = vpop.permute.xlu2 %570 }
  0x75   :  { %v516_v35 = vpop.permute.xlu0 %515  ;;  %v526_v36 = vpop.permute.xlu1 %525  ;;  %v1302_v3 = vmul.f32 %v1279_v52, %v571_v34 }
  0x76   :  { %v1305_v6 = vmul.f32 %v1279_v52, %v526_v36  ;;  %v1310_v11 = vmul.f32 %v1279_v52, %v516_v35  ;;  %v1353_v35 = vperm.slane %v872_v15, 0 }
  0x7c   :  { %v1256_v38 = vpop.permute.xlu2 %585 }
  0x7d   :  { %v521_v37 = vpop.permute.xlu0 %520  ;;  %v531_v39 = vpop.permute.xlu1 %530 }
  0x7e   :  { %v1319_v19 = vmul.f32 %v1279_v52, %v531_v39  ;;  %v595_v20 = vmul.f32 %v1279_v52, %v521_v37 }
  0x85   :  { %v546_v40 = vpop.permute.xlu0 %545  ;;  %v551_v50 = vpop.permute.xlu1 %550 }
  0x86   :  { %v617_v41 = vpop.permute.xlu2 %616  ;;  %v1323_v21 = vmul.f32 %v1279_v52, %v551_v50  ;;  %v1330_v24 = vmul.f32 %v1279_v52, %v546_v40 }
  0x87   :  { %v677_v14 = vmul.f32 %v1289_v60, %v617_v41 }
  0x89   :  { %v1351_v34 = vadd.f32 %v677_v14, %v595_v20 }
  0x8c   :  { %v133_v46 = vpop.f32.mrf.mxu0  ;;  %v143_v47 = vpop.f32.mrf.mxu1 }
  0x8d   :  { %v134_v48 = vadd.f32 %v1261_v42, %v133_v46  ;;  %v144_v49 = vadd.f32 %v1261_v42, %v143_v47  ;;  %v561_v57 = vpop.permute.xlu0 %560  ;;  %v566_v25 = vpop.permute.xlu1 %565 }
  0x8e   :  { %v629_v62 = vpop.permute.xlu2 %628  ;;  %v1357_v40 = vmul.f32 %v1279_v52, %v566_v25  ;;  %v1360_v41 = vmul.f32 %v1279_v52, %v561_v57 }
  0x8f   :  { %173 = vst [vmem:[%s1882_s5] sm:$0xff] %v134_v48  ;;  %v974_v53 = vmul.f32 -1.442695, %v134_v48  ;;  %v741_v54 = vmul.f32 %v1269_v44, %v134_v48  ;;  %v978_v55 = vmul.f32 -1.442695, %v144_v49  ;;  %v745_v56 = vmul.f32 %v1269_v44, %v144_v49 }
  0x90   :  { %177 = vst [vmem:[%s1882_s5 + $0x20] sm:$0xff] %v144_v49  ;;  %v680_v26 = vmul.f32 %v1289_v60, %v629_v62 }
  0x91   :  { %1018 = vpow2.f32 %v974_v53  ;;  %v757_v58 = vmul.f32 1.442695, %v741_v54  ;;  %v765_v59 = vmul.f32 1.442695, %v745_v56 }
  0x92   :  { %1020 = vpow2.f32 %v978_v55  ;;  %v1362_v47 = vadd.f32 %v680_v26, %v598_v0 }
  0x93   :  { %v153_v4 = vpop.f32.mrf.mxu2  ;;  %v163_v5 = vpop.f32.mrf.mxu3  ;;  %1022 = vpow2.f32 %v757_v58 }
  0x94   :  { %v154_v7 = vadd.f32 %v1261_v42, %v153_v4  ;;  %v164_v8 = vadd.f32 %v1261_v42, %v163_v5  ;;  %v135_v9 = vpop.f32.mrf.mxu0  ;;  %v145_v10 = vpop.f32.mrf.mxu1  ;;  %1024 = vpow2.f32 %v765_v59 }
  0x95   :  { %v136_v12 = vadd.f32 %v1261_v42, %v135_v9  ;;  %v146_v13 = vadd.f32 %v1261_v42, %v145_v10  ;;  %v576_v37 = vpop.permute.xlu0 %575 }
  0x96   :  { %181 = vst [vmem:[%s1882_s5 + $0x40] sm:$0xff] %v154_v7  ;;  %v982_v16 = vmul.f32 -1.442695, %v154_v7  ;;  %v986_v17 = vmul.f32 -1.442695, %v164_v8  ;;  %v749_v27 = vmul.f32 %v1269_v44, %v154_v7  ;;  %v753_v30 = vmul.f32 %v1269_v44, %v164_v8  ;;  %v637_v59 = vpop.permute.xlu2 %636 }
  0x97   :  { %v1019_v18 = vpop.eup %1018  ;;  %185 = vst [vmem:[%s1882_s5 + $0x60] sm:$0xff] %v164_v8  ;;  %v742_v22 = vmul.f32 %v1269_v44, %v136_v12  ;;  %v746_v31 = vmul.f32 %v1269_v44, %v146_v13  ;;  %v975_v36 = vmul.f32 -1.442695, %v136_v12  ;;  %v979_v49 = vmul.f32 -1.442695, %v146_v13 }
  0x98   :  { %v1021_v23 = vpop.eup %1020  ;;  %1026 = vpow2.f32 %v982_v16  ;;  %174 = vst [vmem:[%s1882_s5 + $0x8] sm:$0xff] %v136_v12  ;;  %v1337_v28 = vadd.f32 1.0, %v1019_v18  ;;  %v773_v48 = vmul.f32 1.442695, %v749_v27  ;;  %v781_v51 = vmul.f32 1.442695, %v753_v30 }
  0x99   :  { %v1339_v29 = vadd.f32 1.0, %v1021_v23  ;;  %178 = vst [vmem:[%s1882_s5 + $0x28] sm:$0xff] %v146_v13  ;;  %v1023_v32 = vpop.eup %1022  ;;  %1028 = vpow2.f32 %v986_v17  ;;  %v759_v43 = vmul.f32 1.442695, %v742_v22  ;;  %v1366_v53 = vmul.f32 1.442695, %v746_v31 }
  0x9a   :  { %v1025_v39 = vpop.eup %1024  ;;  %v1370_v56 = vmul.f32 %v1023_v32, %v1349_v33  ;;  %v1374_v58 = vmul.f32 %v1279_v52, %v576_v37  ;;  %v682_v10 = vmul.f32 %v1289_v60, %v637_v59  ;;  %vm262_vm12 = vweird.f32 %v1337_v28 }
  0x9b   :  { %1030 = vrcp.f32 %v1339_v29  ;;  %v155_v45 = vpop.f32.mrf.mxu2  ;;  %v165_v46 = vpop.f32.mrf.mxu3  ;;  %v794_v57 = vmul.f32 %v1025_v39, %v1349_v33  ;;  %v326_v62 = vand.u32 2147483647, %v1339_v29  ;;  %vm322_vm2 = vweird.f32 %v1339_v29 }
  0x9c   :  { %v156_v50 = vadd.f32 %v1261_v42, %v155_v45  ;;  %1032 = vrcp.f32 %v1337_v28  ;;  %v166_v54 = vadd.f32 %v1261_v42, %v165_v46  ;;  %v138_v61 = vpop.f32.mrf.mxu0  ;;  %v148_v4 = vpop.f32.mrf.mxu1  ;;  %v328_v7 = vand.u32 2147483648, %v1339_v29 }
  0x9d   :  { %1034 = vpow2.f32 %v975_v36  ;;  %v139_v13 = vadd.f32 %v1261_v42, %v138_v61  ;;  %v149_v16 = vadd.f32 %v1261_v42, %v148_v4  ;;  %vm1394_vm3 = vcmp.eq.f32.partialorder %v326_v62, 8.507059e+37 }
  0x9e   :  { %v1027_v55 = vpop.eup %1026  ;;  %182 = vst [vmem:[%s1882_s5 + $0x48] sm:$0xff] %v156_v50  ;;  %1036 = vpow2.f32 %v759_v43  ;;  %v750_v0 = vmul.f32 %v1269_v44, %v156_v50  ;;  %v983_v8 = vmul.f32 -1.442695, %v156_v50  ;;  %v987_v15 = vmul.f32 -1.442695, %v166_v54  ;;  %v649_v18 = vpop.permute.xlu2 %648 }
  0x9f   :  { %v1380_v63 = vadd.f32 1.0, %v1027_v55  ;;  %186 = vst [vmem:[%s1882_s5 + $0x68] sm:$0xff] %v166_v54  ;;  %v1029_v5 = vpop.eup %1028  ;;  %1038 = vpow2.f32 %v773_v48  ;;  %v810_v20 = vmul.f32 2.0, %v794_v57  ;;  %v754_v22 = vmul.f32 %v1269_v44, %v166_v54 }
  0xa0   :  { %1040 = vpow2.f32 %v979_v49  ;;  %v775_v12 = vmul.f32 1.442695, %v750_v0  ;;  %175 = vst [vmem:[%s1882_s5 + $0x10] sm:$0xff] %v139_v13  ;;  %v329_v26 = vor.u32 1.1754944e-38, %v328_v7  ;;  %v1403_v27 = vadd.f32 1.0, %v1029_v5  ;;  %v591_v7 = vpop.permute.xlu0 %590 }
  0xa1   :  { %v1031_v9 = vpop.eup %1030  ;;  %1042 = vpow2.f32 %v781_v51  ;;  %179 = vst [vmem:[%s1882_s5 + $0x30] sm:$0xff] %v149_v16  ;;  %v1411_v32 = vadd.f32 %v682_v10, %v1330_v24  ;;  %v743_v36 = vmul.f32 %v1269_v44, %v139_v13  ;;  %v976_v43 = vmul.f32 -1.442695, %v139_v13 }
  0xa2   :  { %v318_v14 = vmul.f32 %v1031_v9, %v1339_v29  ;;  %v1392_v17 = vpop.eup %1032  ;;  %1044 = vrcp.f32 %v1380_v63  ;;  %vm323_vm4 = vweird.f32 %v1031_v9  ;;  %v843_v46 = vmul.f32 %v1269_v44, %v810_v20 }
  0xa3   :  { %v1035_v23 = vpop.eup %1034  ;;  %1046 = vpow2.f32 %v983_v8  ;;  %v783_v49 = vmul.f32 1.442695, %v754_v22  ;;  %v980_v24 = vmul.f32 -1.442695, %v149_v16  ;;  %v747_v54 = vmul.f32 %v1269_v44, %v149_v16  ;;  %vm324_vm5 = vmor %vm322_vm2, %vm323_vm4 }
  0xa4   :  { %v319_v25 = vsub.f32 1.0, %v318_v14  ;;  %v1037_v30 = vpop.eup %1036  ;;  %v1408_v31 = vadd.f32 1.0, %v1035_v23  ;;  %1048 = vpow2.f32 %v775_v12  ;;  %v761_v61 = vmul.f32 1.442695, %v743_v36 }
  0xa5   :  { %v1039_v37 = vpop.eup %1038  ;;  %1050 = vpow2.f32 %v987_v15  ;;  %v791_v48 = vmul.f32 %v1037_v30, %v1349_v33  ;;  %v1444_v15 = vpop.permute.xlu1 %580  ;;  %v769_v16 = vmul.f32 1.442695, %v747_v54  ;;  %v1450_v23 = vmul.f32 %v1279_v52, %v591_v7 }
  0xa6   :  { %v320_v39 = vmul.f32 %v1031_v9, %v319_v25  ;;  %v1041_v45 = vpop.eup %1040  ;;  %1052 = vrcp.f32 %v1408_v31  ;;  %v1424_v57 = vmul.f32 %v1039_v37, %v1349_v33  ;;  %v281_v59 = vand.u32 2147483647, %v1408_v31 }
  0xa7   :  { %v1043_v50 = vpop.eup %1042  ;;  %1054 = vrcp.f32 %v1403_v27  ;;  %v283_v4 = vand.u32 2147483648, %v1408_v31  ;;  %v1429_v5 = vadd.f32 1.0, %v1041_v45  ;;  %v807_v10 = vmul.f32 2.0, %v791_v48 }
  0xa8   :  { %v321_v51 = vadd.f32 %v1031_v9, %v320_v39  ;;  %v1419_v55 = vpop.eup %1044  ;;  %1056 = vpow2.f32 %v1366_v53  ;;  %v1438_v53 = vld [vmem:[%s1880_s3] ss:$0 sm:$0xff]  ;;  %v1442_v14 = vmul.f32 %v1043_v50, %v1349_v33  ;;  %vm277_vm6 = vweird.f32 %v1408_v31 }
  0xa9   :  { %v1047_v62 = vpop.eup %1046  ;;  %1058 = vpow2.f32 %v976_v43  ;;  %vm1455_vm7 = vcmp.eq.f32.partialorder %v281_v59, 8.507059e+37  ;;  %v284_v36 = vor.u32 1.1754944e-38, %v283_v4  ;;  %v1463_v39 = vmul.f32 %v1269_v44, %v807_v10 }
  0xaa   :  { %v325_v0 = vsel %vm324_vm5, %v1031_v9, %v321_v51  ;;  %v1049_v8 = vpop.eup %1048  ;;  %v1433_v12 = vadd.f32 1.0, %v1047_v62  ;;  %1060 = vpow2.f32 %v783_v49  ;;  %v685_v52 = vmul.f32 %v1289_v60, %v649_v18 }
  0xab   :  { %v330_v29 = vsel %vm1394_vm3, %v329_v26, %v325_v0  ;;  %v1051_v13 = vpop.eup %1050  ;;  %1062 = vpow2.f32 %v980_v24  ;;  %v799_v22 = vmul.f32 %v1049_v8, %v1349_v33  ;;  %v258_v62 = vmul.f32 %v1392_v17, %v1337_v28 }
  0xac   :  { %v712_v9 = vadd.f32 %v1362_v47, %v330_v29  ;;  %v1053_v20 = vpop.eup %1052  ;;  %1064 = vrcp.f32 %v1433_v12  ;;  %v1465_v43 = vadd.f32 1.0, %v1051_v13  ;;  %v401_v50 = vand.u32 2147483647, %v1433_v12 }
  0xad   :  { %v1452_v25 = vpop.eup %1054  ;;  %v273_v26 = vmul.f32 %v1053_v20, %v1408_v31  ;;  %1066 = vrcp.f32 %v1429_v5  ;;  %v878_v24 = vmul.f32 %v1353_v35, %v330_v29  ;;  %v403_v54 = vand.u32 2147483648, %v1433_v12 }
  0xae   :  { %v728_v47 = vmul.f32 2.0, %v712_v9  ;;  %v1460_v37 = vpop.eup %1056  ;;  %1068 = vpow2.f32 %v761_v61  ;;  %v815_v59 = vmul.f32 2.0, %v799_v22  ;;  %vm278_vm8 = vweird.f32 %v1053_v20 }
  0xaf   :  { %v1059_v45 = vpop.eup %1058  ;;  %v274_v49 = vsub.f32 1.0, %v273_v26  ;;  %1070 = vpow2.f32 %v769_v16  ;;  %vm397_vm9 = vweird.f32 %v1433_v12  ;;  %v259_v29 = vsub.f32 1.0, %v258_v62  ;;  %vm279_vm11 = vmor %vm277_vm6, %vm278_vm8 }
  0xb0   :  { %v827_v48 = vmul.f32 %v1438_v53, %v728_v47  ;;  %v1470_v51 = vpop.eup %1060  ;;  %1072 = vrcp.f32 %v1465_v43  ;;  %v1478_v8 = vadd.f32 1.0, %v1059_v45  ;;  %vm1485_vm10 = vcmp.eq.f32.partialorder %v401_v50, 8.507059e+37  ;;  %v613_v50 = vpop.permute.xlu1 %612 }
  0xb1   :  { %v1063_v61 = vpop.eup %1062  ;;  %v275_v4 = vmul.f32 %v1053_v20, %v274_v49  ;;  %v701_v22 = vadd.f32 %v685_v52, %v1360_v41  ;;  %v404_v26 = vor.u32 1.1754944e-38, %v403_v54  ;;  %v1497_v45 = vmul.f32 %v1269_v44, %v815_v59 }
  0xb2   :  { %v859_v0 = vadd.f32 %v843_v46, %v827_v48  ;;  %v1065_v7 = vpop.eup %1064  ;;  %v1480_v10 = vadd.f32 1.0, %v1063_v61  ;;  %v260_v31 = vmul.f32 %v1392_v17, %v259_v29  ;;  %vm263_vm14 = vweird.f32 %v1392_v17  ;;  %v158_v61 = vpop.f32.mrf.mxu2 }
  0xb3   :  { %v1482_v13 = vpop.eup %1066  ;;  %v276_v16 = vadd.f32 %v1053_v20, %v275_v4  ;;  %v393_v18 = vmul.f32 %v1065_v7, %v1433_v12  ;;  %vm398_vm13 = vweird.f32 %v1065_v7  ;;  %v266_v54 = vand.u32 2147483647, %v1337_v28  ;;  %vm264_vm0 = vmor %vm262_vm12, %vm263_vm14 }
  0xb4   :  { %v894_v9 = vadd.f32 %v878_v24, %v859_v0  ;;  %v1490_v47 = vpop.eup %1068  ;;  %1074 = vrcp.f32 %v1480_v10  ;;  %v358_v52 = vand.u32 2147483648, %v1480_v10  ;;  %vm352_vm15 = vweird.f32 %v1480_v10  ;;  %vm399_vm1 = vmor %vm397_vm9, %vm398_vm13 }
  0xb5   :  { %v1071_v48 = vpop.eup %1070  ;;  %v280_v41 = vsel %vm279_vm11, %v1053_v20, %v276_v16  ;;  %v394_v49 = vsub.f32 1.0, %v393_v18  ;;  %v356_v20 = vand.u32 2147483647, %v1480_v10  ;;  %v261_v30 = vadd.f32 %v1392_v17, %v260_v31 }
  0xb6   :  { %910 = vst [vmem:[%s1883_s6 + $0x20] sm:$0xff] %v894_v9  ;;  %v285_v24 = vsel %vm1455_vm7, %v284_v36, %v280_v41  ;;  %v1512_v0 = vpop.eup %1072  ;;  %v796_v4 = vmul.f32 %v1071_v48, %v1349_v33  ;;  %v268_v36 = vand.u32 2147483648, %v1337_v28  ;;  %v676_v29 = vmul.f32 %v1289_v60, %v613_v50 }
  0xb7   :  { %v709_v59 = vadd.f32 %v1351_v34, %v285_v24  ;;  %v395_v62 = vmul.f32 %v1065_v7, %v394_v49  ;;  %v875_v16 = vmul.f32 %v1353_v35, %v285_v24  ;;  %v359_v34 = vor.u32 1.1754944e-38, %v358_v52 }
  0xb8   :  { %v265_v48 = vsel %vm264_vm0, %v1392_v17, %v261_v30  ;;  %vm267_vm2 = vcmp.eq.f32.partialorder %v266_v54, 8.507059e+37  ;;  %v269_v49 = vor.u32 1.1754944e-38, %v268_v36  ;;  %v159_v50 = vadd.f32 %v1261_v42, %v158_v61  ;;  %v168_v61 = vpop.f32.mrf.mxu3 }
  0xb9   :  { %v725_v9 = vmul.f32 2.0, %v709_v59  ;;  %v396_v18 = vadd.f32 %v1065_v7, %v395_v62  ;;  %vm1530_vm3 = vcmp.eq.f32.partialorder %v356_v20, 8.507059e+37  ;;  %v806_v59 = vmul.f32 2.0, %v1370_v56 }
  0xba   :  { %v1075_v41 = vpop.eup %1074  ;;  %v270_v62 = vsel %vm267_vm2, %v269_v49, %v265_v48  ;;  %v692_v17 = vadd.f32 %v676_v29, %v1310_v11  ;;  %183 = vst [vmem:[%s1882_s5 + $0x50] sm:$0xff] %v159_v50  ;;  %v984_v54 = vmul.f32 -1.442695, %v159_v50  ;;  %v812_v36 = vmul.f32 2.0, %v796_v4 }
  0xbb   :  { %v824_v31 = vmul.f32 %v1438_v53, %v725_v9  ;;  %v348_v52 = vmul.f32 %v1075_v41, %v1480_v10  ;;  %v400_v28 = vsel %vm399_vm1, %v1065_v7, %v396_v18  ;;  %v140_v7 = vpop.f32.mrf.mxu0  ;;  %v150_v18 = vpop.f32.mrf.mxu1  ;;  %vm353_vm4 = vweird.f32 %v1075_v41 }
  0xbc   :  { %v405_v12 = vsel %vm1485_vm10, %v404_v26, %v400_v28  ;;  %v708_v56 = vadd.f32 %v692_v17, %v270_v62  ;;  %1076 = vpow2.f32 %v984_v54  ;;  %v751_v46 = vmul.f32 %v1269_v44, %v159_v50  ;;  %vm354_vm5 = vmor %vm352_vm15, %vm353_vm4 }
  0xbd   :  { %v856_v20 = vadd.f32 %v1463_v39, %v824_v31  ;;  %v349_v30 = vsub.f32 1.0, %v348_v52  ;;  %v717_v9 = vadd.f32 %v701_v22, %v405_v12  ;;  %v169_v48 = vadd.f32 %v1261_v42, %v168_v61 }
  0xbe   :  { %v724_v49 = vmul.f32 2.0, %v708_v56  ;;  %v839_v28 = vmul.f32 %v1269_v44, %v806_v59  ;;  %v141_v39 = vadd.f32 %v1261_v42, %v140_v7  ;;  %v151_v4 = vadd.f32 %v1261_v42, %v150_v18 }
  0xbf   :  { %v891_v26 = vadd.f32 %v875_v16, %v856_v20  ;;  %v350_v11 = vmul.f32 %v1075_v41, %v349_v30  ;;  %v733_v29 = vmul.f32 2.0, %v717_v9  ;;  %v777_v50 = vmul.f32 1.442695, %v751_v46  ;;  %187 = vst [vmem:[%s1882_s5 + $0x70] sm:$0xff] %v169_v48 }
  0xc0   :  { %v988_v16 = vmul.f32 -1.442695, %v169_v48  ;;  %v883_v52 = vmul.f32 %v1353_v35, %v405_v12  ;;  %v823_v59 = vmul.f32 %v1438_v53, %v724_v49  ;;  %v977_v17 = vmul.f32 -1.442695, %v141_v39  ;;  %176 = vst [vmem:[%s1882_s5 + $0x18] sm:$0xff] %v141_v39 }
  0xc1   :  { %907 = vst [vmem:[%s1883_s6 + $0x8] sm:$0xff] %v891_v26  ;;  %v351_v22 = vadd.f32 %v1075_v41, %v350_v11  ;;  %v832_v31 = vmul.f32 %v1438_v53, %v733_v29  ;;  %v744_v54 = vmul.f32 %v1269_v44, %v141_v39  ;;  %v874_v30 = vmul.f32 %v1353_v35, %v270_v62 }
  0xc2   :  { %1078 = vpow2.f32 %v988_v16  ;;  %v1077_v10 = vpop.eup %1076  ;;  %v855_v9 = vadd.f32 %v839_v28, %v823_v59  ;;  %180 = vst [vmem:[%s1882_s5 + $0x38] sm:$0xff] %v151_v4  ;;  %v981_v24 = vmul.f32 -1.442695, %v151_v4  ;;  %v845_v46 = vmul.f32 %v1269_v44, %v812_v36  ;;  %v661_v36 = vpop.permute.xlu2 %660 }
  0xc3   :  { %v355_v61 = vsel %vm354_vm5, %v1075_v41, %v351_v22  ;;  %v864_v20 = vadd.f32 %v1497_v45, %v832_v31  ;;  %1080 = vpow2.f32 %v977_v17  ;;  %v763_v7 = vmul.f32 1.442695, %v744_v54  ;;  %v625_v54 = vpop.permute.xlu1 %624 }
  0xc4   :  { %v360_v12 = vsel %vm1530_vm3, %v359_v34, %v355_v61  ;;  %v1572_v45 = vmul.f32 %v1460_v37, %v1349_v33  ;;  %1082 = vpow2.f32 %v777_v50  ;;  %v890_v18 = vadd.f32 %v874_v30, %v855_v9 }
  0xc5   :  { %v714_v41 = vadd.f32 %v1411_v32, %v360_v12  ;;  %v899_v62 = vadd.f32 %v883_v52, %v864_v20  ;;  %1084 = vrcp.f32 %v1478_v8  ;;  %v748_v34 = vmul.f32 %v1269_v44, %v151_v4 }
  0xc6   :  { %v755_v37 = vmul.f32 %v1269_v44, %v169_v48  ;;  %v438_v32 = vmul.f32 %v1452_v25, %v1403_v27  ;;  %v880_v26 = vmul.f32 %v1353_v35, %v360_v12  ;;  %906 = vst [vmem:[%s1883_s6] sm:$0xff] %v890_v18  ;;  %v1588_v11 = vadd.f32 1.0, %v1077_v10 }
  0xc7   :  { %v730_v56 = vmul.f32 2.0, %v714_v41  ;;  %915 = vst [vmem:[%s1883_s6 + $0x48] sm:$0xff] %v899_v62  ;;  %1086 = vpow2.f32 %v763_v7  ;;  %v771_v29 = vmul.f32 1.442695, %v748_v34  ;;  %vm443_vm6 = vweird.f32 %v1452_v25 }
  0xc8   :  { %v1079_v49 = vpop.eup %1078  ;;  %1088 = vpow2.f32 %v981_v24  ;;  %v439_v39 = vsub.f32 1.0, %v438_v32  ;;  %v446_v22 = vand.u32 2147483647, %v1403_v27  ;;  %v448_v31 = vand.u32 2147483648, %v1403_v27 }
  0xc9   :  { %v829_v28 = vmul.f32 %v1438_v53, %v730_v56  ;;  %v1081_v48 = vpop.eup %1080  ;;  %v1592_v4 = vadd.f32 1.0, %v1079_v49  ;;  %1090 = vpow2.f32 %v771_v29  ;;  %v688_v17 = vmul.f32 %v1289_v60, %v661_v36 }
  0xca   :  { %v1083_v50 = vpop.eup %1082  ;;  %v1596_v52 = vadd.f32 1.0, %v1081_v48  ;;  %v440_v59 = vmul.f32 %v1452_v25, %v439_v39  ;;  %v1604_v20 = vmul.f32 %v1470_v51, %v1349_v33  ;;  %v792_v30 = vmul.f32 %v1490_v47, %v1349_v33 }
  0xcb   :  { %v861_v16 = vadd.f32 %v845_v46, %v829_v28  ;;  %v1600_v61 = vpop.eup %1084  ;;  %v1608_v10 = vmul.f32 1.442695, %v755_v37  ;;  %vm442_vm7 = vweird.f32 %v1403_v27  ;;  %v818_v7 = vmul.f32 2.0, %v1442_v14  ;;  %v621_v28 = vpop.permute.xlu0 %620 }
  0xcc   :  { %1092 = vrcp.f32 %v1596_v52  ;;  %v441_v9 = vadd.f32 %v1452_v25, %v440_v59  ;;  %v1616_v51 = vmul.f32 %v1083_v50, %v1349_v33  ;;  %vm444_vm8 = vmor %vm442_vm7, %vm443_vm6  ;;  %v449_v47 = vor.u32 1.1754944e-38, %v448_v31 }
  0xcd   :  { %v896_v12 = vadd.f32 %v880_v26, %v861_v16  ;;  %v1087_v41 = vpop.eup %1086  ;;  %1094 = vrcp.f32 %v1588_v11  ;;  %v679_v62 = vmul.f32 %v1289_v60, %v625_v54  ;;  %vm447_vm9 = vcmp.eq.f32.partialorder %v446_v22, 8.507059e+37  ;;  %v160_v16 = vpop.f32.mrf.mxu2 }
  0xce   :  { %v1089_v27 = vpop.eup %1088  ;;  %1096 = vrcp.f32 %v1592_v4  ;;  %v445_v14 = vsel %vm444_vm8, %v1452_v25, %v441_v9  ;;  %v704_v18 = vadd.f32 %v688_v17, %v1374_v58  ;;  %v311_v46 = vand.u32 2147483647, %v1596_v52 }
  0xcf   :  { %912 = vst [vmem:[%s1883_s6 + $0x30] sm:$0xff] %v896_v12  ;;  %v1091_v24 = vpop.eup %1090  ;;  %v1627_v34 = vadd.f32 1.0, %v1089_v27  ;;  %v450_v56 = vsel %vm447_vm9, %v449_v47, %v445_v14  ;;  %v288_v37 = vmul.f32 %v1600_v61, %v1478_v8  ;;  %v793_v32 = vmul.f32 %v1087_v41, %v1349_v33  ;;  %v170_v12 = vpop.f32.mrf.mxu3 }
  0xd0   :  { %v720_v26 = vadd.f32 %v704_v18, %v450_v56  ;;  %v851_v29 = vmul.f32 %v1269_v44, %v818_v7  ;;  %v313_v36 = vand.u32 2147483648, %v1596_v52  ;;  %v1636_v25 = vmul.f32 %v1091_v24, %v1349_v33 }
  0xd1   :  { %v886_v58 = vmul.f32 %v1353_v35, %v450_v56  ;;  %vm307_vm10 = vweird.f32 %v1596_v52  ;;  %v695_v49 = vadd.f32 %v679_v62, %v1319_v19  ;;  %v289_v39 = vsub.f32 1.0, %v288_v37 }
  0xd2   :  { %v1093_v48 = vpop.eup %1092  ;;  %1098 = vrcp.f32 %v1627_v34  ;;  %v736_v22 = vmul.f32 2.0, %v720_v26  ;;  %v296_v31 = vand.u32 2147483647, %v1478_v8  ;;  %v298_v50 = vand.u32 2147483648, %v1478_v8 }
  0xd3   :  { %v1644_v59 = vpop.eup %1094  ;;  %v303_v17 = vmul.f32 %v1093_v48, %v1596_v52  ;;  %vm1647_vm11 = vcmp.eq.f32.partialorder %v311_v46, 8.507059e+37  ;;  %v290_v19 = vmul.f32 %v1600_v61, %v289_v39  ;;  %vm292_vm12 = vweird.f32 %v1478_v8 }
  0xd4   :  { %vm293_vm13 = vweird.f32 %v1600_v61  ;;  %v1654_v9 = vpop.eup %1096  ;;  %v835_v7 = vmul.f32 %v1438_v53, %v736_v22  ;;  %vm308_vm14 = vweird.f32 %v1093_v48  ;;  %v809_v41 = vmul.f32 2.0, %v793_v32 }
  0xd5   :  { %v678_v47 = vmul.f32 %v1289_v60, %v621_v28  ;;  %v304_v62 = vsub.f32 1.0, %v303_v17  ;;  %v291_v27 = vadd.f32 %v1600_v61, %v290_v19  ;;  %vm297_vm15 = vcmp.eq.f32.partialorder %v296_v31, 8.507059e+37  ;;  %vm294_vm0 = vmor %vm292_vm12, %vm293_vm13  ;;  %v673_v28 = vpop.permute.xlu2 %672 }
  0xd6   :  { %v161_v14 = vadd.f32 %v1261_v42, %v160_v16  ;;  %v867_v18 = vadd.f32 %v851_v29, %v835_v7  ;;  %v299_v8 = vor.u32 1.1754944e-38, %v298_v50  ;;  %v808_v24 = vmul.f32 2.0, %v792_v30  ;;  %vm309_vm1 = vmor %vm307_vm10, %vm308_vm14 }
  0xd7   :  { %v171_v56 = vadd.f32 %v1261_v42, %v170_v12  ;;  %v305_v46 = vmul.f32 %v1093_v48, %v304_v62  ;;  %v295_v37 = vsel %vm294_vm0, %v1600_v61, %v291_v27  ;;  %v694_v26 = vadd.f32 %v678_v47, %v1305_v6  ;;  %v633_v12 = vpop.permute.xlu1 %632 }
  0xd8   :  { %184 = vst [vmem:[%s1882_s5 + $0x58] sm:$0xff] %v161_v14  ;;  %v985_v32 = vmul.f32 -1.442695, %v161_v14  ;;  %v1666_v39 = vpop.eup %1098  ;;  %v902_v22 = vadd.f32 %v886_v58, %v867_v18  ;;  %v300_v29 = vsel %vm297_vm15, %v299_v8, %v295_v37  ;;  %v752_v31 = vmul.f32 %v1269_v44, %v161_v14 }
  0xd9   :  { %188 = vst [vmem:[%s1882_s5 + $0x78] sm:$0xff] %v171_v56  ;;  %v989_v42 = vmul.f32 -1.442695, %v171_v56  ;;  %v306_v61 = vadd.f32 %v1093_v48, %v305_v46  ;;  %v314_v30 = vor.u32 1.1754944e-38, %v313_v36  ;;  %v710_v6 = vadd.f32 %v694_v26, %v300_v29 }
  0xda   :  { %1100 = vpow2.f32 %v985_v32  ;;  %918 = vst [vmem:[%s1883_s6 + $0x60] sm:$0xff] %v902_v22  ;;  %v779_v58 = vmul.f32 1.442695, %v752_v31  ;;  %v756_v50 = vmul.f32 %v1269_v44, %v171_v56  ;;  %v691_v16 = vmul.f32 %v1289_v60, %v673_v28 }
  0xdb   :  { %1102 = vpow2.f32 %v989_v42  ;;  %v310_v17 = vsel %vm309_vm1, %v1093_v48, %v306_v61  ;;  %v842_v19 = vmul.f32 %v1269_v44, %v809_v41  ;;  %v726_v36 = vmul.f32 2.0, %v710_v6 }
  0xdc   :  { %v333_v7 = vmul.f32 %v1482_v13, %v1429_v5  ;;  %v315_v47 = vsel %vm1647_vm11, %v314_v30, %v310_v17  ;;  %v841_v52 = vmul.f32 %v1269_v44, %v808_v24  ;;  %v876_v62 = vmul.f32 %v1353_v35, %v300_v29 }
  0xdd   :  { %v787_v27 = vmul.f32 1.442695, %v756_v50  ;;  %v711_v14 = vadd.f32 %v695_v49, %v315_v47  ;;  %v825_v18 = vmul.f32 %v1438_v53, %v726_v36  ;;  %1104 = vpow2.f32 %v779_v58 }
  0xde   :  { %v334_v48 = vsub.f32 1.0, %v333_v7  ;;  %v1689_v41 = vadd.f32 %v691_v16, %v1450_v23  ;;  %v341_v8 = vand.u32 2147483647, %v1429_v5  ;;  %v681_v56 = vmul.f32 %v1289_v60, %v633_v12 }
  0xdf   :  { %1106 = vpow2.f32 %v787_v27  ;;  %v727_v46 = vmul.f32 2.0, %v711_v14  ;;  %v857_v37 = vadd.f32 %v841_v52, %v825_v18  ;;  %v343_v26 = vand.u32 2147483648, %v1429_v5 }
  0xe0   :  { %v1101_v54 = vpop.eup %1100  ;;  %v335_v24 = vmul.f32 %v1482_v13, %v334_v48  ;;  %vm337_vm2 = vweird.f32 %v1429_v5  ;;  %vm338_vm3 = vweird.f32 %v1482_v13  ;;  %v811_v23 = vmul.f32 2.0, %v1572_v45 }
  0xe1   :  { %v1103_v49 = vpop.eup %1102  ;;  %v1695_v32 = vadd.f32 1.0, %v1101_v54  ;;  %v826_v28 = vmul.f32 %v1438_v53, %v727_v46  ;;  %v892_v22 = vadd.f32 %v876_v62, %v857_v37  ;;  %v877_v42 = vmul.f32 %v1353_v35, %v315_v47  ;;  %vm339_vm4 = vmor %vm337_vm2, %vm338_vm3  ;;  %v641_v47 = vpop.permute.xlu0 %640 }
  0xe2   :  { %v1701_v29 = vadd.f32 1.0, %v1103_v49  ;;  %v336_v31 = vadd.f32 %v1482_v13, %v335_v24  ;;  %v697_v61 = vadd.f32 %v681_v56, %v1296_v1  ;;  %v363_v30 = vmul.f32 %v1666_v39, %v1627_v34 }
  0xe3   :  { %1108 = vrcp.f32 %v1695_v32  ;;  %v1105_v6 = vpop.eup %1104  ;;  %v858_v58 = vadd.f32 %v842_v19, %v826_v28  ;;  %908 = vst [vmem:[%s1883_s6 + $0x10] sm:$0xff] %v892_v22  ;;  %vm342_vm5 = vcmp.eq.f32.partialorder %v341_v8, 8.507059e+37  ;;  %v344_v45 = vor.u32 1.1754944e-38, %v343_v26 }
  0xe4   :  { %1110 = vrcp.f32 %v1701_v29  ;;  %v340_v16 = vsel %vm339_vm4, %v1482_v13, %v336_v31  ;;  %v844_v1 = vmul.f32 %v1269_v44, %v811_v23  ;;  %v364_v17 = vsub.f32 1.0, %v363_v30 }
  0xe5   :  { %v1107_v50 = vpop.eup %1106  ;;  %vm367_vm6 = vweird.f32 %v1627_v34  ;;  %v893_v19 = vadd.f32 %v877_v42, %v858_v58  ;;  %v493_v12 = vand.u32 2147483648, %v1701_v29  ;;  %v345_v7 = vsel %vm342_vm5, %v344_v45, %v340_v16 }
  0xe6   :  { %v805_v36 = vmul.f32 %v1107_v50, %v1349_v33  ;;  %v1721_v5 = vmul.f32 %v1105_v6, %v1349_v33  ;;  %v491_v52 = vand.u32 2147483647, %v1701_v29  ;;  %v713_v62 = vadd.f32 %v697_v61, %v345_v7  ;;  %v645_v61 = vpop.permute.xlu1 %644 }
  0xe7   :  { %vm368_vm7 = vweird.f32 %v1666_v39  ;;  %909 = vst [vmem:[%s1883_s6 + $0x18] sm:$0xff] %v893_v19  ;;  %v365_v27 = vmul.f32 %v1666_v39, %v364_v17  ;;  %v371_v14 = vand.u32 2147483647, %v1627_v34  ;;  %v373_v18 = vand.u32 2147483648, %v1627_v34 }
  0xe8   :  { %v821_v13 = vmul.f32 2.0, %v805_v36  ;;  %vm487_vm8 = vweird.f32 %v1701_v29  ;;  %v729_v33 = vmul.f32 2.0, %v713_v62  ;;  %v683_v8 = vmul.f32 %v1289_v60, %v641_v47  ;;  %vm369_vm10 = vmor %vm367_vm6, %vm368_vm7 }
  0xe9   :  { %v1731_v48 = vpop.eup %1108  ;;  %v378_v56 = vmul.f32 %v1419_v55, %v1380_v63  ;;  %v494_v46 = vor.u32 1.1754944e-38, %v493_v12  ;;  %v879_v37 = vmul.f32 %v1353_v35, %v345_v7  ;;  %v366_v24 = vadd.f32 %v1666_v39, %v365_v27 }
  0xea   :  { %v1111_v54 = vpop.eup %1110  ;;  %v813_v26 = vmul.f32 2.0, %v1636_v25  ;;  %vm1741_vm9 = vcmp.eq.f32.partialorder %v491_v52, 8.507059e+37  ;;  %v1746_v28 = vmul.f32 %v1269_v44, %v821_v13  ;;  %v828_v22 = vmul.f32 %v1438_v53, %v729_v33 }
  0xeb   :  { %v483_v49 = vmul.f32 %v1111_v54, %v1701_v29  ;;  %v374_v31 = vor.u32 1.1754944e-38, %v373_v18  ;;  %v370_v42 = vsel %vm369_vm10, %v1666_v39, %v366_v24  ;;  %vm372_vm11 = vcmp.eq.f32.partialorder %v371_v14, 8.507059e+37  ;;  %v653_v18 = vpop.permute.xlu0 %652 }
  0xec   :  { %v699_v25 = vadd.f32 %v683_v8, %v1323_v21  ;;  %v379_v30 = vsub.f32 1.0, %v378_v56  ;;  %vm488_vm12 = vweird.f32 %v1111_v54  ;;  %v860_v58 = vadd.f32 %v844_v1, %v828_v22 }
  0xed   :  { %v484_v6 = vsub.f32 1.0, %v483_v49  ;;  %v375_v44 = vsel %vm372_vm11, %v374_v31, %v370_v42  ;;  %vm383_vm13 = vweird.f32 %v1419_v55  ;;  %v386_v34 = vand.u32 2147483647, %v1380_v63  ;;  %vm489_vm0 = vmor %vm487_vm8, %vm488_vm12 }
  0xee   :  { %v715_v45 = vadd.f32 %v699_v25, %v375_v44  ;;  %v380_v50 = vmul.f32 %v1419_v55, %v379_v30  ;;  %v895_v17 = vadd.f32 %v879_v37, %v860_v58  ;;  %v388_v39 = vand.u32 2147483648, %v1380_v63 }
  0xef   :  { %v485_v16 = vmul.f32 %v1111_v54, %v484_v6  ;;  %v684_v19 = vmul.f32 %v1289_v60, %v645_v61  ;;  %vm382_vm14 = vweird.f32 %v1380_v63  ;;  %v814_v1 = vmul.f32 2.0, %v1424_v57  ;;  %v1776_v57 = vld [vmem:[%s1880_s3 + $0x1] ss:$0 sm:$0xff] }
  0xf0   :  { %v731_v21 = vmul.f32 2.0, %v715_v45  ;;  %v381_v36 = vadd.f32 %v1419_v55, %v380_v50  ;;  %911 = vst [vmem:[%s1883_s6 + $0x28] sm:$0xff] %v895_v17  ;;  %vm384_vm15 = vmor %vm382_vm14, %vm383_vm13  ;;  %v389_v7 = vor.u32 1.1754944e-38, %v388_v39  ;;  %v408_v52 = vmul.f32 %v1644_v59, %v1588_v11 }
  0xf1   :  { %v486_v12 = vadd.f32 %v1111_v54, %v485_v16  ;;  %v700_v47 = vadd.f32 %v684_v19, %v1299_v2  ;;  %v846_v62 = vmul.f32 %v1776_v57, %v813_v26  ;;  %vm387_vm1 = vcmp.eq.f32.partialorder %v386_v34, 8.507059e+37 }
  0xf2   :  { %v830_v63 = vmul.f32 %v1438_v53, %v731_v21  ;;  %v385_v13 = vsel %vm384_vm15, %v1419_v55, %v381_v36  ;;  %v881_v27 = vmul.f32 %v1353_v35, %v375_v44  ;;  %v409_v33 = vsub.f32 1.0, %v408_v52  ;;  %v657_v44 = vpop.permute.xlu1 %656 }
  0xf3   :  { %v490_v2 = vsel %vm489_vm0, %v1111_v54, %v486_v12  ;;  %v390_v14 = vsel %vm387_vm1, %v389_v7, %v385_v13  ;;  %v847_v37 = vmul.f32 %v1776_v57, %v814_v1  ;;  %vm413_vm2 = vweird.f32 %v1644_v59 }
  0xf4   :  { %v495_v29 = vsel %vm1741_vm9, %v494_v46, %v490_v2  ;;  %v862_v8 = vadd.f32 %v846_v62, %v830_v63  ;;  %v716_v56 = vadd.f32 %v700_v47, %v390_v14  ;;  %v410_v26 = vmul.f32 %v1644_v59, %v409_v33  ;;  %v665_v47 = vpop.permute.xlu0 %664 }
  0xf5   :  { %v723_v24 = vadd.f32 %v1689_v41, %v495_v29  ;;  %v416_v55 = vand.u32 2147483647, %v1588_v11  ;;  %v418_v22 = vand.u32 2147483648, %v1588_v11  ;;  %v686_v31 = vmul.f32 %v1289_v60, %v653_v18 }
  0xf6   :  { %v897_v54 = vadd.f32 %v881_v27, %v862_v8  ;;  %v732_v49 = vmul.f32 2.0, %v716_v56  ;;  %v882_v46 = vmul.f32 %v1353_v35, %v390_v14  ;;  %v411_v42 = vadd.f32 %v1644_v59, %v410_v26  ;;  %v1115_v8 = vld [vmem:[%s1880_s3 + $0x2] ss:$0 sm:$0xff] }
  0xf7   :  { %v739_v23 = vmul.f32 2.0, %v723_v24  ;;  %vm412_vm3 = vweird.f32 %v1588_v11  ;;  %vm417_vm5 = vcmp.eq.f32.partialorder %v416_v55, 8.507059e+37  ;;  %v419_v25 = vor.u32 1.1754944e-38, %v418_v22 }
  0xf8   :  { %913 = vst [vmem:[%s1883_s6 + $0x38] sm:$0xff] %v897_v54  ;;  %v831_v41 = vmul.f32 %v1438_v53, %v732_v49  ;;  %vm414_vm4 = vmor %vm412_vm3, %vm413_vm2  ;;  %v423_v61 = vmul.f32 %v1731_v48, %v1695_v32  ;;  %v702_v58 = vadd.f32 %v686_v31, %v1357_v40  ;;  %v816_v11 = vmul.f32 2.0, %v1616_v51 }
  0xf9   :  { %v838_v30 = vmul.f32 %v1438_v53, %v739_v23  ;;  %v415_v6 = vsel %vm414_vm4, %v1644_v59, %v411_v42  ;;  %v889_v45 = vmul.f32 %v1353_v35, %v495_v29  ;;  %vm428_vm6 = vweird.f32 %v1731_v48 }
  0xfa   :  { %v863_v50 = vadd.f32 %v847_v37, %v831_v41  ;;  %v420_v34 = vsel %vm417_vm5, %v419_v25, %v415_v6  ;;  %v424_v16 = vsub.f32 1.0, %v423_v61  ;;  %v431_v19 = vand.u32 2147483647, %v1695_v32  ;;  %v669_v26 = vpop.permute.xlu1 %668 }
  0xfb   :  { %v870_v17 = vadd.f32 %v1746_v28, %v838_v30  ;;  %v718_v39 = vadd.f32 %v702_v58, %v420_v34  ;;  %v433_v40 = vand.u32 2147483648, %v1695_v32  ;;  %v687_v51 = vmul.f32 %v1289_v60, %v657_v44 }
  0xfc   :  { %v898_v21 = vadd.f32 %v882_v46, %v863_v50  ;;  %v425_v59 = vmul.f32 %v1731_v48, %v424_v16  ;;  %1112 = vpow2.f32 %v1608_v10  ;;  %v849_v12 = vmul.f32 %v1776_v57, %v816_v11 }
  0xfd   :  { %v905_v36 = vadd.f32 %v889_v45, %v870_v17  ;;  %v734_v1 = vmul.f32 2.0, %v718_v39  ;;  %v884_v28 = vmul.f32 %v1353_v35, %v420_v34  ;;  %vm427_vm7 = vweird.f32 %v1695_v32 }
  0xfe   :  { %914 = vst [vmem:[%s1883_s6 + $0x40] sm:$0xff] %v898_v21  ;;  %v426_v7 = vadd.f32 %v1731_v48, %v425_v59  ;;  %v453_v52 = vmul.f32 %v1512_v0, %v1465_v43  ;;  %vm429_vm8 = vmor %vm427_vm7, %vm428_vm6  ;;  %vm432_vm9 = vcmp.eq.f32.partialorder %v431_v19, 8.507059e+37  ;;  %v434_v63 = vor.u32 1.1754944e-38, %v433_v40 }
  0xff   :  { %921 = vst [vmem:[%s1883_s6 + $0x78] sm:$0xff] %v905_v36  ;;  %v833_v10 = vmul.f32 %v1438_v53, %v734_v1  ;;  %v817_v62 = vmul.f32 2.0, %v1721_v5  ;;  %v703_v32 = vadd.f32 %v687_v51, %v1302_v3  ;;  %v461_v27 = vand.u32 2147483647, %v1465_v43 }
 0x100   :  { %v430_v13 = vsel %vm429_vm8, %v1731_v48, %v426_v7  ;;  %v454_v2 = vsub.f32 1.0, %v453_v52  ;;  %v463_v33 = vand.u32 2147483648, %v1465_v43  ;;  %v689_v29 = vmul.f32 %v1289_v60, %v665_v47 }
 0x101   :  { %v865_v14 = vadd.f32 %v849_v12, %v833_v10  ;;  %v435_v18 = vsel %vm432_vm9, %v434_v63, %v430_v13  ;;  %v607_v56 = vmul.f32 %v1115_v8, %v1444_v15  ;;  %vm458_vm10 = vweird.f32 %v1512_v0 }
 0x102   :  { %v719_v5 = vadd.f32 %v703_v32, %v435_v18  ;;  %v455_v48 = vmul.f32 %v1512_v0, %v454_v2  ;;  %v1113_v3 = vpop.eup %1112  ;;  %v608_v37 = vmul.f32 %v1115_v8, %v1256_v38  ;;  %vm457_vm11 = vweird.f32 %v1465_v43 }
 0x103   :  { %v900_v24 = vadd.f32 %v884_v28, %v865_v14  ;;  %v705_v49 = vadd.f32 %v689_v29, %v607_v56  ;;  %v468_v22 = vmul.f32 %v1654_v9, %v1592_v4  ;;  %v850_v15 = vmul.f32 %v1776_v57, %v817_v62  ;;  %vm459_vm12 = vmor %vm457_vm11, %vm458_vm10 }
 0x104   :  { %v735_v55 = vmul.f32 2.0, %v719_v5  ;;  %v456_v54 = vadd.f32 %v1512_v0, %v455_v48  ;;  %vm462_vm13 = vcmp.eq.f32.partialorder %v461_v27, 8.507059e+37  ;;  %v464_v38 = vor.u32 1.1754944e-38, %v463_v33 }
 0x105   :  { %916 = vst [vmem:[%s1883_s6 + $0x50] sm:$0xff] %v900_v24  ;;  %v819_v31 = vmul.f32 2.0, %v1604_v20  ;;  %v469_v46 = vsub.f32 1.0, %v468_v22  ;;  %v690_v42 = vmul.f32 %v1289_v60, %v669_v26  ;;  %v885_v41 = vmul.f32 %v1353_v35, %v435_v18 }
 0x106   :  { %v834_v43 = vmul.f32 %v1438_v53, %v735_v55  ;;  %v460_v23 = vsel %vm459_vm12, %v1512_v0, %v456_v54  ;;  %vm473_vm14 = vweird.f32 %v1654_v9  ;;  %v478_v61 = vand.u32 2147483648, %v1592_v4  ;;  %v1116_v0 = vld [vmem:[%s1880_s3 + $0x3] ss:$0 sm:$0xff] }
 0x107   :  { %v465_v25 = vsel %vm462_vm13, %v464_v38, %v460_v23  ;;  %v470_v58 = vmul.f32 %v1654_v9, %v469_v46  ;;  %v476_v20 = vand.u32 2147483647, %v1592_v4  ;;  %v804_v11 = vmul.f32 %v1116_v0, %v1113_v3 }
 0x108   :  { %v866_v30 = vadd.f32 %v850_v15, %v834_v43  ;;  %v721_v6 = vadd.f32 %v705_v49, %v465_v25  ;;  %vm472_vm15 = vweird.f32 %v1592_v4  ;;  %v706_v50 = vadd.f32 %v690_v42, %v608_v37 }
 0x109   :  { %v471_v45 = vadd.f32 %v1654_v9, %v470_v58  ;;  %vm474_vm0 = vmor %vm472_vm15, %vm473_vm14  ;;  %v479_v34 = vor.u32 1.1754944e-38, %v478_v61  ;;  %v852_v17 = vmul.f32 %v1776_v57, %v819_v31  ;;  %vm477_vm1 = vcmp.eq.f32.partialorder %v476_v20, 8.507059e+37 }
 0x10a   :  { %v901_v60 = vadd.f32 %v885_v41, %v866_v30  ;;  %v737_v44 = vmul.f32 2.0, %v721_v6  ;;  %v887_v21 = vmul.f32 %v1353_v35, %v465_v25  ;;  %v820_v40 = vmul.f32 2.0, %v804_v11 }
 0x10b   :  { %v475_v39 = vsel %vm474_vm0, %v1654_v9, %v471_v45 }
 0x10c   :  { %917 = vst [vmem:[%s1883_s6 + $0x58] sm:$0xff] %v901_v60  ;;  %v836_v16 = vmul.f32 %v1438_v53, %v737_v44  ;;  %v480_v19 = vsel %vm477_vm1, %v479_v34, %v475_v39  ;;  %v853_v12 = vmul.f32 %v1776_v57, %v820_v40 }
 0x10d   :  { %v722_v59 = vadd.f32 %v706_v50, %v480_v19  ;;  %v888_v9 = vmul.f32 %v1353_v35, %v480_v19 }
 0x10e   :  { %v868_v4 = vadd.f32 %v852_v17, %v836_v16 }
 0x10f   :  { %v738_v36 = vmul.f32 2.0, %v722_v59 }
 0x110   :  { %v903_v51 = vadd.f32 %v887_v21, %v868_v4 }
 0x111   :  { %v837_v1 = vmul.f32 %v1438_v53, %v738_v36 }
 0x112   :  { %919 = vst [vmem:[%s1883_s6 + $0x68] sm:$0xff] %v903_v51 }
 0x113   :  { %v869_v28 = vadd.f32 %v853_v12, %v837_v1 }
 0x115   :  { %v904_v7 = vadd.f32 %v888_v9, %v869_v28 }
 0x117   :  { %920 = vst [vmem:[%s1883_s6 + $0x70] sm:$0xff] %v904_v7 }

</bundles_post_ra>
